<compile_context>
chip_gen: v6e
topology: v6e:2x2x1
jax: 0.10.0
libtpu: 0.0.40
codegen_flags: <defaults>
</compile_context>

<pallas_src>
import functools
import math

import jax
import jax.numpy as jnp
from jax.experimental import pallas as pl
from jax.experimental.pallas import tpu as pltpu

H1 = 64    # lstm1 hidden size
H2 = 3     # lstm2 hidden size
G2 = 32    # lstm2 per-gate lane stride (H2 padded to 32 -> 4*G2 = 128 gate lanes)


# ------------------------------- fused kernel -------------------------------

def fused_lstm_cnn_kernel(x_ref, wih1_ref, whh1_ref, b1_ref,
                          wconv_ref, bconv_ref,
                          wih2_ref, whh2_ref, b2_ref,
                          out_ref, h1_scr, *, B, T):
    """Fused LSTM_CNN forward.

    x_ref:     (T*B, D_in)      time-major flattened input (row = t*B + b)
    wih1_ref:  (D_in, 4*H1)     lstm1 W_ih^T, gates [i|f|g|o] tightly packed
    whh1_ref:  (H1, 4*H1)       lstm1 W_hh^T
    b1_ref:    (1, 4*H1)        lstm1 b_ih + b_hh
    wconv_ref: (T, 3*T)         conv taps [k0|k1|k2] concatenated along cols
    bconv_ref: (T, 1)           conv bias (per output channel)
    wih2_ref:  (H1, 4*G2)       lstm2 W_ih^T, each gate in a 32-lane block
    whh2_ref:  (G2, 4*G2)       lstm2 W_hh^T (rows >= H2 are zero)
    b2_ref:    (1, 4*G2)        lstm2 bias (lanes outside real gates are zero)
    out_ref:   (T*B, G2)        softmax output, row = t*B + b, lanes 0..2 real
    h1_scr:    (B*T, H1)        scratch: lstm1 hidden states, row = b*T + t
    """
    f32 = jnp.float32
    one = jnp.float32(1.0)
    zero = jnp.float32(0.0)

    # ---------------- lstm1 (input_size -> 64): hoisted input projection ----
    gx1 = (jnp.dot(x_ref[...], wih1_ref[...], preferred_element_type=f32)
           + b1_ref[...])                                   # (T*B, 4*H1)

    h = jnp.zeros((B, H1), f32)
    c = jnp.zeros((B, H1), f32)
    for t in range(T):                                      # fully unrolled
        gates = gx1[t * B:(t + 1) * B, :] + jnp.dot(
            h, whh1_ref[...], preferred_element_type=f32)   # (B, 4*H1)
        i_g = jax.nn.sigmoid(gates[:, 0 * H1:1 * H1])
        f_g = jax.nn.sigmoid(gates[:, 1 * H1:2 * H1])
        g_g = jnp.tanh(gates[:, 2 * H1:3 * H1])
        o_g = jax.nn.sigmoid(gates[:, 3 * H1:4 * H1])
        c = f_g * c + i_g * g_g
        h = o_g * jnp.tanh(c)
        # stash h in the conv layout: per-batch contiguous (T, H1) blocks
        for b in range(B):
            h1_scr[b * T + t:b * T + t + 1, :] = h[b:b + 1, :]

    # -------- cnn1: Conv1d(C=T -> C=T, k=3, stride=1, pad=1) over L=H1 + ReLU
    row_i = jax.lax.broadcasted_iota(jnp.int32, (H1, H1), 0)
    col_i = jax.lax.broadcasted_iota(jnp.int32, (H1, H1), 1)
    s_m1 = jnp.where(row_i + 1 == col_i, one, zero)   # x @ s_m1 -> x[:, l-1]
    s_p1 = jnp.where(row_i == col_i + 1, one, zero)   # x @ s_p1 -> x[:, l+1]
    w_cat = wconv_ref[...]                            # (C, 3C)
    b_cv = bconv_ref[...]                             # (C, 1)

    conv_out = []
    for b in range(B):
        xb = h1_scr[b * T:(b + 1) * T, :]                               # (C, L)
        x_m1 = jnp.dot(xb, s_m1, preferred_element_type=f32)
        x_p1 = jnp.dot(xb, s_p1, preferred_element_type=f32)
        x_cat = jnp.concatenate([x_m1, xb, x_p1], axis=0)               # (3C, L)
        yb = jnp.dot(w_cat, x_cat, preferred_element_type=f32) + b_cv   # (C, L)
        conv_out.append(jnp.maximum(yb, 0.0))

    # ---------------- lstm2 (64 -> 3): hoisted input projection -------------
    x2 = jnp.concatenate(conv_out, axis=0)                  # (B*T, H1), row b*T+t
    gx2 = (jnp.dot(x2, wih2_ref[...], preferred_element_type=f32)
           + b2_ref[...])                                   # (B*T, 4*G2)

    lane = jax.lax.broadcasted_iota(jnp.int32, (B, G2), 1)
    h2 = jnp.zeros((B, G2), f32)
    c2 = jnp.zeros((B, G2), f32)
    for t in range(T):                                      # fully unrolled
        gx_t = jnp.concatenate(
            [gx2[b * T + t:b * T + t + 1, :] for b in range(B)], axis=0)  # (B, 4*G2)
        gates = gx_t + jnp.dot(h2, whh2_ref[...], preferred_element_type=f32)
        i_g = jax.nn.sigmoid(gates[:, 0 * G2:1 * G2])
        f_g = jax.nn.sigmoid(gates[:, 1 * G2:2 * G2])
        g_g = jnp.tanh(gates[:, 2 * G2:3 * G2])
        o_g = jax.nn.sigmoid(gates[:, 3 * G2:4 * G2])
        c2 = f_g * c2 + i_g * g_g
        h2 = o_g * jnp.tanh(c2)                             # padded lanes stay 0

        # ---- softmax over the H2 real lanes (fused epilogue) ----
        masked = jnp.where(lane < H2, h2, -jnp.inf)
        m = jnp.max(masked, axis=-1, keepdims=True)
        e = jnp.where(lane < H2, jnp.exp(masked - m), zero)
        s = jnp.sum(e, axis=-1, keepdims=True)
        out_ref[t * B:(t + 1) * B, :] = e * pl.reciprocal(s, approx=True)


# ------------------------------ host-side glue -------------------------------

def _pack_lstm(w_ih, w_hh, b_ih, b_hh, gate_pad):
    """Pack PyTorch-layout LSTM weights into transposed, gate-strided form.

    Gate g occupies lanes [g*gate_pad, g*gate_pad + H); all other lanes / rows
    are zero (required by the padded-lanes-stay-zero invariant).
    """
    four_h, d_in = w_ih.shape
    h = four_h // 4
    wih_t = jnp.zeros((d_in, 4 * gate_pad), jnp.float32)
    whh_t = jnp.zeros((gate_pad, 4 * gate_pad), jnp.float32)
    b = jnp.zeros((1, 4 * gate_pad), jnp.float32)
    for g in range(4):
        wih_t = wih_t.at[:, g * gate_pad:g * gate_pad + h].set(
            w_ih[g * h:(g + 1) * h, :].T)
        whh_t = whh_t.at[:h, g * gate_pad:g * gate_pad + h].set(
            w_hh[g * h:(g + 1) * h, :].T)
        b = b.at[0, g * gate_pad:g * gate_pad + h].set(
            b_ih[g * h:(g + 1) * h] + b_hh[g * h:(g + 1) * h])
    return wih_t, whh_t, b


@jax.jit
def lstm_cnn_forward(x, params):
    """x: (B, T, input_size) -> (B, T, 3), matching LSTM_CNN.forward."""
    B, T, d_in = x.shape

    wih1, whh1, b1 = _pack_lstm(params['w_ih1'], params['w_hh1'],
                                params['b_ih1'], params['b_hh1'], H1)
    wih2, whh2, b2 = _pack_lstm(params['w_ih2'], params['w_hh2'],
                                params['b_ih2'], params['b_hh2'], G2)
    w_conv = params['w_conv'].astype(jnp.float32)                   # (T, T, 3)
    w_cat = jnp.concatenate(
        [w_conv[:, :, 0], w_conv[:, :, 1], w_conv[:, :, 2]], axis=1)  # (T, 3T)
    b_cv = params['b_conv'].astype(jnp.float32)[:, None]            # (T, 1)

    # time-major flattened input: row t*B + b
    x_flat = jnp.swapaxes(x, 0, 1).reshape(T * B, d_in).astype(jnp.float32)

    kernel = functools.partial(fused_lstm_cnn_kernel, B=B, T=T)
    out_flat = pl.pallas_call(
        kernel,
        out_shape=jax.ShapeDtypeStruct((T * B, G2), jnp.float32),
        scratch_shapes=[pltpu.VMEM((B * T, H1), jnp.float32)],
    )(x_flat, wih1, whh1, b1, w_cat, b_cv, wih2, whh2, b2)

    out = out_flat[:, :H2].reshape(T, B, H2)                        # row t*B + b
    return jnp.swapaxes(out, 0, 1)                                  # (B, T, 3)


# ------------------------------ pure-JAX reference ---------------------------

def lstm_ref(x, w_ih, w_hh, b_ih, b_hh):
    B, T, D = x.shape
    H = w_hh.shape[1]

    def cell(carry, x_t):
        h, c = carry
        gates = x_t @ w_ih.T + h @ w_hh.T + b_ih + b_hh
        i, f, g, o = jnp.split(gates, 4, axis=-1)
        i, f, o = jax.nn.sigmoid(i), jax.nn.sigmoid(f), jax.nn.sigmoid(o)
        g = jnp.tanh(g)
        c = f * c + i * g
        h = o * jnp.tanh(c)
        return (h, c), h

    h0 = jnp.zeros((B, H), jnp.float32)
    c0 = jnp.zeros((B, H), jnp.float32)
    _, hs = jax.lax.scan(cell, (h0, c0), jnp.swapaxes(x, 0, 1))
    return jnp.swapaxes(hs, 0, 1)


def conv1d_ref(x, w, b):
    xp = jnp.pad(x, ((0, 0), (0, 0), (1, 1)))
    return (jnp.einsum('oi,bil->bol', w[:, :, 0], xp[:, :, 0:-2])
            + jnp.einsum('oi,bil->bol', w[:, :, 1], xp[:, :, 1:-1])
            + jnp.einsum('oi,bil->bol', w[:, :, 2], xp[:, :, 2:])
            + b[None, :, None])


def reference_forward(x, p):
    h1 = lstm_ref(x, p['w_ih1'], p['w_hh1'], p['b_ih1'], p['b_hh1'])
    c = jnp.maximum(conv1d_ref(h1, p['w_conv'], p['b_conv']), 0.0)
    h2 = lstm_ref(c, p['w_ih2'], p['w_hh2'], p['b_ih2'], p['b_hh2'])
    return jax.nn.softmax(h2, axis=2)


# ------------------------------ main ----------------------------------------

if __name__ == "__main__":
    key = jax.random.PRNGKey(0)
    B, T, D_in = 2, 8, 16          # batch, timesteps, input_size

    keys = jax.random.split(key, 11)

    def uni(k, shape, bound):
        return jax.random.uniform(k, shape, jnp.float32, -bound, bound)

    s1 = 1.0 / math.sqrt(H1)
    s2 = 1.0 / math.sqrt(H2)
    sc = 1.0 / math.sqrt(T * 3.0)

    params = {
        'w_ih1': uni(keys[0], (4 * H1, D_in), s1),
        'w_hh1': uni(keys[1], (4 * H1, H1), s1),
        'b_ih1': uni(keys[2], (4 * H1,), s1),
        'b_hh1': uni(keys[3], (4 * H1,), s1),
        'w_conv': uni(keys[4], (T, T, 3), sc),
        'b_conv': uni(keys[5], (T,), sc),
        'w_ih2': uni(keys[6], (4 * H2, H1), s2),
        'w_hh2': uni(keys[7], (4 * H2, H2), s2),
        'b_ih2': uni(keys[8], (4 * H2,), s2),
        'b_hh2': uni(keys[9], (4 * H2,), s2),
    }
    x = jax.random.normal(keys[10], (B, T, D_in), jnp.float32)

    out = lstm_cnn_forward(x, params)
    out = jax.block_until_ready(out)
    assert out.shape == (B, T, 3)

    ref = reference_forward(x, params)
    assert bool(jnp.allclose(out, ref, atol=5e-3, rtol=5e-3)), "mismatch vs reference"

    print("KERNEL_OK")
</pallas_src>

<mosaic_0001>
module attributes {stable_mosaic.version = 11 : i64} {
  func.func @fused_lstm_cnn_kernel(%arg0: memref<16x16xf32, #tpu.memory_space<vmem>>, %arg1: memref<16x256xf32, #tpu.memory_space<vmem>>, %arg2: memref<64x256xf32, #tpu.memory_space<vmem>>, %arg3: memref<1x256xf32, #tpu.memory_space<vmem>>, %arg4: memref<8x24xf32, #tpu.memory_space<vmem>>, %arg5: memref<8x1xf32, #tpu.memory_space<vmem>>, %arg6: memref<64x128xf32, #tpu.memory_space<vmem>>, %arg7: memref<32x128xf32, #tpu.memory_space<vmem>>, %arg8: memref<1x128xf32, #tpu.memory_space<vmem>>, %arg9: memref<16x32xf32, #tpu.memory_space<vmem>>, %arg10: memref<16x64xf32, #tpu.memory_space<vmem>>) attributes {dimension_semantics = [], scalar_prefetch = 0 : i64, scratch_operands = 1 : i64, tpu.core_type = #tpu.core_type<tc>} {
    %c0 = arith.constant 0 : index
    %c0_0 = arith.constant 0 : index
    %0 = vector.load %arg0[%c0, %c0_0] : memref<16x16xf32, #tpu.memory_space<vmem>>, vector<16x16xf32>
    %c0_1 = arith.constant 0 : index
    %c0_2 = arith.constant 0 : index
    %1 = vector.load %arg1[%c0_1, %c0_2] : memref<16x256xf32, #tpu.memory_space<vmem>>, vector<16x256xf32>
    %cst = arith.constant dense<0.000000e+00> : vector<16x256xf32>
    %2 = tpu.matmul %0, %1, %cst {dimension_numbers = #tpu.dot_dimension_numbers<[1], [0], [0], [1], [0, 0, 1, 1], [], []>} : vector<16x16xf32>, vector<16x256xf32>, vector<16x256xf32> -> vector<16x256xf32>
    %c0_3 = arith.constant 0 : index
    %c0_4 = arith.constant 0 : index
    %3 = vector.load %arg3[%c0_3, %c0_4] : memref<1x256xf32, #tpu.memory_space<vmem>>, vector<1x256xf32>
    %4 = vector.broadcast %3 : vector<1x256xf32> to vector<16x256xf32>
    %5 = arith.addf %2, %4 : vector<16x256xf32>
    %cst_5 = arith.constant 0.000000e+00 : f32
    %6 = vector.broadcast %cst_5 : f32 to vector<2x64xf32>
    %cst_6 = arith.constant 0.000000e+00 : f32
    %7 = vector.broadcast %cst_6 : f32 to vector<2x64xf32>
    %8 = vector.extract_strided_slice %5 {offsets = [0, 0], sizes = [2, 256], strides = [1, 1]} : vector<16x256xf32> to vector<2x256xf32>
    %c0_7 = arith.constant 0 : index
    %c0_8 = arith.constant 0 : index
    %9 = vector.load %arg2[%c0_7, %c0_8] : memref<64x256xf32, #tpu.memory_space<vmem>>, vector<64x256xf32>
    %cst_9 = arith.constant dense<0.000000e+00> : vector<2x256xf32>
    %10 = tpu.matmul %6, %9, %cst_9 {dimension_numbers = #tpu.dot_dimension_numbers<[1], [0], [0], [1], [0, 0, 1, 1], [], []>} : vector<2x64xf32>, vector<64x256xf32>, vector<2x256xf32> -> vector<2x256xf32>
    %11 = arith.addf %8, %10 : vector<2x256xf32>
    %12 = vector.extract_strided_slice %11 {offsets = [0, 0], sizes = [2, 64], strides = [1, 1]} : vector<2x256xf32> to vector<2x64xf32>
    %13 = arith.negf %12 : vector<2x64xf32>
    %14 = math.exp %13 : vector<2x64xf32>
    %cst_10 = arith.constant 1.000000e+00 : f32
    %15 = vector.broadcast %cst_10 : f32 to vector<2x64xf32>
    %16 = arith.addf %15, %14 : vector<2x64xf32>
    %17 = arith.divf %15, %16 : vector<2x64xf32>
    %18 = vector.extract_strided_slice %11 {offsets = [0, 64], sizes = [2, 64], strides = [1, 1]} : vector<2x256xf32> to vector<2x64xf32>
    %19 = arith.negf %18 : vector<2x64xf32>
    %20 = math.exp %19 : vector<2x64xf32>
    %cst_11 = arith.constant 1.000000e+00 : f32
    %21 = vector.broadcast %cst_11 : f32 to vector<2x64xf32>
    %22 = arith.addf %21, %20 : vector<2x64xf32>
    %23 = arith.divf %21, %22 : vector<2x64xf32>
    %24 = vector.extract_strided_slice %11 {offsets = [0, 128], sizes = [2, 64], strides = [1, 1]} : vector<2x256xf32> to vector<2x64xf32>
    %25 = math.tanh %24 : vector<2x64xf32>
    %26 = vector.extract_strided_slice %11 {offsets = [0, 192], sizes = [2, 64], strides = [1, 1]} : vector<2x256xf32> to vector<2x64xf32>
    %27 = arith.negf %26 : vector<2x64xf32>
    %28 = math.exp %27 : vector<2x64xf32>
    %cst_12 = arith.constant 1.000000e+00 : f32
    %29 = vector.broadcast %cst_12 : f32 to vector<2x64xf32>
    %30 = arith.addf %29, %28 : vector<2x64xf32>
    %31 = arith.divf %29, %30 : vector<2x64xf32>
    %32 = arith.mulf %23, %7 : vector<2x64xf32>
    %33 = arith.mulf %17, %25 : vector<2x64xf32>
    %34 = arith.addf %32, %33 : vector<2x64xf32>
    %35 = math.tanh %34 : vector<2x64xf32>
    %36 = arith.mulf %31, %35 : vector<2x64xf32>
    %37 = vector.extract_strided_slice %36 {offsets = [0, 0], sizes = [1, 64], strides = [1, 1]} : vector<2x64xf32> to vector<1x64xf32>
    %c0_13 = arith.constant 0 : index
    %c0_14 = arith.constant 0 : index
    %38 = vector.load %arg10[%c0_13, %c0_14] : memref<16x64xf32, #tpu.memory_space<vmem>>, vector<1x64xf32>
    tpu.vector_store %arg10[%c0_13, %c0_14], %37 {strides = array<i32>} : memref<16x64xf32, #tpu.memory_space<vmem>>, vector<1x64xf32>,
    %39 = vector.extract_strided_slice %36 {offsets = [1, 0], sizes = [1, 64], strides = [1, 1]} : vector<2x64xf32> to vector<1x64xf32>
    %c8 = arith.constant 8 : index
    %c0_15 = arith.constant 0 : index
    %40 = vector.load %arg10[%c8, %c0_15] : memref<16x64xf32, #tpu.memory_space<vmem>>, vector<1x64xf32>
    tpu.vector_store %arg10[%c8, %c0_15], %39 {strides = array<i32>} : memref<16x64xf32, #tpu.memory_space<vmem>>, vector<1x64xf32>,
    %41 = vector.extract_strided_slice %5 {offsets = [2, 0], sizes = [2, 256], strides = [1, 1]} : vector<16x256xf32> to vector<2x256xf32>
    %c0_16 = arith.constant 0 : index
    %c0_17 = arith.constant 0 : index
    %42 = vector.load %arg2[%c0_16, %c0_17] : memref<64x256xf32, #tpu.memory_space<vmem>>, vector<64x256xf32>
    %cst_18 = arith.constant dense<0.000000e+00> : vector<2x256xf32>
    %43 = tpu.matmul %36, %42, %cst_18 {dimension_numbers = #tpu.dot_dimension_numbers<[1], [0], [0], [1], [0, 0, 1, 1], [], []>} : vector<2x64xf32>, vector<64x256xf32>, vector<2x256xf32> -> vector<2x256xf32>
    %44 = arith.addf %41, %43 : vector<2x256xf32>
    %45 = vector.extract_strided_slice %44 {offsets = [0, 0], sizes = [2, 64], strides = [1, 1]} : vector<2x256xf32> to vector<2x64xf32>
    %46 = arith.negf %45 : vector<2x64xf32>
    %47 = math.exp %46 : vector<2x64xf32>
    %cst_19 = arith.constant 1.000000e+00 : f32
    %48 = vector.broadcast %cst_19 : f32 to vector<2x64xf32>
    %49 = arith.addf %48, %47 : vector<2x64xf32>
    %50 = arith.divf %48, %49 : vector<2x64xf32>
    %51 = vector.extract_strided_slice %44 {offsets = [0, 64], sizes = [2, 64], strides = [1, 1]} : vector<2x256xf32> to vector<2x64xf32>
    %52 = arith.negf %51 : vector<2x64xf32>
    %53 = math.exp %52 : vector<2x64xf32>
    %cst_20 = arith.constant 1.000000e+00 : f32
    %54 = vector.broadcast %cst_20 : f32 to vector<2x64xf32>
    %55 = arith.addf %54, %53 : vector<2x64xf32>
    %56 = arith.divf %54, %55 : vector<2x64xf32>
    %57 = vector.extract_strided_slice %44 {offsets = [0, 128], sizes = [2, 64], strides = [1, 1]} : vector<2x256xf32> to vector<2x64xf32>
    %58 = math.tanh %57 : vector<2x64xf32>
    %59 = vector.extract_strided_slice %44 {offsets = [0, 192], sizes = [2, 64], strides = [1, 1]} : vector<2x256xf32> to vector<2x64xf32>
    %60 = arith.negf %59 : vector<2x64xf32>
    %61 = math.exp %60 : vector<2x64xf32>
    %cst_21 = arith.constant 1.000000e+00 : f32
    %62 = vector.broadcast %cst_21 : f32 to vector<2x64xf32>
    %63 = arith.addf %62, %61 : vector<2x64xf32>
    %64 = arith.divf %62, %63 : vector<2x64xf32>
    %65 = arith.mulf %56, %34 : vector<2x64xf32>
    %66 = arith.mulf %50, %58 : vector<2x64xf32>
    %67 = arith.addf %65, %66 : vector<2x64xf32>
    %68 = math.tanh %67 : vector<2x64xf32>
    %69 = arith.mulf %64, %68 : vector<2x64xf32>
    %70 = vector.extract_strided_slice %69 {offsets = [0, 0], sizes = [1, 64], strides = [1, 1]} : vector<2x64xf32> to vector<1x64xf32>
    %c1 = arith.constant 1 : index
    %c0_22 = arith.constant 0 : index
    %71 = vector.load %arg10[%c1, %c0_22] : memref<16x64xf32, #tpu.memory_space<vmem>>, vector<1x64xf32>
    tpu.vector_store %arg10[%c1, %c0_22], %70 {strides = array<i32>} : memref<16x64xf32, #tpu.memory_space<vmem>>, vector<1x64xf32>,
    %72 = vector.extract_strided_slice %69 {offsets = [1, 0], sizes = [1, 64], strides = [1, 1]} : vector<2x64xf32> to vector<1x64xf32>
    %c9 = arith.constant 9 : index
    %c0_23 = arith.constant 0 : index
    %73 = vector.load %arg10[%c9, %c0_23] : memref<16x64xf32, #tpu.memory_space<vmem>>, vector<1x64xf32>
    tpu.vector_store %arg10[%c9, %c0_23], %72 {strides = array<i32>} : memref<16x64xf32, #tpu.memory_space<vmem>>, vector<1x64xf32>,
    %74 = vector.extract_strided_slice %5 {offsets = [4, 0], sizes = [2, 256], strides = [1, 1]} : vector<16x256xf32> to vector<2x256xf32>
    %c0_24 = arith.constant 0 : index
    %c0_25 = arith.constant 0 : index
    %75 = vector.load %arg2[%c0_24, %c0_25] : memref<64x256xf32, #tpu.memory_space<vmem>>, vector<64x256xf32>
    %cst_26 = arith.constant dense<0.000000e+00> : vector<2x256xf32>
    %76 = tpu.matmul %69, %75, %cst_26 {dimension_numbers = #tpu.dot_dimension_numbers<[1], [0], [0], [1], [0, 0, 1, 1], [], []>} : vector<2x64xf32>, vector<64x256xf32>, vector<2x256xf32> -> vector<2x256xf32>
    %77 = arith.addf %74, %76 : vector<2x256xf32>
    %78 = vector.extract_strided_slice %77 {offsets = [0, 0], sizes = [2, 64], strides = [1, 1]} : vector<2x256xf32> to vector<2x64xf32>
    %79 = arith.negf %78 : vector<2x64xf32>
    %80 = math.exp %79 : vector<2x64xf32>
    %cst_27 = arith.constant 1.000000e+00 : f32
    %81 = vector.broadcast %cst_27 : f32 to vector<2x64xf32>
    %82 = arith.addf %81, %80 : vector<2x64xf32>
    %83 = arith.divf %81, %82 : vector<2x64xf32>
    %84 = vector.extract_strided_slice %77 {offsets = [0, 64], sizes = [2, 64], strides = [1, 1]} : vector<2x256xf32> to vector<2x64xf32>
    %85 = arith.negf %84 : vector<2x64xf32>
    %86 = math.exp %85 : vector<2x64xf32>
    %cst_28 = arith.constant 1.000000e+00 : f32
    %87 = vector.broadcast %cst_28 : f32 to vector<2x64xf32>
    %88 = arith.addf %87, %86 : vector<2x64xf32>
    %89 = arith.divf %87, %88 : vector<2x64xf32>
    %90 = vector.extract_strided_slice %77 {offsets = [0, 128], sizes = [2, 64], strides = [1, 1]} : vector<2x256xf32> to vector<2x64xf32>
    %91 = math.tanh %90 : vector<2x64xf32>
    %92 = vector.extract_strided_slice %77 {offsets = [0, 192], sizes = [2, 64], strides = [1, 1]} : vector<2x256xf32> to vector<2x64xf32>
    %93 = arith.negf %92 : vector<2x64xf32>
    %94 = math.exp %93 : vector<2x64xf32>
    %cst_29 = arith.constant 1.000000e+00 : f32
    %95 = vector.broadcast %cst_29 : f32 to vector<2x64xf32>
    %96 = arith.addf %95, %94 : vector<2x64xf32>
    %97 = arith.divf %95, %96 : vector<2x64xf32>
    %98 = arith.mulf %89, %67 : vector<2x64xf32>
    %99 = arith.mulf %83, %91 : vector<2x64xf32>
    %100 = arith.addf %98, %99 : vector<2x64xf32>
    %101 = math.tanh %100 : vector<2x64xf32>
    %102 = arith.mulf %97, %101 : vector<2x64xf32>
    %103 = vector.extract_strided_slice %102 {offsets = [0, 0], sizes = [1, 64], strides = [1, 1]} : vector<2x64xf32> to vector<1x64xf32>
    %c2 = arith.constant 2 : index
    %c0_30 = arith.constant 0 : index
    %104 = vector.load %arg10[%c2, %c0_30] : memref<16x64xf32, #tpu.memory_space<vmem>>, vector<1x64xf32>
    tpu.vector_store %arg10[%c2, %c0_30], %103 {strides = array<i32>} : memref<16x64xf32, #tpu.memory_space<vmem>>, vector<1x64xf32>,
    %105 = vector.extract_strided_slice %102 {offsets = [1, 0], sizes = [1, 64], strides = [1, 1]} : vector<2x64xf32> to vector<1x64xf32>
    %c10 = arith.constant 10 : index
    %c0_31 = arith.constant 0 : index
    %106 = vector.load %arg10[%c10, %c0_31] : memref<16x64xf32, #tpu.memory_space<vmem>>, vector<1x64xf32>
    tpu.vector_store %arg10[%c10, %c0_31], %105 {strides = array<i32>} : memref<16x64xf32, #tpu.memory_space<vmem>>, vector<1x64xf32>,
    %107 = vector.extract_strided_slice %5 {offsets = [6, 0], sizes = [2, 256], strides = [1, 1]} : vector<16x256xf32> to vector<2x256xf32>
    %c0_32 = arith.constant 0 : index
    %c0_33 = arith.constant 0 : index
    %108 = vector.load %arg2[%c0_32, %c0_33] : memref<64x256xf32, #tpu.memory_space<vmem>>, vector<64x256xf32>
    %cst_34 = arith.constant dense<0.000000e+00> : vector<2x256xf32>
    %109 = tpu.matmul %102, %108, %cst_34 {dimension_numbers = #tpu.dot_dimension_numbers<[1], [0], [0], [1], [0, 0, 1, 1], [], []>} : vector<2x64xf32>, vector<64x256xf32>, vector<2x256xf32> -> vector<2x256xf32>
    %110 = arith.addf %107, %109 : vector<2x256xf32>
    %111 = vector.extract_strided_slice %110 {offsets = [0, 0], sizes = [2, 64], strides = [1, 1]} : vector<2x256xf32> to vector<2x64xf32>
    %112 = arith.negf %111 : vector<2x64xf32>
    %113 = math.exp %112 : vector<2x64xf32>
    %cst_35 = arith.constant 1.000000e+00 : f32
    %114 = vector.broadcast %cst_35 : f32 to vector<2x64xf32>
    %115 = arith.addf %114, %113 : vector<2x64xf32>
    %116 = arith.divf %114, %115 : vector<2x64xf32>
    %117 = vector.extract_strided_slice %110 {offsets = [0, 64], sizes = [2, 64], strides = [1, 1]} : vector<2x256xf32> to vector<2x64xf32>
    %118 = arith.negf %117 : vector<2x64xf32>
    %119 = math.exp %118 : vector<2x64xf32>
    %cst_36 = arith.constant 1.000000e+00 : f32
    %120 = vector.broadcast %cst_36 : f32 to vector<2x64xf32>
    %121 = arith.addf %120, %119 : vector<2x64xf32>
    %122 = arith.divf %120, %121 : vector<2x64xf32>
    %123 = vector.extract_strided_slice %110 {offsets = [0, 128], sizes = [2, 64], strides = [1, 1]} : vector<2x256xf32> to vector<2x64xf32>
    %124 = math.tanh %123 : vector<2x64xf32>
    %125 = vector.extract_strided_slice %110 {offsets = [0, 192], sizes = [2, 64], strides = [1, 1]} : vector<2x256xf32> to vector<2x64xf32>
    %126 = arith.negf %125 : vector<2x64xf32>
    %127 = math.exp %126 : vector<2x64xf32>
    %cst_37 = arith.constant 1.000000e+00 : f32
    %128 = vector.broadcast %cst_37 : f32 to vector<2x64xf32>
    %129 = arith.addf %128, %127 : vector<2x64xf32>
    %130 = arith.divf %128, %129 : vector<2x64xf32>
    %131 = arith.mulf %122, %100 : vector<2x64xf32>
    %132 = arith.mulf %116, %124 : vector<2x64xf32>
    %133 = arith.addf %131, %132 : vector<2x64xf32>
    %134 = math.tanh %133 : vector<2x64xf32>
    %135 = arith.mulf %130, %134 : vector<2x64xf32>
    %136 = vector.extract_strided_slice %135 {offsets = [0, 0], sizes = [1, 64], strides = [1, 1]} : vector<2x64xf32> to vector<1x64xf32>
    %c3 = arith.constant 3 : index
    %c0_38 = arith.constant 0 : index
    %137 = vector.load %arg10[%c3, %c0_38] : memref<16x64xf32, #tpu.memory_space<vmem>>, vector<1x64xf32>
    tpu.vector_store %arg10[%c3, %c0_38], %136 {strides = array<i32>} : memref<16x64xf32, #tpu.memory_space<vmem>>, vector<1x64xf32>,
    %138 = vector.extract_strided_slice %135 {offsets = [1, 0], sizes = [1, 64], strides = [1, 1]} : vector<2x64xf32> to vector<1x64xf32>
    %c11 = arith.constant 11 : index
    %c0_39 = arith.constant 0 : index
    %139 = vector.load %arg10[%c11, %c0_39] : memref<16x64xf32, #tpu.memory_space<vmem>>, vector<1x64xf32>
    tpu.vector_store %arg10[%c11, %c0_39], %138 {strides = array<i32>} : memref<16x64xf32, #tpu.memory_space<vmem>>, vector<1x64xf32>,
    %140 = vector.extract_strided_slice %5 {offsets = [8, 0], sizes = [2, 256], strides = [1, 1]} : vector<16x256xf32> to vector<2x256xf32>
    %c0_40 = arith.constant 0 : index
    %c0_41 = arith.constant 0 : index
    %141 = vector.load %arg2[%c0_40, %c0_41] : memref<64x256xf32, #tpu.memory_space<vmem>>, vector<64x256xf32>
    %cst_42 = arith.constant dense<0.000000e+00> : vector<2x256xf32>
    %142 = tpu.matmul %135, %141, %cst_42 {dimension_numbers = #tpu.dot_dimension_numbers<[1], [0], [0], [1], [0, 0, 1, 1], [], []>} : vector<2x64xf32>, vector<64x256xf32>, vector<2x256xf32> -> vector<2x256xf32>
    %143 = arith.addf %140, %142 : vector<2x256xf32>
    %144 = vector.extract_strided_slice %143 {offsets = [0, 0], sizes = [2, 64], strides = [1, 1]} : vector<2x256xf32> to vector<2x64xf32>
    %145 = arith.negf %144 : vector<2x64xf32>
    %146 = math.exp %145 : vector<2x64xf32>
    %cst_43 = arith.constant 1.000000e+00 : f32
    %147 = vector.broadcast %cst_43 : f32 to vector<2x64xf32>
    %148 = arith.addf %147, %146 : vector<2x64xf32>
    %149 = arith.divf %147, %148 : vector<2x64xf32>
    %150 = vector.extract_strided_slice %143 {offsets = [0, 64], sizes = [2, 64], strides = [1, 1]} : vector<2x256xf32> to vector<2x64xf32>
    %151 = arith.negf %150 : vector<2x64xf32>
    %152 = math.exp %151 : vector<2x64xf32>
    %cst_44 = arith.constant 1.000000e+00 : f32
    %153 = vector.broadcast %cst_44 : f32 to vector<2x64xf32>
    %154 = arith.addf %153, %152 : vector<2x64xf32>
    %155 = arith.divf %153, %154 : vector<2x64xf32>
    %156 = vector.extract_strided_slice %143 {offsets = [0, 128], sizes = [2, 64], strides = [1, 1]} : vector<2x256xf32> to vector<2x64xf32>
    %157 = math.tanh %156 : vector<2x64xf32>
    %158 = vector.extract_strided_slice %143 {offsets = [0, 192], sizes = [2, 64], strides = [1, 1]} : vector<2x256xf32> to vector<2x64xf32>
    %159 = arith.negf %158 : vector<2x64xf32>
    %160 = math.exp %159 : vector<2x64xf32>
    %cst_45 = arith.constant 1.000000e+00 : f32
    %161 = vector.broadcast %cst_45 : f32 to vector<2x64xf32>
    %162 = arith.addf %161, %160 : vector<2x64xf32>
    %163 = arith.divf %161, %162 : vector<2x64xf32>
    %164 = arith.mulf %155, %133 : vector<2x64xf32>
    %165 = arith.mulf %149, %157 : vector<2x64xf32>
    %166 = arith.addf %164, %165 : vector<2x64xf32>
    %167 = math.tanh %166 : vector<2x64xf32>
    %168 = arith.mulf %163, %167 : vector<2x64xf32>
    %169 = vector.extract_strided_slice %168 {offsets = [0, 0], sizes = [1, 64], strides = [1, 1]} : vector<2x64xf32> to vector<1x64xf32>
    %c4 = arith.constant 4 : index
    %c0_46 = arith.constant 0 : index
    %170 = vector.load %arg10[%c4, %c0_46] : memref<16x64xf32, #tpu.memory_space<vmem>>, vector<1x64xf32>
    tpu.vector_store %arg10[%c4, %c0_46], %169 {strides = array<i32>} : memref<16x64xf32, #tpu.memory_space<vmem>>, vector<1x64xf32>,
    %171 = vector.extract_strided_slice %168 {offsets = [1, 0], sizes = [1, 64], strides = [1, 1]} : vector<2x64xf32> to vector<1x64xf32>
    %c12 = arith.constant 12 : index
    %c0_47 = arith.constant 0 : index
    %172 = vector.load %arg10[%c12, %c0_47] : memref<16x64xf32, #tpu.memory_space<vmem>>, vector<1x64xf32>
    tpu.vector_store %arg10[%c12, %c0_47], %171 {strides = array<i32>} : memref<16x64xf32, #tpu.memory_space<vmem>>, vector<1x64xf32>,
    %173 = vector.extract_strided_slice %5 {offsets = [10, 0], sizes = [2, 256], strides = [1, 1]} : vector<16x256xf32> to vector<2x256xf32>
    %c0_48 = arith.constant 0 : index
    %c0_49 = arith.constant 0 : index
    %174 = vector.load %arg2[%c0_48, %c0_49] : memref<64x256xf32, #tpu.memory_space<vmem>>, vector<64x256xf32>
    %cst_50 = arith.constant dense<0.000000e+00> : vector<2x256xf32>
    %175 = tpu.matmul %168, %174, %cst_50 {dimension_numbers = #tpu.dot_dimension_numbers<[1], [0], [0], [1], [0, 0, 1, 1], [], []>} : vector<2x64xf32>, vector<64x256xf32>, vector<2x256xf32> -> vector<2x256xf32>
    %176 = arith.addf %173, %175 : vector<2x256xf32>
    %177 = vector.extract_strided_slice %176 {offsets = [0, 0], sizes = [2, 64], strides = [1, 1]} : vector<2x256xf32> to vector<2x64xf32>
    %178 = arith.negf %177 : vector<2x64xf32>
    %179 = math.exp %178 : vector<2x64xf32>
    %cst_51 = arith.constant 1.000000e+00 : f32
    %180 = vector.broadcast %cst_51 : f32 to vector<2x64xf32>
    %181 = arith.addf %180, %179 : vector<2x64xf32>
    %182 = arith.divf %180, %181 : vector<2x64xf32>
    %183 = vector.extract_strided_slice %176 {offsets = [0, 64], sizes = [2, 64], strides = [1, 1]} : vector<2x256xf32> to vector<2x64xf32>
    %184 = arith.negf %183 : vector<2x64xf32>
    %185 = math.exp %184 : vector<2x64xf32>
    %cst_52 = arith.constant 1.000000e+00 : f32
    %186 = vector.broadcast %cst_52 : f32 to vector<2x64xf32>
    %187 = arith.addf %186, %185 : vector<2x64xf32>
    %188 = arith.divf %186, %187 : vector<2x64xf32>
    %189 = vector.extract_strided_slice %176 {offsets = [0, 128], sizes = [2, 64], strides = [1, 1]} : vector<2x256xf32> to vector<2x64xf32>
    %190 = math.tanh %189 : vector<2x64xf32>
    %191 = vector.extract_strided_slice %176 {offsets = [0, 192], sizes = [2, 64], strides = [1, 1]} : vector<2x256xf32> to vector<2x64xf32>
    %192 = arith.negf %191 : vector<2x64xf32>
    %193 = math.exp %192 : vector<2x64xf32>
    %cst_53 = arith.constant 1.000000e+00 : f32
    %194 = vector.broadcast %cst_53 : f32 to vector<2x64xf32>
    %195 = arith.addf %194, %193 : vector<2x64xf32>
    %196 = arith.divf %194, %195 : vector<2x64xf32>
    %197 = arith.mulf %188, %166 : vector<2x64xf32>
    %198 = arith.mulf %182, %190 : vector<2x64xf32>
    %199 = arith.addf %197, %198 : vector<2x64xf32>
    %200 = math.tanh %199 : vector<2x64xf32>
    %201 = arith.mulf %196, %200 : vector<2x64xf32>
    %202 = vector.extract_strided_slice %201 {offsets = [0, 0], sizes = [1, 64], strides = [1, 1]} : vector<2x64xf32> to vector<1x64xf32>
    %c5 = arith.constant 5 : index
    %c0_54 = arith.constant 0 : index
    %203 = vector.load %arg10[%c5, %c0_54] : memref<16x64xf32, #tpu.memory_space<vmem>>, vector<1x64xf32>
    tpu.vector_store %arg10[%c5, %c0_54], %202 {strides = array<i32>} : memref<16x64xf32, #tpu.memory_space<vmem>>, vector<1x64xf32>,
    %204 = vector.extract_strided_slice %201 {offsets = [1, 0], sizes = [1, 64], strides = [1, 1]} : vector<2x64xf32> to vector<1x64xf32>
    %c13 = arith.constant 13 : index
    %c0_55 = arith.constant 0 : index
    %205 = vector.load %arg10[%c13, %c0_55] : memref<16x64xf32, #tpu.memory_space<vmem>>, vector<1x64xf32>
    tpu.vector_store %arg10[%c13, %c0_55], %204 {strides = array<i32>} : memref<16x64xf32, #tpu.memory_space<vmem>>, vector<1x64xf32>,
    %206 = vector.extract_strided_slice %5 {offsets = [12, 0], sizes = [2, 256], strides = [1, 1]} : vector<16x256xf32> to vector<2x256xf32>
    %c0_56 = arith.constant 0 : index
    %c0_57 = arith.constant 0 : index
    %207 = vector.load %arg2[%c0_56, %c0_57] : memref<64x256xf32, #tpu.memory_space<vmem>>, vector<64x256xf32>
    %cst_58 = arith.constant dense<0.000000e+00> : vector<2x256xf32>
    %208 = tpu.matmul %201, %207, %cst_58 {dimension_numbers = #tpu.dot_dimension_numbers<[1], [0], [0], [1], [0, 0, 1, 1], [], []>} : vector<2x64xf32>, vector<64x256xf32>, vector<2x256xf32> -> vector<2x256xf32>
    %209 = arith.addf %206, %208 : vector<2x256xf32>
    %210 = vector.extract_strided_slice %209 {offsets = [0, 0], sizes = [2, 64], strides = [1, 1]} : vector<2x256xf32> to vector<2x64xf32>
    %211 = arith.negf %210 : vector<2x64xf32>
    %212 = math.exp %211 : vector<2x64xf32>
    %cst_59 = arith.constant 1.000000e+00 : f32
    %213 = vector.broadcast %cst_59 : f32 to vector<2x64xf32>
    %214 = arith.addf %213, %212 : vector<2x64xf32>
    %215 = arith.divf %213, %214 : vector<2x64xf32>
    %216 = vector.extract_strided_slice %209 {offsets = [0, 64], sizes = [2, 64], strides = [1, 1]} : vector<2x256xf32> to vector<2x64xf32>
    %217 = arith.negf %216 : vector<2x64xf32>
    %218 = math.exp %217 : vector<2x64xf32>
    %cst_60 = arith.constant 1.000000e+00 : f32
    %219 = vector.broadcast %cst_60 : f32 to vector<2x64xf32>
    %220 = arith.addf %219, %218 : vector<2x64xf32>
    %221 = arith.divf %219, %220 : vector<2x64xf32>
    %222 = vector.extract_strided_slice %209 {offsets = [0, 128], sizes = [2, 64], strides = [1, 1]} : vector<2x256xf32> to vector<2x64xf32>
    %223 = math.tanh %222 : vector<2x64xf32>
    %224 = vector.extract_strided_slice %209 {offsets = [0, 192], sizes = [2, 64], strides = [1, 1]} : vector<2x256xf32> to vector<2x64xf32>
    %225 = arith.negf %224 : vector<2x64xf32>
    %226 = math.exp %225 : vector<2x64xf32>
    %cst_61 = arith.constant 1.000000e+00 : f32
    %227 = vector.broadcast %cst_61 : f32 to vector<2x64xf32>
    %228 = arith.addf %227, %226 : vector<2x64xf32>
    %229 = arith.divf %227, %228 : vector<2x64xf32>
    %230 = arith.mulf %221, %199 : vector<2x64xf32>
    %231 = arith.mulf %215, %223 : vector<2x64xf32>
    %232 = arith.addf %230, %231 : vector<2x64xf32>
    %233 = math.tanh %232 : vector<2x64xf32>
    %234 = arith.mulf %229, %233 : vector<2x64xf32>
    %235 = vector.extract_strided_slice %234 {offsets = [0, 0], sizes = [1, 64], strides = [1, 1]} : vector<2x64xf32> to vector<1x64xf32>
    %c6 = arith.constant 6 : index
    %c0_62 = arith.constant 0 : index
    %236 = vector.load %arg10[%c6, %c0_62] : memref<16x64xf32, #tpu.memory_space<vmem>>, vector<1x64xf32>
    tpu.vector_store %arg10[%c6, %c0_62], %235 {strides = array<i32>} : memref<16x64xf32, #tpu.memory_space<vmem>>, vector<1x64xf32>,
    %237 = vector.extract_strided_slice %234 {offsets = [1, 0], sizes = [1, 64], strides = [1, 1]} : vector<2x64xf32> to vector<1x64xf32>
    %c14 = arith.constant 14 : index
    %c0_63 = arith.constant 0 : index
    %238 = vector.load %arg10[%c14, %c0_63] : memref<16x64xf32, #tpu.memory_space<vmem>>, vector<1x64xf32>
    tpu.vector_store %arg10[%c14, %c0_63], %237 {strides = array<i32>} : memref<16x64xf32, #tpu.memory_space<vmem>>, vector<1x64xf32>,
    %239 = vector.extract_strided_slice %5 {offsets = [14, 0], sizes = [2, 256], strides = [1, 1]} : vector<16x256xf32> to vector<2x256xf32>
    %c0_64 = arith.constant 0 : index
    %c0_65 = arith.constant 0 : index
    %240 = vector.load %arg2[%c0_64, %c0_65] : memref<64x256xf32, #tpu.memory_space<vmem>>, vector<64x256xf32>
    %cst_66 = arith.constant dense<0.000000e+00> : vector<2x256xf32>
    %241 = tpu.matmul %234, %240, %cst_66 {dimension_numbers = #tpu.dot_dimension_numbers<[1], [0], [0], [1], [0, 0, 1, 1], [], []>} : vector<2x64xf32>, vector<64x256xf32>, vector<2x256xf32> -> vector<2x256xf32>
    %242 = arith.addf %239, %241 : vector<2x256xf32>
    %243 = vector.extract_strided_slice %242 {offsets = [0, 0], sizes = [2, 64], strides = [1, 1]} : vector<2x256xf32> to vector<2x64xf32>
    %244 = arith.negf %243 : vector<2x64xf32>
    %245 = math.exp %244 : vector<2x64xf32>
    %cst_67 = arith.constant 1.000000e+00 : f32
    %246 = vector.broadcast %cst_67 : f32 to vector<2x64xf32>
    %247 = arith.addf %246, %245 : vector<2x64xf32>
    %248 = arith.divf %246, %247 : vector<2x64xf32>
    %249 = vector.extract_strided_slice %242 {offsets = [0, 64], sizes = [2, 64], strides = [1, 1]} : vector<2x256xf32> to vector<2x64xf32>
    %250 = arith.negf %249 : vector<2x64xf32>
    %251 = math.exp %250 : vector<2x64xf32>
    %cst_68 = arith.constant 1.000000e+00 : f32
    %252 = vector.broadcast %cst_68 : f32 to vector<2x64xf32>
    %253 = arith.addf %252, %251 : vector<2x64xf32>
    %254 = arith.divf %252, %253 : vector<2x64xf32>
    %255 = vector.extract_strided_slice %242 {offsets = [0, 128], sizes = [2, 64], strides = [1, 1]} : vector<2x256xf32> to vector<2x64xf32>
    %256 = math.tanh %255 : vector<2x64xf32>
    %257 = vector.extract_strided_slice %242 {offsets = [0, 192], sizes = [2, 64], strides = [1, 1]} : vector<2x256xf32> to vector<2x64xf32>
    %258 = arith.negf %257 : vector<2x64xf32>
    %259 = math.exp %258 : vector<2x64xf32>
    %cst_69 = arith.constant 1.000000e+00 : f32
    %260 = vector.broadcast %cst_69 : f32 to vector<2x64xf32>
    %261 = arith.addf %260, %259 : vector<2x64xf32>
    %262 = arith.divf %260, %261 : vector<2x64xf32>
    %263 = arith.mulf %254, %232 : vector<2x64xf32>
    %264 = arith.mulf %248, %256 : vector<2x64xf32>
    %265 = arith.addf %263, %264 : vector<2x64xf32>
    %266 = math.tanh %265 : vector<2x64xf32>
    %267 = arith.mulf %262, %266 : vector<2x64xf32>
    %268 = vector.extract_strided_slice %267 {offsets = [0, 0], sizes = [1, 64], strides = [1, 1]} : vector<2x64xf32> to vector<1x64xf32>
    %c7 = arith.constant 7 : index
    %c0_70 = arith.constant 0 : index
    %269 = vector.load %arg10[%c7, %c0_70] : memref<16x64xf32, #tpu.memory_space<vmem>>, vector<1x64xf32>
    tpu.vector_store %arg10[%c7, %c0_70], %268 {strides = array<i32>} : memref<16x64xf32, #tpu.memory_space<vmem>>, vector<1x64xf32>,
    %270 = vector.extract_strided_slice %267 {offsets = [1, 0], sizes = [1, 64], strides = [1, 1]} : vector<2x64xf32> to vector<1x64xf32>
    %c15 = arith.constant 15 : index
    %c0_71 = arith.constant 0 : index
    %271 = vector.load %arg10[%c15, %c0_71] : memref<16x64xf32, #tpu.memory_space<vmem>>, vector<1x64xf32>
    tpu.vector_store %arg10[%c15, %c0_71], %270 {strides = array<i32>} : memref<16x64xf32, #tpu.memory_space<vmem>>, vector<1x64xf32>,
    %272 = tpu.iota {dimensions = array<i32: 0>} : vector<64x64xi32>
    %273 = tpu.iota {dimensions = array<i32: 1>} : vector<64x64xi32>
    %c1_i32 = arith.constant 1 : i32
    %274 = vector.broadcast %c1_i32 : i32 to vector<64x64xi32>
    %275 = arith.addi %272, %274 : vector<64x64xi32>
    %276 = arith.cmpi eq, %275, %273 : vector<64x64xi32>
    %cst_72 = arith.constant 1.000000e+00 : f32
    %cst_73 = arith.constant 0.000000e+00 : f32
    %277 = vector.broadcast %cst_72 : f32 to vector<64x64xf32>
    %278 = vector.broadcast %cst_73 : f32 to vector<64x64xf32>
    %279 = arith.select %276, %277, %278 : vector<64x64xi1>, vector<64x64xf32>
    %c1_i32_74 = arith.constant 1 : i32
    %280 = vector.broadcast %c1_i32_74 : i32 to vector<64x64xi32>
    %281 = arith.addi %273, %280 : vector<64x64xi32>
    %282 = arith.cmpi eq, %272, %281 : vector<64x64xi32>
    %cst_75 = arith.constant 1.000000e+00 : f32
    %cst_76 = arith.constant 0.000000e+00 : f32
    %283 = vector.broadcast %cst_75 : f32 to vector<64x64xf32>
    %284 = vector.broadcast %cst_76 : f32 to vector<64x64xf32>
    %285 = arith.select %282, %283, %284 : vector<64x64xi1>, vector<64x64xf32>
    %c0_77 = arith.constant 0 : index
    %c0_78 = arith.constant 0 : index
    %286 = vector.load %arg4[%c0_77, %c0_78] : memref<8x24xf32, #tpu.memory_space<vmem>>, vector<8x24xf32>
    %c0_79 = arith.constant 0 : index
    %c0_80 = arith.constant 0 : index
    %287 = vector.load %arg5[%c0_79, %c0_80] : memref<8x1xf32, #tpu.memory_space<vmem>>, vector<8x1xf32>
    %c0_81 = arith.constant 0 : index
    %c0_82 = arith.constant 0 : index
    %288 = vector.load %arg10[%c0_81, %c0_82] : memref<16x64xf32, #tpu.memory_space<vmem>>, vector<8x64xf32>
    %cst_83 = arith.constant dense<0.000000e+00> : vector<8x64xf32>
    %289 = tpu.matmul %288, %279, %cst_83 {dimension_numbers = #tpu.dot_dimension_numbers<[1], [0], [0], [1], [0, 0, 1, 1], [], []>} : vector<8x64xf32>, vector<64x64xf32>, vector<8x64xf32> -> vector<8x64xf32>
    %cst_84 = arith.constant dense<0.000000e+00> : vector<8x64xf32>
    %290 = tpu.matmul %288, %285, %cst_84 {dimension_numbers = #tpu.dot_dimension_numbers<[1], [0], [0], [1], [0, 0, 1, 1], [], []>} : vector<8x64xf32>, vector<64x64xf32>, vector<8x64xf32> -> vector<8x64xf32>
    %291 = tpu.concatenate %289, %288, %290 in 0 : vector<8x64xf32>, vector<8x64xf32>, vector<8x64xf32> -> vector<24x64xf32>
    %cst_85 = arith.constant dense<0.000000e+00> : vector<8x64xf32>
    %292 = tpu.matmul %286, %291, %cst_85 {dimension_numbers = #tpu.dot_dimension_numbers<[1], [0], [0], [1], [0, 0, 1, 1], [], []>} : vector<8x24xf32>, vector<24x64xf32>, vector<8x64xf32> -> vector<8x64xf32>
    %293 = vector.broadcast %287 : vector<8x1xf32> to vector<8x64xf32>
    %294 = arith.addf %292, %293 : vector<8x64xf32>
    %cst_86 = arith.constant 0.000000e+00 : f32
    %295 = vector.broadcast %cst_86 : f32 to vector<8x64xf32>
    %296 = arith.maximumf %294, %295 : vector<8x64xf32>
    %c8_87 = arith.constant 8 : index
    %c0_88 = arith.constant 0 : index
    %297 = vector.load %arg10[%c8_87, %c0_88] : memref<16x64xf32, #tpu.memory_space<vmem>>, vector<8x64xf32>
    %cst_89 = arith.constant dense<0.000000e+00> : vector<8x64xf32>
    %298 = tpu.matmul %297, %279, %cst_89 {dimension_numbers = #tpu.dot_dimension_numbers<[1], [0], [0], [1], [0, 0, 1, 1], [], []>} : vector<8x64xf32>, vector<64x64xf32>, vector<8x64xf32> -> vector<8x64xf32>
    %cst_90 = arith.constant dense<0.000000e+00> : vector<8x64xf32>
    %299 = tpu.matmul %297, %285, %cst_90 {dimension_numbers = #tpu.dot_dimension_numbers<[1], [0], [0], [1], [0, 0, 1, 1], [], []>} : vector<8x64xf32>, vector<64x64xf32>, vector<8x64xf32> -> vector<8x64xf32>
    %300 = tpu.concatenate %298, %297, %299 in 0 : vector<8x64xf32>, vector<8x64xf32>, vector<8x64xf32> -> vector<24x64xf32>
    %cst_91 = arith.constant dense<0.000000e+00> : vector<8x64xf32>
    %301 = tpu.matmul %286, %300, %cst_91 {dimension_numbers = #tpu.dot_dimension_numbers<[1], [0], [0], [1], [0, 0, 1, 1], [], []>} : vector<8x24xf32>, vector<24x64xf32>, vector<8x64xf32> -> vector<8x64xf32>
    %302 = vector.broadcast %287 : vector<8x1xf32> to vector<8x64xf32>
    %303 = arith.addf %301, %302 : vector<8x64xf32>
    %cst_92 = arith.constant 0.000000e+00 : f32
    %304 = vector.broadcast %cst_92 : f32 to vector<8x64xf32>
    %305 = arith.maximumf %303, %304 : vector<8x64xf32>
    %306 = tpu.concatenate %296, %305 in 0 : vector<8x64xf32>, vector<8x64xf32> -> vector<16x64xf32>
    %c0_93 = arith.constant 0 : index
    %c0_94 = arith.constant 0 : index
    %307 = vector.load %arg6[%c0_93, %c0_94] : memref<64x128xf32, #tpu.memory_space<vmem>>, vector<64x128xf32>
    %cst_95 = arith.constant dense<0.000000e+00> : vector<16x128xf32>
    %308 = tpu.matmul %306, %307, %cst_95 {dimension_numbers = #tpu.dot_dimension_numbers<[1], [0], [0], [1], [0, 0, 1, 1], [], []>} : vector<16x64xf32>, vector<64x128xf32>, vector<16x128xf32> -> vector<16x128xf32>
    %c0_96 = arith.constant 0 : index
    %c0_97 = arith.constant 0 : index
    %309 = vector.load %arg8[%c0_96, %c0_97] : memref<1x128xf32, #tpu.memory_space<vmem>>, vector<1x128xf32>
    %310 = vector.broadcast %309 : vector<1x128xf32> to vector<16x128xf32>
    %311 = arith.addf %308, %310 : vector<16x128xf32>
    %312 = tpu.iota {dimensions = array<i32: 1>} : vector<2x32xi32>
    %cst_98 = arith.constant 0.000000e+00 : f32
    %313 = vector.broadcast %cst_98 : f32 to vector<2x32xf32>
    %cst_99 = arith.constant 0.000000e+00 : f32
    %314 = vector.broadcast %cst_99 : f32 to vector<2x32xf32>
    %315 = vector.extract_strided_slice %311 {offsets = [0, 0], sizes = [1, 128], strides = [1, 1]} : vector<16x128xf32> to vector<1x128xf32>
    %316 = vector.extract_strided_slice %311 {offsets = [8, 0], sizes = [1, 128], strides = [1, 1]} : vector<16x128xf32> to vector<1x128xf32>
    %317 = tpu.concatenate %315, %316 in 0 : vector<1x128xf32>, vector<1x128xf32> -> vector<2x128xf32>
    %c0_100 = arith.constant 0 : index
    %c0_101 = arith.constant 0 : index
    %318 = vector.load %arg7[%c0_100, %c0_101] : memref<32x128xf32, #tpu.memory_space<vmem>>, vector<32x128xf32>
    %cst_102 = arith.constant dense<0.000000e+00> : vector<2x128xf32>
    %319 = tpu.matmul %313, %318, %cst_102 {dimension_numbers = #tpu.dot_dimension_numbers<[1], [0], [0], [1], [0, 0, 1, 1], [], []>} : vector<2x32xf32>, vector<32x128xf32>, vector<2x128xf32> -> vector<2x128xf32>
    %320 = arith.addf %317, %319 : vector<2x128xf32>
    %321 = vector.extract_strided_slice %320 {offsets = [0, 0], sizes = [2, 32], strides = [1, 1]} : vector<2x128xf32> to vector<2x32xf32>
    %322 = arith.negf %321 : vector<2x32xf32>
    %323 = math.exp %322 : vector<2x32xf32>
    %cst_103 = arith.constant 1.000000e+00 : f32
    %324 = vector.broadcast %cst_103 : f32 to vector<2x32xf32>
    %325 = arith.addf %324, %323 : vector<2x32xf32>
    %326 = arith.divf %324, %325 : vector<2x32xf32>
    %327 = vector.extract_strided_slice %320 {offsets = [0, 32], sizes = [2, 32], strides = [1, 1]} : vector<2x128xf32> to vector<2x32xf32>
    %328 = arith.negf %327 : vector<2x32xf32>
    %329 = math.exp %328 : vector<2x32xf32>
    %cst_104 = arith.constant 1.000000e+00 : f32
    %330 = vector.broadcast %cst_104 : f32 to vector<2x32xf32>
    %331 = arith.addf %330, %329 : vector<2x32xf32>
    %332 = arith.divf %330, %331 : vector<2x32xf32>
    %333 = vector.extract_strided_slice %320 {offsets = [0, 64], sizes = [2, 32], strides = [1, 1]} : vector<2x128xf32> to vector<2x32xf32>
    %334 = math.tanh %333 : vector<2x32xf32>
    %335 = vector.extract_strided_slice %320 {offsets = [0, 96], sizes = [2, 32], strides = [1, 1]} : vector<2x128xf32> to vector<2x32xf32>
    %336 = arith.negf %335 : vector<2x32xf32>
    %337 = math.exp %336 : vector<2x32xf32>
    %cst_105 = arith.constant 1.000000e+00 : f32
    %338 = vector.broadcast %cst_105 : f32 to vector<2x32xf32>
    %339 = arith.addf %338, %337 : vector<2x32xf32>
    %340 = arith.divf %338, %339 : vector<2x32xf32>
    %341 = arith.mulf %332, %314 : vector<2x32xf32>
    %342 = arith.mulf %326, %334 : vector<2x32xf32>
    %343 = arith.addf %341, %342 : vector<2x32xf32>
    %344 = math.tanh %343 : vector<2x32xf32>
    %345 = arith.mulf %340, %344 : vector<2x32xf32>
    %c3_i32 = arith.constant 3 : i32
    %346 = vector.broadcast %c3_i32 : i32 to vector<2x32xi32>
    %347 = arith.cmpi slt, %312, %346 : vector<2x32xi32>
    %cst_106 = arith.constant 0xFF800000 : f32
    %348 = vector.broadcast %cst_106 : f32 to vector<2x32xf32>
    %349 = arith.select %347, %345, %348 : vector<2x32xi1>, vector<2x32xf32>
    %cst_107 = arith.constant dense<0xFF800000> : vector<2xf32>
    %350 = vector.multi_reduction <maximumf>, %349, %cst_107 [1] : vector<2x32xf32> to vector<2xf32>
    %351 = vector.shape_cast %350 : vector<2xf32> to vector<2x1xf32>
    %c3_i32_108 = arith.constant 3 : i32
    %352 = vector.broadcast %c3_i32_108 : i32 to vector<2x32xi32>
    %353 = arith.cmpi slt, %312, %352 : vector<2x32xi32>
    %354 = vector.broadcast %351 : vector<2x1xf32> to vector<2x32xf32>
    %355 = arith.subf %349, %354 : vector<2x32xf32>
    %356 = math.exp %355 : vector<2x32xf32>
    %cst_109 = arith.constant 0.000000e+00 : f32
    %357 = vector.broadcast %cst_109 : f32 to vector<2x32xf32>
    %358 = arith.select %353, %356, %357 : vector<2x32xi1>, vector<2x32xf32>
    %cst_110 = arith.constant dense<0.000000e+00> : vector<2xf32>
    %359 = vector.multi_reduction <add>, %358, %cst_110 [1] : vector<2x32xf32> to vector<2xf32>
    %360 = vector.shape_cast %359 : vector<2xf32> to vector<2x1xf32>
    %361 = tpu.reciprocal %360 {approx = true} : vector<2x1xf32> -> vector<2x1xf32>
    %362 = vector.broadcast %361 : vector<2x1xf32> to vector<2x32xf32>
    %363 = arith.mulf %358, %362 : vector<2x32xf32>
    %c0_111 = arith.constant 0 : index
    %c0_112 = arith.constant 0 : index
    %364 = vector.load %arg9[%c0_111, %c0_112] : memref<16x32xf32, #tpu.memory_space<vmem>>, vector<2x32xf32>
    tpu.vector_store %arg9[%c0_111, %c0_112], %363 {strides = array<i32>} : memref<16x32xf32, #tpu.memory_space<vmem>>, vector<2x32xf32>,
    %365 = vector.extract_strided_slice %311 {offsets = [1, 0], sizes = [1, 128], strides = [1, 1]} : vector<16x128xf32> to vector<1x128xf32>
    %366 = vector.extract_strided_slice %311 {offsets = [9, 0], sizes = [1, 128], strides = [1, 1]} : vector<16x128xf32> to vector<1x128xf32>
    %367 = tpu.concatenate %365, %366 in 0 : vector<1x128xf32>, vector<1x128xf32> -> vector<2x128xf32>
    %c0_113 = arith.constant 0 : index
    %c0_114 = arith.constant 0 : index
    %368 = vector.load %arg7[%c0_113, %c0_114] : memref<32x128xf32, #tpu.memory_space<vmem>>, vector<32x128xf32>
    %cst_115 = arith.constant dense<0.000000e+00> : vector<2x128xf32>
    %369 = tpu.matmul %345, %368, %cst_115 {dimension_numbers = #tpu.dot_dimension_numbers<[1], [0], [0], [1], [0, 0, 1, 1], [], []>} : vector<2x32xf32>, vector<32x128xf32>, vector<2x128xf32> -> vector<2x128xf32>
    %370 = arith.addf %367, %369 : vector<2x128xf32>
    %371 = vector.extract_strided_slice %370 {offsets = [0, 0], sizes = [2, 32], strides = [1, 1]} : vector<2x128xf32> to vector<2x32xf32>
    %372 = arith.negf %371 : vector<2x32xf32>
    %373 = math.exp %372 : vector<2x32xf32>
    %cst_116 = arith.constant 1.000000e+00 : f32
    %374 = vector.broadcast %cst_116 : f32 to vector<2x32xf32>
    %375 = arith.addf %374, %373 : vector<2x32xf32>
    %376 = arith.divf %374, %375 : vector<2x32xf32>
    %377 = vector.extract_strided_slice %370 {offsets = [0, 32], sizes = [2, 32], strides = [1, 1]} : vector<2x128xf32> to vector<2x32xf32>
    %378 = arith.negf %377 : vector<2x32xf32>
    %379 = math.exp %378 : vector<2x32xf32>
    %cst_117 = arith.constant 1.000000e+00 : f32
    %380 = vector.broadcast %cst_117 : f32 to vector<2x32xf32>
    %381 = arith.addf %380, %379 : vector<2x32xf32>
    %382 = arith.divf %380, %381 : vector<2x32xf32>
    %383 = vector.extract_strided_slice %370 {offsets = [0, 64], sizes = [2, 32], strides = [1, 1]} : vector<2x128xf32> to vector<2x32xf32>
    %384 = math.tanh %383 : vector<2x32xf32>
    %385 = vector.extract_strided_slice %370 {offsets = [0, 96], sizes = [2, 32], strides = [1, 1]} : vector<2x128xf32> to vector<2x32xf32>
    %386 = arith.negf %385 : vector<2x32xf32>
    %387 = math.exp %386 : vector<2x32xf32>
    %cst_118 = arith.constant 1.000000e+00 : f32
    %388 = vector.broadcast %cst_118 : f32 to vector<2x32xf32>
    %389 = arith.addf %388, %387 : vector<2x32xf32>
    %390 = arith.divf %388, %389 : vector<2x32xf32>
    %391 = arith.mulf %382, %343 : vector<2x32xf32>
    %392 = arith.mulf %376, %384 : vector<2x32xf32>
    %393 = arith.addf %391, %392 : vector<2x32xf32>
    %394 = math.tanh %393 : vector<2x32xf32>
    %395 = arith.mulf %390, %394 : vector<2x32xf32>
    %c3_i32_119 = arith.constant 3 : i32
    %396 = vector.broadcast %c3_i32_119 : i32 to vector<2x32xi32>
    %397 = arith.cmpi slt, %312, %396 : vector<2x32xi32>
    %cst_120 = arith.constant 0xFF800000 : f32
    %398 = vector.broadcast %cst_120 : f32 to vector<2x32xf32>
    %399 = arith.select %397, %395, %398 : vector<2x32xi1>, vector<2x32xf32>
    %cst_121 = arith.constant dense<0xFF800000> : vector<2xf32>
    %400 = vector.multi_reduction <maximumf>, %399, %cst_121 [1] : vector<2x32xf32> to vector<2xf32>
    %401 = vector.shape_cast %400 : vector<2xf32> to vector<2x1xf32>
    %c3_i32_122 = arith.constant 3 : i32
    %402 = vector.broadcast %c3_i32_122 : i32 to vector<2x32xi32>
    %403 = arith.cmpi slt, %312, %402 : vector<2x32xi32>
    %404 = vector.broadcast %401 : vector<2x1xf32> to vector<2x32xf32>
    %405 = arith.subf %399, %404 : vector<2x32xf32>
    %406 = math.exp %405 : vector<2x32xf32>
    %cst_123 = arith.constant 0.000000e+00 : f32
    %407 = vector.broadcast %cst_123 : f32 to vector<2x32xf32>
    %408 = arith.select %403, %406, %407 : vector<2x32xi1>, vector<2x32xf32>
    %cst_124 = arith.constant dense<0.000000e+00> : vector<2xf32>
    %409 = vector.multi_reduction <add>, %408, %cst_124 [1] : vector<2x32xf32> to vector<2xf32>
    %410 = vector.shape_cast %409 : vector<2xf32> to vector<2x1xf32>
    %411 = tpu.reciprocal %410 {approx = true} : vector<2x1xf32> -> vector<2x1xf32>
    %412 = vector.broadcast %411 : vector<2x1xf32> to vector<2x32xf32>
    %413 = arith.mulf %408, %412 : vector<2x32xf32>
    %c2_125 = arith.constant 2 : index
    %c0_126 = arith.constant 0 : index
    %414 = vector.load %arg9[%c2_125, %c0_126] : memref<16x32xf32, #tpu.memory_space<vmem>>, vector<2x32xf32>
    tpu.vector_store %arg9[%c2_125, %c0_126], %413 {strides = array<i32>} : memref<16x32xf32, #tpu.memory_space<vmem>>, vector<2x32xf32>,
    %415 = vector.extract_strided_slice %311 {offsets = [2, 0], sizes = [1, 128], strides = [1, 1]} : vector<16x128xf32> to vector<1x128xf32>
    %416 = vector.extract_strided_slice %311 {offsets = [10, 0], sizes = [1, 128], strides = [1, 1]} : vector<16x128xf32> to vector<1x128xf32>
    %417 = tpu.concatenate %415, %416 in 0 : vector<1x128xf32>, vector<1x128xf32> -> vector<2x128xf32>
    %c0_127 = arith.constant 0 : index
    %c0_128 = arith.constant 0 : index
    %418 = vector.load %arg7[%c0_127, %c0_128] : memref<32x128xf32, #tpu.memory_space<vmem>>, vector<32x128xf32>
    %cst_129 = arith.constant dense<0.000000e+00> : vector<2x128xf32>
    %419 = tpu.matmul %395, %418, %cst_129 {dimension_numbers = #tpu.dot_dimension_numbers<[1], [0], [0], [1], [0, 0, 1, 1], [], []>} : vector<2x32xf32>, vector<32x128xf32>, vector<2x128xf32> -> vector<2x128xf32>
    %420 = arith.addf %417, %419 : vector<2x128xf32>
    %421 = vector.extract_strided_slice %420 {offsets = [0, 0], sizes = [2, 32], strides = [1, 1]} : vector<2x128xf32> to vector<2x32xf32>
    %422 = arith.negf %421 : vector<2x32xf32>
    %423 = math.exp %422 : vector<2x32xf32>
    %cst_130 = arith.constant 1.000000e+00 : f32
    %424 = vector.broadcast %cst_130 : f32 to vector<2x32xf32>
    %425 = arith.addf %424, %423 : vector<2x32xf32>
    %426 = arith.divf %424, %425 : vector<2x32xf32>
    %427 = vector.extract_strided_slice %420 {offsets = [0, 32], sizes = [2, 32], strides = [1, 1]} : vector<2x128xf32> to vector<2x32xf32>
    %428 = arith.negf %427 : vector<2x32xf32>
    %429 = math.exp %428 : vector<2x32xf32>
    %cst_131 = arith.constant 1.000000e+00 : f32
    %430 = vector.broadcast %cst_131 : f32 to vector<2x32xf32>
    %431 = arith.addf %430, %429 : vector<2x32xf32>
    %432 = arith.divf %430, %431 : vector<2x32xf32>
    %433 = vector.extract_strided_slice %420 {offsets = [0, 64], sizes = [2, 32], strides = [1, 1]} : vector<2x128xf32> to vector<2x32xf32>
    %434 = math.tanh %433 : vector<2x32xf32>
    %435 = vector.extract_strided_slice %420 {offsets = [0, 96], sizes = [2, 32], strides = [1, 1]} : vector<2x128xf32> to vector<2x32xf32>
    %436 = arith.negf %435 : vector<2x32xf32>
    %437 = math.exp %436 : vector<2x32xf32>
    %cst_132 = arith.constant 1.000000e+00 : f32
    %438 = vector.broadcast %cst_132 : f32 to vector<2x32xf32>
    %439 = arith.addf %438, %437 : vector<2x32xf32>
    %440 = arith.divf %438, %439 : vector<2x32xf32>
    %441 = arith.mulf %432, %393 : vector<2x32xf32>
    %442 = arith.mulf %426, %434 : vector<2x32xf32>
    %443 = arith.addf %441, %442 : vector<2x32xf32>
    %444 = math.tanh %443 : vector<2x32xf32>
    %445 = arith.mulf %440, %444 : vector<2x32xf32>
    %c3_i32_133 = arith.constant 3 : i32
    %446 = vector.broadcast %c3_i32_133 : i32 to vector<2x32xi32>
    %447 = arith.cmpi slt, %312, %446 : vector<2x32xi32>
    %cst_134 = arith.constant 0xFF800000 : f32
    %448 = vector.broadcast %cst_134 : f32 to vector<2x32xf32>
    %449 = arith.select %447, %445, %448 : vector<2x32xi1>, vector<2x32xf32>
    %cst_135 = arith.constant dense<0xFF800000> : vector<2xf32>
    %450 = vector.multi_reduction <maximumf>, %449, %cst_135 [1] : vector<2x32xf32> to vector<2xf32>
    %451 = vector.shape_cast %450 : vector<2xf32> to vector<2x1xf32>
    %c3_i32_136 = arith.constant 3 : i32
    %452 = vector.broadcast %c3_i32_136 : i32 to vector<2x32xi32>
    %453 = arith.cmpi slt, %312, %452 : vector<2x32xi32>
    %454 = vector.broadcast %451 : vector<2x1xf32> to vector<2x32xf32>
    %455 = arith.subf %449, %454 : vector<2x32xf32>
    %456 = math.exp %455 : vector<2x32xf32>
    %cst_137 = arith.constant 0.000000e+00 : f32
    %457 = vector.broadcast %cst_137 : f32 to vector<2x32xf32>
    %458 = arith.select %453, %456, %457 : vector<2x32xi1>, vector<2x32xf32>
    %cst_138 = arith.constant dense<0.000000e+00> : vector<2xf32>
    %459 = vector.multi_reduction <add>, %458, %cst_138 [1] : vector<2x32xf32> to vector<2xf32>
    %460 = vector.shape_cast %459 : vector<2xf32> to vector<2x1xf32>
    %461 = tpu.reciprocal %460 {approx = true} : vector<2x1xf32> -> vector<2x1xf32>
    %462 = vector.broadcast %461 : vector<2x1xf32> to vector<2x32xf32>
    %463 = arith.mulf %458, %462 : vector<2x32xf32>
    %c4_139 = arith.constant 4 : index
    %c0_140 = arith.constant 0 : index
    %464 = vector.load %arg9[%c4_139, %c0_140] : memref<16x32xf32, #tpu.memory_space<vmem>>, vector<2x32xf32>
    tpu.vector_store %arg9[%c4_139, %c0_140], %463 {strides = array<i32>} : memref<16x32xf32, #tpu.memory_space<vmem>>, vector<2x32xf32>,
    %465 = vector.extract_strided_slice %311 {offsets = [3, 0], sizes = [1, 128], strides = [1, 1]} : vector<16x128xf32> to vector<1x128xf32>
    %466 = vector.extract_strided_slice %311 {offsets = [11, 0], sizes = [1, 128], strides = [1, 1]} : vector<16x128xf32> to vector<1x128xf32>
    %467 = tpu.concatenate %465, %466 in 0 : vector<1x128xf32>, vector<1x128xf32> -> vector<2x128xf32>
    %c0_141 = arith.constant 0 : index
    %c0_142 = arith.constant 0 : index
    %468 = vector.load %arg7[%c0_141, %c0_142] : memref<32x128xf32, #tpu.memory_space<vmem>>, vector<32x128xf32>
    %cst_143 = arith.constant dense<0.000000e+00> : vector<2x128xf32>
    %469 = tpu.matmul %445, %468, %cst_143 {dimension_numbers = #tpu.dot_dimension_numbers<[1], [0], [0], [1], [0, 0, 1, 1], [], []>} : vector<2x32xf32>, vector<32x128xf32>, vector<2x128xf32> -> vector<2x128xf32>
    %470 = arith.addf %467, %469 : vector<2x128xf32>
    %471 = vector.extract_strided_slice %470 {offsets = [0, 0], sizes = [2, 32], strides = [1, 1]} : vector<2x128xf32> to vector<2x32xf32>
    %472 = arith.negf %471 : vector<2x32xf32>
    %473 = math.exp %472 : vector<2x32xf32>
    %cst_144 = arith.constant 1.000000e+00 : f32
    %474 = vector.broadcast %cst_144 : f32 to vector<2x32xf32>
    %475 = arith.addf %474, %473 : vector<2x32xf32>
    %476 = arith.divf %474, %475 : vector<2x32xf32>
    %477 = vector.extract_strided_slice %470 {offsets = [0, 32], sizes = [2, 32], strides = [1, 1]} : vector<2x128xf32> to vector<2x32xf32>
    %478 = arith.negf %477 : vector<2x32xf32>
    %479 = math.exp %478 : vector<2x32xf32>
    %cst_145 = arith.constant 1.000000e+00 : f32
    %480 = vector.broadcast %cst_145 : f32 to vector<2x32xf32>
    %481 = arith.addf %480, %479 : vector<2x32xf32>
    %482 = arith.divf %480, %481 : vector<2x32xf32>
    %483 = vector.extract_strided_slice %470 {offsets = [0, 64], sizes = [2, 32], strides = [1, 1]} : vector<2x128xf32> to vector<2x32xf32>
    %484 = math.tanh %483 : vector<2x32xf32>
    %485 = vector.extract_strided_slice %470 {offsets = [0, 96], sizes = [2, 32], strides = [1, 1]} : vector<2x128xf32> to vector<2x32xf32>
    %486 = arith.negf %485 : vector<2x32xf32>
    %487 = math.exp %486 : vector<2x32xf32>
    %cst_146 = arith.constant 1.000000e+00 : f32
    %488 = vector.broadcast %cst_146 : f32 to vector<2x32xf32>
    %489 = arith.addf %488, %487 : vector<2x32xf32>
    %490 = arith.divf %488, %489 : vector<2x32xf32>
    %491 = arith.mulf %482, %443 : vector<2x32xf32>
    %492 = arith.mulf %476, %484 : vector<2x32xf32>
    %493 = arith.addf %491, %492 : vector<2x32xf32>
    %494 = math.tanh %493 : vector<2x32xf32>
    %495 = arith.mulf %490, %494 : vector<2x32xf32>
    %c3_i32_147 = arith.constant 3 : i32
    %496 = vector.broadcast %c3_i32_147 : i32 to vector<2x32xi32>
    %497 = arith.cmpi slt, %312, %496 : vector<2x32xi32>
    %cst_148 = arith.constant 0xFF800000 : f32
    %498 = vector.broadcast %cst_148 : f32 to vector<2x32xf32>
    %499 = arith.select %497, %495, %498 : vector<2x32xi1>, vector<2x32xf32>
    %cst_149 = arith.constant dense<0xFF800000> : vector<2xf32>
    %500 = vector.multi_reduction <maximumf>, %499, %cst_149 [1] : vector<2x32xf32> to vector<2xf32>
    %501 = vector.shape_cast %500 : vector<2xf32> to vector<2x1xf32>
    %c3_i32_150 = arith.constant 3 : i32
    %502 = vector.broadcast %c3_i32_150 : i32 to vector<2x32xi32>
    %503 = arith.cmpi slt, %312, %502 : vector<2x32xi32>
    %504 = vector.broadcast %501 : vector<2x1xf32> to vector<2x32xf32>
    %505 = arith.subf %499, %504 : vector<2x32xf32>
    %506 = math.exp %505 : vector<2x32xf32>
    %cst_151 = arith.constant 0.000000e+00 : f32
    %507 = vector.broadcast %cst_151 : f32 to vector<2x32xf32>
    %508 = arith.select %503, %506, %507 : vector<2x32xi1>, vector<2x32xf32>
    %cst_152 = arith.constant dense<0.000000e+00> : vector<2xf32>
    %509 = vector.multi_reduction <add>, %508, %cst_152 [1] : vector<2x32xf32> to vector<2xf32>
    %510 = vector.shape_cast %509 : vector<2xf32> to vector<2x1xf32>
    %511 = tpu.reciprocal %510 {approx = true} : vector<2x1xf32> -> vector<2x1xf32>
    %512 = vector.broadcast %511 : vector<2x1xf32> to vector<2x32xf32>
    %513 = arith.mulf %508, %512 : vector<2x32xf32>
    %c6_153 = arith.constant 6 : index
    %c0_154 = arith.constant 0 : index
    %514 = vector.load %arg9[%c6_153, %c0_154] : memref<16x32xf32, #tpu.memory_space<vmem>>, vector<2x32xf32>
    tpu.vector_store %arg9[%c6_153, %c0_154], %513 {strides = array<i32>} : memref<16x32xf32, #tpu.memory_space<vmem>>, vector<2x32xf32>,
    %515 = vector.extract_strided_slice %311 {offsets = [4, 0], sizes = [1, 128], strides = [1, 1]} : vector<16x128xf32> to vector<1x128xf32>
    %516 = vector.extract_strided_slice %311 {offsets = [12, 0], sizes = [1, 128], strides = [1, 1]} : vector<16x128xf32> to vector<1x128xf32>
    %517 = tpu.concatenate %515, %516 in 0 : vector<1x128xf32>, vector<1x128xf32> -> vector<2x128xf32>
    %c0_155 = arith.constant 0 : index
    %c0_156 = arith.constant 0 : index
    %518 = vector.load %arg7[%c0_155, %c0_156] : memref<32x128xf32, #tpu.memory_space<vmem>>, vector<32x128xf32>
    %cst_157 = arith.constant dense<0.000000e+00> : vector<2x128xf32>
    %519 = tpu.matmul %495, %518, %cst_157 {dimension_numbers = #tpu.dot_dimension_numbers<[1], [0], [0], [1], [0, 0, 1, 1], [], []>} : vector<2x32xf32>, vector<32x128xf32>, vector<2x128xf32> -> vector<2x128xf32>
    %520 = arith.addf %517, %519 : vector<2x128xf32>
    %521 = vector.extract_strided_slice %520 {offsets = [0, 0], sizes = [2, 32], strides = [1, 1]} : vector<2x128xf32> to vector<2x32xf32>
    %522 = arith.negf %521 : vector<2x32xf32>
    %523 = math.exp %522 : vector<2x32xf32>
    %cst_158 = arith.constant 1.000000e+00 : f32
    %524 = vector.broadcast %cst_158 : f32 to vector<2x32xf32>
    %525 = arith.addf %524, %523 : vector<2x32xf32>
    %526 = arith.divf %524, %525 : vector<2x32xf32>
    %527 = vector.extract_strided_slice %520 {offsets = [0, 32], sizes = [2, 32], strides = [1, 1]} : vector<2x128xf32> to vector<2x32xf32>
    %528 = arith.negf %527 : vector<2x32xf32>
    %529 = math.exp %528 : vector<2x32xf32>
    %cst_159 = arith.constant 1.000000e+00 : f32
    %530 = vector.broadcast %cst_159 : f32 to vector<2x32xf32>
    %531 = arith.addf %530, %529 : vector<2x32xf32>
    %532 = arith.divf %530, %531 : vector<2x32xf32>
    %533 = vector.extract_strided_slice %520 {offsets = [0, 64], sizes = [2, 32], strides = [1, 1]} : vector<2x128xf32> to vector<2x32xf32>
    %534 = math.tanh %533 : vector<2x32xf32>
    %535 = vector.extract_strided_slice %520 {offsets = [0, 96], sizes = [2, 32], strides = [1, 1]} : vector<2x128xf32> to vector<2x32xf32>
    %536 = arith.negf %535 : vector<2x32xf32>
    %537 = math.exp %536 : vector<2x32xf32>
    %cst_160 = arith.constant 1.000000e+00 : f32
    %538 = vector.broadcast %cst_160 : f32 to vector<2x32xf32>
    %539 = arith.addf %538, %537 : vector<2x32xf32>
    %540 = arith.divf %538, %539 : vector<2x32xf32>
    %541 = arith.mulf %532, %493 : vector<2x32xf32>
    %542 = arith.mulf %526, %534 : vector<2x32xf32>
    %543 = arith.addf %541, %542 : vector<2x32xf32>
    %544 = math.tanh %543 : vector<2x32xf32>
    %545 = arith.mulf %540, %544 : vector<2x32xf32>
    %c3_i32_161 = arith.constant 3 : i32
    %546 = vector.broadcast %c3_i32_161 : i32 to vector<2x32xi32>
    %547 = arith.cmpi slt, %312, %546 : vector<2x32xi32>
    %cst_162 = arith.constant 0xFF800000 : f32
    %548 = vector.broadcast %cst_162 : f32 to vector<2x32xf32>
    %549 = arith.select %547, %545, %548 : vector<2x32xi1>, vector<2x32xf32>
    %cst_163 = arith.constant dense<0xFF800000> : vector<2xf32>
    %550 = vector.multi_reduction <maximumf>, %549, %cst_163 [1] : vector<2x32xf32> to vector<2xf32>
    %551 = vector.shape_cast %550 : vector<2xf32> to vector<2x1xf32>
    %c3_i32_164 = arith.constant 3 : i32
    %552 = vector.broadcast %c3_i32_164 : i32 to vector<2x32xi32>
    %553 = arith.cmpi slt, %312, %552 : vector<2x32xi32>
    %554 = vector.broadcast %551 : vector<2x1xf32> to vector<2x32xf32>
    %555 = arith.subf %549, %554 : vector<2x32xf32>
    %556 = math.exp %555 : vector<2x32xf32>
    %cst_165 = arith.constant 0.000000e+00 : f32
    %557 = vector.broadcast %cst_165 : f32 to vector<2x32xf32>
    %558 = arith.select %553, %556, %557 : vector<2x32xi1>, vector<2x32xf32>
    %cst_166 = arith.constant dense<0.000000e+00> : vector<2xf32>
    %559 = vector.multi_reduction <add>, %558, %cst_166 [1] : vector<2x32xf32> to vector<2xf32>
    %560 = vector.shape_cast %559 : vector<2xf32> to vector<2x1xf32>
    %561 = tpu.reciprocal %560 {approx = true} : vector<2x1xf32> -> vector<2x1xf32>
    %562 = vector.broadcast %561 : vector<2x1xf32> to vector<2x32xf32>
    %563 = arith.mulf %558, %562 : vector<2x32xf32>
    %c8_167 = arith.constant 8 : index
    %c0_168 = arith.constant 0 : index
    %564 = vector.load %arg9[%c8_167, %c0_168] : memref<16x32xf32, #tpu.memory_space<vmem>>, vector<2x32xf32>
    tpu.vector_store %arg9[%c8_167, %c0_168], %563 {strides = array<i32>} : memref<16x32xf32, #tpu.memory_space<vmem>>, vector<2x32xf32>,
    %565 = vector.extract_strided_slice %311 {offsets = [5, 0], sizes = [1, 128], strides = [1, 1]} : vector<16x128xf32> to vector<1x128xf32>
    %566 = vector.extract_strided_slice %311 {offsets = [13, 0], sizes = [1, 128], strides = [1, 1]} : vector<16x128xf32> to vector<1x128xf32>
    %567 = tpu.concatenate %565, %566 in 0 : vector<1x128xf32>, vector<1x128xf32> -> vector<2x128xf32>
    %c0_169 = arith.constant 0 : index
    %c0_170 = arith.constant 0 : index
    %568 = vector.load %arg7[%c0_169, %c0_170] : memref<32x128xf32, #tpu.memory_space<vmem>>, vector<32x128xf32>
    %cst_171 = arith.constant dense<0.000000e+00> : vector<2x128xf32>
    %569 = tpu.matmul %545, %568, %cst_171 {dimension_numbers = #tpu.dot_dimension_numbers<[1], [0], [0], [1], [0, 0, 1, 1], [], []>} : vector<2x32xf32>, vector<32x128xf32>, vector<2x128xf32> -> vector<2x128xf32>
    %570 = arith.addf %567, %569 : vector<2x128xf32>
    %571 = vector.extract_strided_slice %570 {offsets = [0, 0], sizes = [2, 32], strides = [1, 1]} : vector<2x128xf32> to vector<2x32xf32>
    %572 = arith.negf %571 : vector<2x32xf32>
    %573 = math.exp %572 : vector<2x32xf32>
    %cst_172 = arith.constant 1.000000e+00 : f32
    %574 = vector.broadcast %cst_172 : f32 to vector<2x32xf32>
    %575 = arith.addf %574, %573 : vector<2x32xf32>
    %576 = arith.divf %574, %575 : vector<2x32xf32>
    %577 = vector.extract_strided_slice %570 {offsets = [0, 32], sizes = [2, 32], strides = [1, 1]} : vector<2x128xf32> to vector<2x32xf32>
    %578 = arith.negf %577 : vector<2x32xf32>
    %579 = math.exp %578 : vector<2x32xf32>
    %cst_173 = arith.constant 1.000000e+00 : f32
    %580 = vector.broadcast %cst_173 : f32 to vector<2x32xf32>
    %581 = arith.addf %580, %579 : vector<2x32xf32>
    %582 = arith.divf %580, %581 : vector<2x32xf32>
    %583 = vector.extract_strided_slice %570 {offsets = [0, 64], sizes = [2, 32], strides = [1, 1]} : vector<2x128xf32> to vector<2x32xf32>
    %584 = math.tanh %583 : vector<2x32xf32>
    %585 = vector.extract_strided_slice %570 {offsets = [0, 96], sizes = [2, 32], strides = [1, 1]} : vector<2x128xf32> to vector<2x32xf32>
    %586 = arith.negf %585 : vector<2x32xf32>
    %587 = math.exp %586 : vector<2x32xf32>
    %cst_174 = arith.constant 1.000000e+00 : f32
    %588 = vector.broadcast %cst_174 : f32 to vector<2x32xf32>
    %589 = arith.addf %588, %587 : vector<2x32xf32>
    %590 = arith.divf %588, %589 : vector<2x32xf32>
    %591 = arith.mulf %582, %543 : vector<2x32xf32>
    %592 = arith.mulf %576, %584 : vector<2x32xf32>
    %593 = arith.addf %591, %592 : vector<2x32xf32>
    %594 = math.tanh %593 : vector<2x32xf32>
    %595 = arith.mulf %590, %594 : vector<2x32xf32>
    %c3_i32_175 = arith.constant 3 : i32
    %596 = vector.broadcast %c3_i32_175 : i32 to vector<2x32xi32>
    %597 = arith.cmpi slt, %312, %596 : vector<2x32xi32>
    %cst_176 = arith.constant 0xFF800000 : f32
    %598 = vector.broadcast %cst_176 : f32 to vector<2x32xf32>
    %599 = arith.select %597, %595, %598 : vector<2x32xi1>, vector<2x32xf32>
    %cst_177 = arith.constant dense<0xFF800000> : vector<2xf32>
    %600 = vector.multi_reduction <maximumf>, %599, %cst_177 [1] : vector<2x32xf32> to vector<2xf32>
    %601 = vector.shape_cast %600 : vector<2xf32> to vector<2x1xf32>
    %c3_i32_178 = arith.constant 3 : i32
    %602 = vector.broadcast %c3_i32_178 : i32 to vector<2x32xi32>
    %603 = arith.cmpi slt, %312, %602 : vector<2x32xi32>
    %604 = vector.broadcast %601 : vector<2x1xf32> to vector<2x32xf32>
    %605 = arith.subf %599, %604 : vector<2x32xf32>
    %606 = math.exp %605 : vector<2x32xf32>
    %cst_179 = arith.constant 0.000000e+00 : f32
    %607 = vector.broadcast %cst_179 : f32 to vector<2x32xf32>
    %608 = arith.select %603, %606, %607 : vector<2x32xi1>, vector<2x32xf32>
    %cst_180 = arith.constant dense<0.000000e+00> : vector<2xf32>
    %609 = vector.multi_reduction <add>, %608, %cst_180 [1] : vector<2x32xf32> to vector<2xf32>
    %610 = vector.shape_cast %609 : vector<2xf32> to vector<2x1xf32>
    %611 = tpu.reciprocal %610 {approx = true} : vector<2x1xf32> -> vector<2x1xf32>
    %612 = vector.broadcast %611 : vector<2x1xf32> to vector<2x32xf32>
    %613 = arith.mulf %608, %612 : vector<2x32xf32>
    %c10_181 = arith.constant 10 : index
    %c0_182 = arith.constant 0 : index
    %614 = vector.load %arg9[%c10_181, %c0_182] : memref<16x32xf32, #tpu.memory_space<vmem>>, vector<2x32xf32>
    tpu.vector_store %arg9[%c10_181, %c0_182], %613 {strides = array<i32>} : memref<16x32xf32, #tpu.memory_space<vmem>>, vector<2x32xf32>,
    %615 = vector.extract_strided_slice %311 {offsets = [6, 0], sizes = [1, 128], strides = [1, 1]} : vector<16x128xf32> to vector<1x128xf32>
    %616 = vector.extract_strided_slice %311 {offsets = [14, 0], sizes = [1, 128], strides = [1, 1]} : vector<16x128xf32> to vector<1x128xf32>
    %617 = tpu.concatenate %615, %616 in 0 : vector<1x128xf32>, vector<1x128xf32> -> vector<2x128xf32>
    %c0_183 = arith.constant 0 : index
    %c0_184 = arith.constant 0 : index
    %618 = vector.load %arg7[%c0_183, %c0_184] : memref<32x128xf32, #tpu.memory_space<vmem>>, vector<32x128xf32>
    %cst_185 = arith.constant dense<0.000000e+00> : vector<2x128xf32>
    %619 = tpu.matmul %595, %618, %cst_185 {dimension_numbers = #tpu.dot_dimension_numbers<[1], [0], [0], [1], [0, 0, 1, 1], [], []>} : vector<2x32xf32>, vector<32x128xf32>, vector<2x128xf32> -> vector<2x128xf32>
    %620 = arith.addf %617, %619 : vector<2x128xf32>
    %621 = vector.extract_strided_slice %620 {offsets = [0, 0], sizes = [2, 32], strides = [1, 1]} : vector<2x128xf32> to vector<2x32xf32>
    %622 = arith.negf %621 : vector<2x32xf32>
    %623 = math.exp %622 : vector<2x32xf32>
    %cst_186 = arith.constant 1.000000e+00 : f32
    %624 = vector.broadcast %cst_186 : f32 to vector<2x32xf32>
    %625 = arith.addf %624, %623 : vector<2x32xf32>
    %626 = arith.divf %624, %625 : vector<2x32xf32>
    %627 = vector.extract_strided_slice %620 {offsets = [0, 32], sizes = [2, 32], strides = [1, 1]} : vector<2x128xf32> to vector<2x32xf32>
    %628 = arith.negf %627 : vector<2x32xf32>
    %629 = math.exp %628 : vector<2x32xf32>
    %cst_187 = arith.constant 1.000000e+00 : f32
    %630 = vector.broadcast %cst_187 : f32 to vector<2x32xf32>
    %631 = arith.addf %630, %629 : vector<2x32xf32>
    %632 = arith.divf %630, %631 : vector<2x32xf32>
    %633 = vector.extract_strided_slice %620 {offsets = [0, 64], sizes = [2, 32], strides = [1, 1]} : vector<2x128xf32> to vector<2x32xf32>
    %634 = math.tanh %633 : vector<2x32xf32>
    %635 = vector.extract_strided_slice %620 {offsets = [0, 96], sizes = [2, 32], strides = [1, 1]} : vector<2x128xf32> to vector<2x32xf32>
    %636 = arith.negf %635 : vector<2x32xf32>
    %637 = math.exp %636 : vector<2x32xf32>
    %cst_188 = arith.constant 1.000000e+00 : f32
    %638 = vector.broadcast %cst_188 : f32 to vector<2x32xf32>
    %639 = arith.addf %638, %637 : vector<2x32xf32>
    %640 = arith.divf %638, %639 : vector<2x32xf32>
    %641 = arith.mulf %632, %593 : vector<2x32xf32>
    %642 = arith.mulf %626, %634 : vector<2x32xf32>
    %643 = arith.addf %641, %642 : vector<2x32xf32>
    %644 = math.tanh %643 : vector<2x32xf32>
    %645 = arith.mulf %640, %644 : vector<2x32xf32>
    %c3_i32_189 = arith.constant 3 : i32
    %646 = vector.broadcast %c3_i32_189 : i32 to vector<2x32xi32>
    %647 = arith.cmpi slt, %312, %646 : vector<2x32xi32>
    %cst_190 = arith.constant 0xFF800000 : f32
    %648 = vector.broadcast %cst_190 : f32 to vector<2x32xf32>
    %649 = arith.select %647, %645, %648 : vector<2x32xi1>, vector<2x32xf32>
    %cst_191 = arith.constant dense<0xFF800000> : vector<2xf32>
    %650 = vector.multi_reduction <maximumf>, %649, %cst_191 [1] : vector<2x32xf32> to vector<2xf32>
    %651 = vector.shape_cast %650 : vector<2xf32> to vector<2x1xf32>
    %c3_i32_192 = arith.constant 3 : i32
    %652 = vector.broadcast %c3_i32_192 : i32 to vector<2x32xi32>
    %653 = arith.cmpi slt, %312, %652 : vector<2x32xi32>
    %654 = vector.broadcast %651 : vector<2x1xf32> to vector<2x32xf32>
    %655 = arith.subf %649, %654 : vector<2x32xf32>
    %656 = math.exp %655 : vector<2x32xf32>
    %cst_193 = arith.constant 0.000000e+00 : f32
    %657 = vector.broadcast %cst_193 : f32 to vector<2x32xf32>
    %658 = arith.select %653, %656, %657 : vector<2x32xi1>, vector<2x32xf32>
    %cst_194 = arith.constant dense<0.000000e+00> : vector<2xf32>
    %659 = vector.multi_reduction <add>, %658, %cst_194 [1] : vector<2x32xf32> to vector<2xf32>
    %660 = vector.shape_cast %659 : vector<2xf32> to vector<2x1xf32>
    %661 = tpu.reciprocal %660 {approx = true} : vector<2x1xf32> -> vector<2x1xf32>
    %662 = vector.broadcast %661 : vector<2x1xf32> to vector<2x32xf32>
    %663 = arith.mulf %658, %662 : vector<2x32xf32>
    %c12_195 = arith.constant 12 : index
    %c0_196 = arith.constant 0 : index
    %664 = vector.load %arg9[%c12_195, %c0_196] : memref<16x32xf32, #tpu.memory_space<vmem>>, vector<2x32xf32>
    tpu.vector_store %arg9[%c12_195, %c0_196], %663 {strides = array<i32>} : memref<16x32xf32, #tpu.memory_space<vmem>>, vector<2x32xf32>,
    %665 = vector.extract_strided_slice %311 {offsets = [7, 0], sizes = [1, 128], strides = [1, 1]} : vector<16x128xf32> to vector<1x128xf32>
    %666 = vector.extract_strided_slice %311 {offsets = [15, 0], sizes = [1, 128], strides = [1, 1]} : vector<16x128xf32> to vector<1x128xf32>
    %667 = tpu.concatenate %665, %666 in 0 : vector<1x128xf32>, vector<1x128xf32> -> vector<2x128xf32>
    %c0_197 = arith.constant 0 : index
    %c0_198 = arith.constant 0 : index
    %668 = vector.load %arg7[%c0_197, %c0_198] : memref<32x128xf32, #tpu.memory_space<vmem>>, vector<32x128xf32>
    %cst_199 = arith.constant dense<0.000000e+00> : vector<2x128xf32>
    %669 = tpu.matmul %645, %668, %cst_199 {dimension_numbers = #tpu.dot_dimension_numbers<[1], [0], [0], [1], [0, 0, 1, 1], [], []>} : vector<2x32xf32>, vector<32x128xf32>, vector<2x128xf32> -> vector<2x128xf32>
    %670 = arith.addf %667, %669 : vector<2x128xf32>
    %671 = vector.extract_strided_slice %670 {offsets = [0, 0], sizes = [2, 32], strides = [1, 1]} : vector<2x128xf32> to vector<2x32xf32>
    %672 = arith.negf %671 : vector<2x32xf32>
    %673 = math.exp %672 : vector<2x32xf32>
    %cst_200 = arith.constant 1.000000e+00 : f32
    %674 = vector.broadcast %cst_200 : f32 to vector<2x32xf32>
    %675 = arith.addf %674, %673 : vector<2x32xf32>
    %676 = arith.divf %674, %675 : vector<2x32xf32>
    %677 = vector.extract_strided_slice %670 {offsets = [0, 32], sizes = [2, 32], strides = [1, 1]} : vector<2x128xf32> to vector<2x32xf32>
    %678 = arith.negf %677 : vector<2x32xf32>
    %679 = math.exp %678 : vector<2x32xf32>
    %cst_201 = arith.constant 1.000000e+00 : f32
    %680 = vector.broadcast %cst_201 : f32 to vector<2x32xf32>
    %681 = arith.addf %680, %679 : vector<2x32xf32>
    %682 = arith.divf %680, %681 : vector<2x32xf32>
    %683 = vector.extract_strided_slice %670 {offsets = [0, 64], sizes = [2, 32], strides = [1, 1]} : vector<2x128xf32> to vector<2x32xf32>
    %684 = math.tanh %683 : vector<2x32xf32>
    %685 = vector.extract_strided_slice %670 {offsets = [0, 96], sizes = [2, 32], strides = [1, 1]} : vector<2x128xf32> to vector<2x32xf32>
    %686 = arith.negf %685 : vector<2x32xf32>
    %687 = math.exp %686 : vector<2x32xf32>
    %cst_202 = arith.constant 1.000000e+00 : f32
    %688 = vector.broadcast %cst_202 : f32 to vector<2x32xf32>
    %689 = arith.addf %688, %687 : vector<2x32xf32>
    %690 = arith.divf %688, %689 : vector<2x32xf32>
    %691 = arith.mulf %682, %643 : vector<2x32xf32>
    %692 = arith.mulf %676, %684 : vector<2x32xf32>
    %693 = arith.addf %691, %692 : vector<2x32xf32>
    %694 = math.tanh %693 : vector<2x32xf32>
    %695 = arith.mulf %690, %694 : vector<2x32xf32>
    %c3_i32_203 = arith.constant 3 : i32
    %696 = vector.broadcast %c3_i32_203 : i32 to vector<2x32xi32>
    %697 = arith.cmpi slt, %312, %696 : vector<2x32xi32>
    %cst_204 = arith.constant 0xFF800000 : f32
    %698 = vector.broadcast %cst_204 : f32 to vector<2x32xf32>
    %699 = arith.select %697, %695, %698 : vector<2x32xi1>, vector<2x32xf32>
    %cst_205 = arith.constant dense<0xFF800000> : vector<2xf32>
    %700 = vector.multi_reduction <maximumf>, %699, %cst_205 [1] : vector<2x32xf32> to vector<2xf32>
    %701 = vector.shape_cast %700 : vector<2xf32> to vector<2x1xf32>
    %c3_i32_206 = arith.constant 3 : i32
    %702 = vector.broadcast %c3_i32_206 : i32 to vector<2x32xi32>
    %703 = arith.cmpi slt, %312, %702 : vector<2x32xi32>
    %704 = vector.broadcast %701 : vector<2x1xf32> to vector<2x32xf32>
    %705 = arith.subf %699, %704 : vector<2x32xf32>
    %706 = math.exp %705 : vector<2x32xf32>
    %cst_207 = arith.constant 0.000000e+00 : f32
    %707 = vector.broadcast %cst_207 : f32 to vector<2x32xf32>
    %708 = arith.select %703, %706, %707 : vector<2x32xi1>, vector<2x32xf32>
    %cst_208 = arith.constant dense<0.000000e+00> : vector<2xf32>
    %709 = vector.multi_reduction <add>, %708, %cst_208 [1] : vector<2x32xf32> to vector<2xf32>
    %710 = vector.shape_cast %709 : vector<2xf32> to vector<2x1xf32>
    %711 = tpu.reciprocal %710 {approx = true} : vector<2x1xf32> -> vector<2x1xf32>
    %712 = vector.broadcast %711 : vector<2x1xf32> to vector<2x32xf32>
    %713 = arith.mulf %708, %712 : vector<2x32xf32>
    %c14_209 = arith.constant 14 : index
    %c0_210 = arith.constant 0 : index
    %714 = vector.load %arg9[%c14_209, %c0_210] : memref<16x32xf32, #tpu.memory_space<vmem>>, vector<2x32xf32>
    tpu.vector_store %arg9[%c14_209, %c0_210], %713 {strides = array<i32>} : memref<16x32xf32, #tpu.memory_space<vmem>>, vector<2x32xf32>,
    return
  }
}

</mosaic_0001>

<bundles_post_ra>
// kernel: lstm_cnn_forward.1
= control target key start
LH: loop header
LB: loop body
LE: loop exit
PB: predicated region body
PF: predicated region fallthrough
CT: control target
= control target key end

     0   :  { %v3331_v3 = vmov 0.0   ;;  %vm50_vm0 = vcmask 130048   ;;  %v40_v22 = vlaneseq  ;;  %vm253_vm1 = vcmask 516096   ;;  %s4290_s2 = inlined_call_operand.vmem [shape: f32[64,256], index: 2, kind: input, shape index: {}]   ;;  %s4291_s1 = inlined_call_operand.vmem [shape: f32[16,256], index: 1, kind: input, shape index: {}]   ;;  %s4292_s0 = inlined_call_operand.vmem [shape: f32[16,16], index: 0, kind: input, shape index: {}]   ;;  %s4293_s3 = inlined_call_operand.vmem [shape: f32[1,256], index: 3, kind: input, shape index: {}]   ;;  %s4294_s5 = inlined_call_operand.vmem [shape: f32[8,1], index: 5, kind: input, shape index: {}]   ;;  %s4295_s4 = inlined_call_operand.vmem [shape: f32[8,24], index: 4, kind: input, shape index: {}]   ;;  %s4296_s6 = inlined_call_operand.vmem [shape: f32[64,128], index: 6, kind: input, shape index: {}]   ;;  %s4297_s7 = inlined_call_operand.vmem [shape: f32[32,128], index: 7, kind: input, shape index: {}]   ;;  %s4298_s8 = inlined_call_operand.vmem [shape: f32[1,128], index: 8, kind: input, shape index: {}]   ;;  %s4299_s9 = inlined_call_operand.vmem [shape: f32[16,32], index: 9, kind: output, shape index: {}]  }
   0x1   :  { %v3390_v0 = vld [vmem:[%s4290_s2 + $0x78] sm:$0xff]  ;;  %v3395_v1 = vld [vmem:[%s4290_s2 + $0x70] sm:$0xff]  ;;  %v3400_v2 = vld [vmem:[%s4290_s2 + $0x68] sm:$0xff]  ;;  %121 = vmatprep.mubr.f32.mxu0 %v3331_v3  ;;  %218 = vmatprep.mubr.f32.mxu1 %v3331_v3  ;;  %vm255_vm2 = vcmask 517121   ;;  %vm150_vm3 = vcmask 523264   ;;  %vm383_vm4 = vcmask 518146  }
   0x2   :  { %170 = vmatprep.subr.mxu1 %v3390_v0  ;;  %v3408_v4 = vld [vmem:[%s4290_s2 + $0x60] sm:$0xff]  ;;  %v3414_v5 = vld [vmem:[%s4290_s2 + $0x58] sm:$0xff]  ;;  %v3423_v7 = vld [vmem:[%s4290_s2 + $0x50] sm:$0xff]  ;;  %v3539_v23 = vshrl.u32 %v40_v22, 7  ;;  %vm385_vm5 = vcmask 519171   ;;  %vm649_vm6 = vcmask 522246  }
   0x3   :  { %171 = vmatpush1.msra.mxu1 %v3395_v1  ;;  %v37_v6 = vld [vmem:[%s4291_s1 + $0x18] sm:$0xff]  ;;  %v36_v8 = vld [vmem:[%s4291_s1 + $0x10] sm:$0xff]  ;;  %v3432_v9 = vld [vmem:[%s4290_s2 + $0x48] sm:$0xff]  ;;  %vm651_vm7 = vcmask 523271   ;;  %vm516_vm8 = vcmask 520196   ;;  %vm518_vm9 = vcmask 521221  }
   0x4   :  { %172 = vmatprep.subr.mxu1 %v3400_v2  ;;  %85 = vmatprep.subr.mxu0 %v37_v6  ;;  %v35_v10 = vld [vmem:[%s4291_s1 + $0x8] sm:$0xff]  ;;  %v34_v11 = vld [vmem:[%s4291_s1] sm:$0xff]  ;;  %v3453_v14 = vld [vmem:[%s4290_s2 + $0x38] sm:$0xff]  ;;  %v42_v24 = vsub.s32 0, %v3539_v23  ;;  %v46_v32 = vsub.s32 1, %v3539_v23 }
   0x5   :  { %173 = vmatpush1.msra.mxu1 %v3408_v4  ;;  %86 = vmatpush1.msra.mxu0 %v36_v8  ;;  %v3444_v12 = vld [vmem:[%s4290_s2 + $0x40] sm:$0xff]  ;;  %v3459_v15 = vld [vmem:[%s4290_s2 + $0x30] sm:$0xff]  ;;  %v3466_v16 = vld [vmem:[%s4290_s2 + $0x28] sm:$0xff] }
   0x6   :  { %174 = vmatprep.subr.mxu1 %v3414_v5  ;;  %87 = vmatprep.subr.mxu0 %v35_v10  ;;  %v32_v13 = vld [vmem:[%s4292_s0] sm:$0xff]  ;;  %v3480_v18 = vld [vmem:[%s4290_s2 + $0x18] sm:$0xff]  ;;  %v3487_v19 = vld [vmem:[%s4290_s2 + $0x10] sm:$0xff] }
   0x7   :  { %175 = vmatpush1.msra.mxu1 %v3423_v7  ;;  %88 = vmatpush1.msra.mxu0 %v34_v11  ;;  %v3473_v17 = vld [vmem:[%s4290_s2 + $0x20] sm:$0xff]  ;;  %v3494_v20 = vld [vmem:[%s4290_s2 + $0x8] sm:$0xff] }
   0x8   :  { %176 = vmatprep.subr.mxu1 %v3432_v9  ;;  %2755 = vmatmul.mubr.msk.f32.vlgmr.msra.gmra.mxu0 %vm50_vm0, %v32_v13  ;;  %v3501_v21 = vld [vmem:[%s4290_s2] sm:$0xff]  ;;  %v33_v43 = vld [vmem:[%s4292_s0 + $0x8] sm:$0xff] }
   0x9   :  { %177 = vmatpush1.msra.mxu1 %v3444_v12  ;;  %291 = vmatprep.subr.mxu0 %v3390_v0  ;;  %v38_v25 = vld [vmem:[%s4293_s3] sm:$0x3]  ;;  %s3332_s3 = smov 64  }
   0xa   :  { %178 = vmatprep.subr.mxu1 %v3453_v14  ;;  %292 = vmatpush1.msra.mxu0 %v3395_v1  ;;  %v3545_v26 = vrot.slane %v38_v25, %v42_v24  ;;  %v3552_v33 = vrot.slane %v38_v25, %v46_v32 }
   0xb   :  { %179 = vmatpush1.msra.mxu1 %v3459_v15  ;;  %293 = vmatprep.subr.mxu0 %v3400_v2 }
   0xc   :  { %180 = vmatprep.subr.mxu1 %v3466_v16  ;;  %294 = vmatpush1.msra.mxu0 %v3408_v4 }
   0xd   :  { %181 = vmatpush1.msra.mxu1 %v3473_v17  ;;  %295 = vmatprep.subr.mxu0 %v3414_v5 }
   0xe   :  { %182 = vmatprep.subr.mxu1 %v3480_v18  ;;  %296 = vmatpush1.msra.mxu0 %v3423_v7 }
   0xf   :  { %183 = vmatpush1.msra.mxu1 %v3487_v19  ;;  %297 = vmatprep.subr.mxu0 %v3432_v9 }
  0x10   :  { %184 = vmatprep.subr.mxu1 %v3494_v20  ;;  %298 = vmatpush1.msra.mxu0 %v3444_v12 }
  0x11   :  { %185 = vmatpush1.msra.mxu1 %v3501_v21  ;;  %299 = vmatprep.subr.mxu0 %v3453_v14 }
  0x12   :  { %219 = vmatmul.mubr.f32.vlgmr.msra.gmra.mxu1 %v3331_v3  ;;  %127 = vmatprep.mubr.f32.mxu0 %v3331_v3 }
  0x13   :  { %300 = vmatpush1.msra.mxu0 %v3459_v15  ;;  %424 = vmatprep.subr.mxu1 %v3390_v0 }
  0x14   :  { %301 = vmatprep.subr.mxu0 %v3466_v16  ;;  %425 = vmatpush1.msra.mxu1 %v3395_v1 }
  0x15   :  { %302 = vmatpush1.msra.mxu0 %v3473_v17  ;;  %426 = vmatprep.subr.mxu1 %v3400_v2 }
  0x16   :  { %303 = vmatprep.subr.mxu0 %v3480_v18  ;;  %427 = vmatpush1.msra.mxu1 %v3408_v4 }
  0x17   :  { %304 = vmatpush1.msra.mxu0 %v3487_v19  ;;  %428 = vmatprep.subr.mxu1 %v3414_v5 }
  0x18   :  { %305 = vmatprep.subr.mxu0 %v3494_v20  ;;  %429 = vmatpush1.msra.mxu1 %v3423_v7 }
  0x19   :  { %306 = vmatpush1.msra.mxu0 %v3501_v21  ;;  %430 = vmatprep.subr.mxu1 %v3432_v9 }
  0x1a   :  { %431 = vmatpush1.msra.mxu1 %v3444_v12  ;;  %472 = vmatprep.mubr.f32.mxu1 %v3331_v3 }
  0x1b   :  { %432 = vmatprep.subr.mxu1 %v3453_v14  ;;  %557 = vmatprep.subr.mxu0 %v3390_v0 }
  0x1c   :  { %433 = vmatpush1.msra.mxu1 %v3459_v15  ;;  %2756 = vmatmul.mubr.msk.f32.gmra.mxu0 %vm50_vm0, %v33_v43 }
  0x1d   :  { %434 = vmatprep.subr.mxu1 %v3466_v16  ;;  %339 = vmatprep.mubr.f32.mxu0 %v3331_v3 }
  0x1e   :  { %435 = vmatpush1.msra.mxu1 %v3473_v17 }
  0x1f   :  { %436 = vmatprep.subr.mxu1 %v3480_v18 }
  0x20   :  { %437 = vmatpush1.msra.mxu1 %v3487_v19 }
  0x21   :  { %438 = vmatprep.subr.mxu1 %v3494_v20 }
  0x22   :  { %439 = vmatpush1.msra.mxu1 %v3501_v21 }
  0x23   :  { %690 = vmatprep.subr.mxu1 %v3390_v0 }
  0xc8   :  { %v123_v27 = vpop.f32.mrf.mxu0 }
  0xc9   :  { %v3548_v28 = vadd.f32 %v123_v27, %v3545_v26 }
  0xca   :  { %v125_v34 = vpop.f32.mrf.mxu0 }
  0xcb   :  { %v3555_v36 = vadd.f32 %v125_v34, %v3552_v33 }
  0xd2   :  { %v220_v29 = vpop.f32.mrf.mxu1 }
  0xd3   :  { %v225_v30 = vadd.f32 %v220_v29, %v3548_v28 }
  0xd4   :  { %v222_v35 = vpop.f32.mrf.mxu1 }
  0xd5   :  { %v2757_v31 = vmul.f32 -1.442695, %v225_v30  ;;  %v226_v37 = vadd.f32 %v222_v35, %v3555_v36 }
  0xd7   :  { %3139 = vpow2.f32 %v2757_v31  ;;  %v2758_v44 = vmul.f32 -1.442695, %v226_v37 }
  0xd8   :  { %3141 = vtanh.f32 %v226_v37 }
  0xdc   :  { %v3585_v54 = vpop.f32.mrf.mxu0 }
  0xde   :  { %v3587_v55 = vpop.f32.mrf.mxu0 }
  0xe4   :  { %v3140_v38 = vpop.eup %3139 }
  0xe5   :  { %v230_v39 = vadd.f32 1.0, %v3140_v38  ;;  %v3142_v40 = vpop.eup %3141 }
  0xe7   :  { %3143 = vrcp.f32 %v230_v39 }
  0xe8   :  { %3145 = vpow2.f32 %v2758_v44 }
  0xf4   :  { %v3144_v41 = vpop.eup %3143 }
  0xf5   :  { %v241_v42 = vmul.f32 %v3144_v41, %v3142_v40  ;;  %v3146_v45 = vpop.eup %3145  ;;  %v240_v47 = vmul.f32 0.0, %v3144_v41 }
  0xf6   :  { %v237_v46 = vadd.f32 1.0, %v3146_v45 }
  0xf7   :  { %243 = vrot.lane.b32.xlu0 %v241_v42, %s3332_s3 }
  0xf8   :  { %3147 = vrcp.f32 %v237_v46 }
 0x105   :  { %v3148_v50 = vpop.eup %3147 }
 0x169   :  { %v244_v48 = vpop.permute.xlu0 %243 }
 0x16a   :  { %v246_v49 = vadd.f32 %v244_v48, %v240_v47 }
 0x16c   :  { %3149 = vtanh.f32 %v246_v49  ;;  %v368_v10 = vrot.slane %v246_v49, 6 }
 0x179   :  { %v3150_v51 = vpop.eup %3149 }
 0x17a   :  { %v248_v52 = vmul.f32 %v3150_v51, %v3148_v50 }
 0x17c   :  { %250 = vrot.lane.b32.xlu0 %v248_v52, %s3332_s3 }
 0x1ee   :  { %v251_v53 = vpop.permute.xlu0 %250 }
 0x1ef   :  { %254 = vst.msk [vmem:[#allocation2] sm:$0x1] %vm253_vm1, %v251_v53  ;;  %2759 = vmatmul.mubr.msk.f32.vlgmr.msra.gmra.mxu0 %vm150_vm3, %v251_v53 }
 0x1f0   :  { %256 = vst.msk [vmem:[#allocation2 + $0x7] sm:$0x2] %vm255_vm2, %v251_v53  ;;  %558 = vmatpush1.msra.mxu0 %v3395_v1  ;;  %605 = vmatprep.mubr.f32.mxu0 %v3331_v3 }
 0x1f1   :  { %559 = vmatprep.subr.mxu0 %v3400_v2 }
 0x1f2   :  { %560 = vmatpush1.msra.mxu0 %v3408_v4 }
 0x1f3   :  { %561 = vmatprep.subr.mxu0 %v3414_v5 }
 0x1f4   :  { %562 = vmatpush1.msra.mxu0 %v3423_v7 }
 0x1f5   :  { %563 = vmatprep.subr.mxu0 %v3432_v9 }
 0x1f6   :  { %564 = vmatpush1.msra.mxu0 %v3444_v12 }
 0x1f7   :  { %565 = vmatprep.subr.mxu0 %v3453_v14 }
 0x1f8   :  { %566 = vmatpush1.msra.mxu0 %v3459_v15 }
 0x1f9   :  { %567 = vmatprep.subr.mxu0 %v3466_v16 }
 0x1fa   :  { %568 = vmatpush1.msra.mxu0 %v3473_v17 }
 0x1fb   :  { %569 = vmatprep.subr.mxu0 %v3480_v18 }
 0x1fc   :  { %570 = vmatpush1.msra.mxu0 %v3487_v19 }
 0x1fd   :  { %571 = vmatprep.subr.mxu0 %v3494_v20 }
 0x1fe   :  { %572 = vmatpush1.msra.mxu0 %v3501_v21 }
 0x1ff   :  { %812 = vmatprep.subr.mxu0 %v3390_v0 }
 0x2af   :  { %v341_v56 = vpop.f32.mrf.mxu0 }
 0x2b0   :  { %v348_v57 = vrot.slane %v341_v56, 6 }
 0x2b1   :  { %v343_v60 = vpop.f32.mrf.mxu0 }
 0x2b2   :  { %v352_v58 = vadd.f32 %v348_v57, %v3548_v28  ;;  %v349_v61 = vrot.slane %v343_v60, 6 }
 0x2b4   :  { %v2760_v59 = vmul.f32 -1.442695, %v352_v58  ;;  %v353_v62 = vadd.f32 %v349_v61, %v3555_v36 }
 0x2b6   :  { %3151 = vpow2.f32 %v2760_v59  ;;  %v2761_v25 = vmul.f32 -1.442695, %v353_v62 }
 0x2b7   :  { %3153 = vtanh.f32 %v353_v62 }
 0x2c3   :  { %v3152_v63 = vpop.eup %3151 }
 0x2c4   :  { %v357_v6 = vadd.f32 1.0, %v3152_v63  ;;  %v3154_v8 = vpop.eup %3153 }
 0x2c6   :  { %3155 = vrcp.f32 %v357_v6 }
 0x2c7   :  { %3157 = vpow2.f32 %v2761_v25 }
 0x2d3   :  { %v3156_v11 = vpop.eup %3155 }
 0x2d4   :  { %v371_v13 = vmul.f32 %v3156_v11, %v3154_v8  ;;  %v370_v24 = vmul.f32 %v3156_v11, %v368_v10  ;;  %v3158_v27 = vpop.eup %3157 }
 0x2d5   :  { %v364_v29 = vadd.f32 1.0, %v3158_v27 }
 0x2d6   :  { %373 = vrot.lane.b32.xlu1 %v371_v13, %s3332_s3 }
 0x2d7   :  { %3159 = vrcp.f32 %v364_v29 }
 0x2e4   :  { %v3160_v32 = vpop.eup %3159 }
 0x348   :  { %v374_v30 = vpop.permute.xlu1 %373 }
 0x349   :  { %v376_v31 = vadd.f32 %v374_v30, %v370_v24 }
 0x34b   :  { %3161 = vtanh.f32 %v376_v31  ;;  %v501_v49 = vrot.slane %v376_v31, 6 }
 0x358   :  { %v3162_v34 = vpop.eup %3161 }
 0x359   :  { %v3592_v35 = vmul.f32 %v3162_v34, %v3160_v32 }
 0x35b   :  { %v403_v37 = vrot.slane %v3592_v35, 2 }
 0x35d   :  { %404 = vrot.lane.b32.xlu1 %v403_v37, %s3332_s3 }
 0x3cf   :  { %v405_v38 = vpop.permute.xlu1 %404 }
 0x3d0   :  { %2762 = vmatmul.mubr.msk.f32.vlgmr.msra.gmra.mxu1 %vm150_vm3, %v405_v38 }
 0x3d1   :  { %691 = vmatpush1.msra.mxu1 %v3395_v1  ;;  %738 = vmatprep.mubr.f32.mxu1 %v3331_v3 }
 0x3d2   :  { %692 = vmatprep.subr.mxu1 %v3400_v2 }
 0x3d3   :  { %693 = vmatpush1.msra.mxu1 %v3408_v4 }
 0x3d4   :  { %694 = vmatprep.subr.mxu1 %v3414_v5 }
 0x3d5   :  { %695 = vmatpush1.msra.mxu1 %v3423_v7 }
 0x3d6   :  { %696 = vmatprep.subr.mxu1 %v3432_v9 }
 0x3d7   :  { %697 = vmatpush1.msra.mxu1 %v3444_v12 }
 0x3d8   :  { %698 = vmatprep.subr.mxu1 %v3453_v14 }
 0x3d9   :  { %699 = vmatpush1.msra.mxu1 %v3459_v15 }
 0x3da   :  { %700 = vmatprep.subr.mxu1 %v3466_v16 }
 0x3db   :  { %701 = vmatpush1.msra.mxu1 %v3473_v17 }
 0x3dc   :  { %702 = vmatprep.subr.mxu1 %v3480_v18 }
 0x3dd   :  { %703 = vmatpush1.msra.mxu1 %v3487_v19 }
 0x3de   :  { %704 = vmatprep.subr.mxu1 %v3494_v20 }
 0x3df   :  { %705 = vmatpush1.msra.mxu1 %v3501_v21 }
 0x3e0   :  { %943 = vmatprep.subr.mxu1 %v3390_v0 }
 0x490   :  { %v474_v39 = vpop.f32.mrf.mxu1 }
 0x491   :  { %v481_v40 = vrot.slane %v474_v39, 4 }
 0x492   :  { %v476_v43 = vpop.f32.mrf.mxu1 }
 0x493   :  { %v485_v41 = vadd.f32 %v481_v40, %v3548_v28  ;;  %v482_v44 = vrot.slane %v476_v43, 4 }
 0x495   :  { %v2763_v42 = vmul.f32 -1.442695, %v485_v41  ;;  %v486_v45 = vadd.f32 %v482_v44, %v3555_v36 }
 0x497   :  { %3163 = vpow2.f32 %v2763_v42  ;;  %v2764_v53 = vmul.f32 -1.442695, %v486_v45 }
 0x498   :  { %3165 = vtanh.f32 %v486_v45 }
 0x4a4   :  { %v3164_v46 = vpop.eup %3163 }
 0x4a5   :  { %v490_v47 = vadd.f32 1.0, %v3164_v46  ;;  %v3166_v48 = vpop.eup %3165  ;;  %v3666_v46 = vadd.f32 %v3585_v54, %v3545_v26 }
 0x4a7   :  { %3167 = vrcp.f32 %v490_v47 }
 0x4a8   :  { %3169 = vpow2.f32 %v2764_v53 }
 0x4b4   :  { %v3168_v50 = vpop.eup %3167 }
 0x4b5   :  { %v504_v51 = vmul.f32 %v3168_v50, %v3166_v48  ;;  %v503_v52 = vmul.f32 %v3168_v50, %v501_v49  ;;  %v3170_v56 = vpop.eup %3169 }
 0x4b6   :  { %v497_v57 = vadd.f32 1.0, %v3170_v56 }
 0x4b7   :  { %506 = vrot.lane.b32.xlu0 %v504_v51, %s3332_s3  ;;  %v3671_v51 = vadd.f32 %v3587_v55, %v3552_v33 }
 0x4b8   :  { %3171 = vrcp.f32 %v497_v57 }
 0x4c5   :  { %v3172_v60 = vpop.eup %3171 }
 0x529   :  { %v507_v58 = vpop.permute.xlu0 %506 }
 0x52a   :  { %v509_v59 = vadd.f32 %v507_v58, %v503_v52 }
 0x52c   :  { %3173 = vtanh.f32 %v509_v59  ;;  %v634_v32 = vrot.slane %v509_v59, 6 }
 0x539   :  { %v3174_v61 = vpop.eup %3173 }
 0x53a   :  { %v3617_v62 = vmul.f32 %v3174_v61, %v3172_v60 }
 0x53c   :  { %v536_v63 = vrot.slane %v3617_v62, 4 }
 0x53e   :  { %537 = vrot.lane.b32.xlu1 %v536_v63, %s3332_s3 }
 0x5b0   :  { %v538_v6 = vpop.permute.xlu1 %537 }
 0x5b1   :  { %2765 = vmatmul.mubr.msk.f32.vlgmr.msra.gmra.mxu0 %vm150_vm3, %v538_v6 }
 0x5b2   :  { %813 = vmatpush1.msra.mxu0 %v3395_v1  ;;  %860 = vmatprep.mubr.f32.mxu0 %v3331_v3 }
 0x5b3   :  { %814 = vmatprep.subr.mxu0 %v3400_v2 }
 0x5b4   :  { %815 = vmatpush1.msra.mxu0 %v3408_v4 }
 0x5b5   :  { %816 = vmatprep.subr.mxu0 %v3414_v5 }
 0x5b6   :  { %817 = vmatpush1.msra.mxu0 %v3423_v7 }
 0x5b7   :  { %818 = vmatprep.subr.mxu0 %v3432_v9 }
 0x5b8   :  { %819 = vmatpush1.msra.mxu0 %v3444_v12 }
 0x5b9   :  { %820 = vmatprep.subr.mxu0 %v3453_v14 }
 0x5ba   :  { %821 = vmatpush1.msra.mxu0 %v3459_v15 }
 0x5bb   :  { %822 = vmatprep.subr.mxu0 %v3466_v16 }
 0x5bc   :  { %823 = vmatpush1.msra.mxu0 %v3473_v17 }
 0x5bd   :  { %824 = vmatprep.subr.mxu0 %v3480_v18 }
 0x5be   :  { %825 = vmatpush1.msra.mxu0 %v3487_v19 }
 0x5bf   :  { %826 = vmatprep.subr.mxu0 %v3494_v20 }
 0x5c0   :  { %827 = vmatpush1.msra.mxu0 %v3501_v21 }
 0x5c1   :  { %1074 = vmatprep.subr.mxu0 %v3390_v0 }
 0x671   :  { %v607_v8 = vpop.f32.mrf.mxu0 }
 0x672   :  { %v614_v10 = vrot.slane %v607_v8, 2 }
 0x673   :  { %v609_v24 = vpop.f32.mrf.mxu0 }
 0x674   :  { %v618_v11 = vadd.f32 %v614_v10, %v3548_v28  ;;  %v615_v25 = vrot.slane %v609_v24, 2 }
 0x676   :  { %v2766_v13 = vmul.f32 -1.442695, %v618_v11  ;;  %v619_v27 = vadd.f32 %v615_v25, %v3555_v36 }
 0x678   :  { %3175 = vpow2.f32 %v2766_v13  ;;  %v2767_v0 = vmul.f32 -1.442695, %v619_v27 }
 0x679   :  { %3177 = vtanh.f32 %v619_v27 }
 0x685   :  { %v3176_v29 = vpop.eup %3175 }
 0x686   :  { %v623_v30 = vadd.f32 1.0, %v3176_v29  ;;  %v3178_v31 = vpop.eup %3177 }
 0x688   :  { %3179 = vrcp.f32 %v623_v30 }
 0x689   :  { %3181 = vpow2.f32 %v2767_v0 }
 0x695   :  { %v3180_v34 = vpop.eup %3179 }
 0x696   :  { %v637_v37 = vmul.f32 %v3180_v34, %v3178_v31  ;;  %v636_v38 = vmul.f32 %v3180_v34, %v634_v32  ;;  %v3182_v28 = vpop.eup %3181 }
 0x697   :  { %v630_v39 = vadd.f32 1.0, %v3182_v28 }
 0x698   :  { %639 = vrot.lane.b32.xlu0 %v637_v37, %s3332_s3 }
 0x699   :  { %3183 = vrcp.f32 %v630_v39 }
 0x6a6   :  { %v3184_v36 = vpop.eup %3183 }
 0x70a   :  { %v640_v40 = vpop.permute.xlu0 %639 }
 0x70b   :  { %v642_v41 = vadd.f32 %v640_v40, %v636_v38 }
 0x70d   :  { %3185 = vtanh.f32 %v642_v41  ;;  %v761_v58 = vrot.slane %v642_v41, 6 }
 0x71a   :  { %v3186_v42 = vpop.eup %3185 }
 0x71b   :  { %v3642_v43 = vmul.f32 %v3186_v42, %v3184_v36 }
 0x71d   :  { %v669_v44 = vrot.slane %v3642_v43, 6 }
 0x71f   :  { %670 = vrot.lane.b32.xlu1 %v669_v44, %s3332_s3 }
 0x791   :  { %v671_v45 = vpop.permute.xlu1 %670 }
 0x792   :  { %2768 = vmatmul.mubr.msk.f32.vlgmr.msra.gmra.mxu1 %vm150_vm3, %v671_v45 }
 0x793   :  { %944 = vmatpush1.msra.mxu1 %v3395_v1  ;;  %991 = vmatprep.mubr.f32.mxu1 %v3331_v3 }
 0x794   :  { %945 = vmatprep.subr.mxu1 %v3400_v2 }
 0x795   :  { %946 = vmatpush1.msra.mxu1 %v3408_v4 }
 0x796   :  { %947 = vmatprep.subr.mxu1 %v3414_v5 }
 0x797   :  { %948 = vmatpush1.msra.mxu1 %v3423_v7 }
 0x798   :  { %949 = vmatprep.subr.mxu1 %v3432_v9 }
 0x799   :  { %950 = vmatpush1.msra.mxu1 %v3444_v12 }
 0x79a   :  { %951 = vmatprep.subr.mxu1 %v3453_v14 }
 0x79b   :  { %952 = vmatpush1.msra.mxu1 %v3459_v15 }
 0x79c   :  { %953 = vmatprep.subr.mxu1 %v3466_v16 }
 0x79d   :  { %954 = vmatpush1.msra.mxu1 %v3473_v17 }
 0x79e   :  { %955 = vmatprep.subr.mxu1 %v3480_v18 }
 0x79f   :  { %956 = vmatpush1.msra.mxu1 %v3487_v19 }
 0x7a0   :  { %957 = vmatprep.subr.mxu1 %v3494_v20 }
 0x7a1   :  { %958 = vmatpush1.msra.mxu1 %v3501_v21 }
 0x7a2   :  { %2930 = vmatprep.subr.mxu1 %v3331_v3 }
 0x852   :  { %v740_v47 = vpop.f32.mrf.mxu1 }
 0x853   :  { %v745_v48 = vadd.f32 %v740_v47, %v3666_v46 }
 0x854   :  { %v742_v50 = vpop.f32.mrf.mxu1 }
 0x855   :  { %v2769_v49 = vmul.f32 -1.442695, %v745_v48  ;;  %v746_v52 = vadd.f32 %v742_v50, %v3671_v51 }
 0x857   :  { %3187 = vpow2.f32 %v2769_v49  ;;  %v2770_v60 = vmul.f32 -1.442695, %v746_v52 }
 0x858   :  { %3189 = vtanh.f32 %v746_v52 }
 0x864   :  { %v3188_v53 = vpop.eup %3187 }
 0x865   :  { %v750_v56 = vadd.f32 1.0, %v3188_v53  ;;  %v3190_v57 = vpop.eup %3189 }
 0x867   :  { %3191 = vrcp.f32 %v750_v56 }
 0x868   :  { %3193 = vpow2.f32 %v2770_v60 }
 0x874   :  { %v3192_v26 = vpop.eup %3191 }
 0x875   :  { %v764_v54 = vmul.f32 %v3192_v26, %v3190_v57  ;;  %v763_v59 = vmul.f32 %v3192_v26, %v761_v58  ;;  %v3194_v61 = vpop.eup %3193 }
 0x876   :  { %v757_v63 = vadd.f32 1.0, %v3194_v61 }
 0x877   :  { %766 = vrot.lane.b32.xlu0 %v764_v54, %s3332_s3 }
 0x878   :  { %3195 = vrcp.f32 %v757_v63 }
 0x885   :  { %v3196_v55 = vpop.eup %3195 }
 0x8e9   :  { %v767_v6 = vpop.permute.xlu0 %766 }
 0x8ea   :  { %v769_v33 = vadd.f32 %v767_v6, %v763_v59 }
 0x8ec   :  { %3197 = vtanh.f32 %v769_v33 }
 0x8f9   :  { %v3198_v8 = vpop.eup %3197 }
 0x8fa   :  { %v771_v10 = vmul.f32 %v3198_v8, %v3196_v55 }
 0x8fc   :  { %773 = vrot.lane.b32.xlu1 %v771_v10, %s3332_s3 }
 0x96e   :  { %v774_v11 = vpop.permute.xlu1 %773 }
 0x96f   :  { %776 = vst.msk [vmem:[#allocation2 + $0x4] sm:$0x1] %vm253_vm1, %v774_v11  ;;  %2771 = vmatmul.mubr.msk.f32.vlgmr.msra.gmra.mxu0 %vm150_vm3, %v774_v11 }
 0x970   :  { %777 = vst.msk [vmem:[#allocation2 + $0xb] sm:$0x2] %vm255_vm2, %v774_v11  ;;  %1075 = vmatpush1.msra.mxu0 %v3395_v1  ;;  %1122 = vmatprep.mubr.f32.mxu0 %v3331_v3 }
 0x971   :  { %1076 = vmatprep.subr.mxu0 %v3400_v2 }
 0x972   :  { %1077 = vmatpush1.msra.mxu0 %v3408_v4 }
 0x973   :  { %1078 = vmatprep.subr.mxu0 %v3414_v5 }
 0x974   :  { %1079 = vmatpush1.msra.mxu0 %v3423_v7 }
 0x975   :  { %1080 = vmatprep.subr.mxu0 %v3432_v9 }
 0x976   :  { %1081 = vmatpush1.msra.mxu0 %v3444_v12 }
 0x977   :  { %1082 = vmatprep.subr.mxu0 %v3453_v14 }
 0x978   :  { %1083 = vmatpush1.msra.mxu0 %v3459_v15 }
 0x979   :  { %1084 = vmatprep.subr.mxu0 %v3466_v16 }
 0x97a   :  { %1085 = vmatpush1.msra.mxu0 %v3473_v17  ;;  %v889_v17 = vrot.slane %v769_v33, 6 }
 0x97b   :  { %1086 = vmatprep.subr.mxu0 %v3480_v18 }
 0x97c   :  { %1087 = vmatpush1.msra.mxu0 %v3487_v19 }
 0x97d   :  { %1088 = vmatprep.subr.mxu0 %v3494_v20 }
 0x97e   :  { %1089 = vmatpush1.msra.mxu0 %v3501_v21 }
 0x97f   :  { %2949 = vmatprep.subr.mxu0 %v3331_v3 }
 0xa2f   :  { %v862_v1 = vpop.f32.mrf.mxu0 }
 0xa30   :  { %v869_v2 = vrot.slane %v862_v1, 6 }
 0xa31   :  { %v864_v7 = vpop.f32.mrf.mxu0 }
 0xa32   :  { %v873_v4 = vadd.f32 %v869_v2, %v3666_v46  ;;  %v870_v9 = vrot.slane %v864_v7, 6 }
 0xa34   :  { %v2772_v5 = vmul.f32 -1.442695, %v873_v4  ;;  %v874_v12 = vadd.f32 %v870_v9, %v3671_v51 }
 0xa36   :  { %3199 = vpow2.f32 %v2772_v5  ;;  %v2773_v21 = vmul.f32 -1.442695, %v874_v12 }
 0xa37   :  { %3201 = vtanh.f32 %v874_v12 }
 0xa43   :  { %v3200_v14 = vpop.eup %3199 }
 0xa44   :  { %v878_v15 = vadd.f32 1.0, %v3200_v14  ;;  %v3202_v16 = vpop.eup %3201  ;;  %v3724_v14 = vand.u32 127, %v40_v22 }
 0xa46   :  { %3203 = vrcp.f32 %v878_v15  ;;  %v3735_v15 = vadd.s32 48, %v3539_v23 }
 0xa47   :  { %3205 = vpow2.f32 %v2773_v21 }
 0xa53   :  { %v3204_v18 = vpop.eup %3203 }
 0xa54   :  { %v892_v19 = vmul.f32 %v3204_v18, %v3202_v16  ;;  %v891_v20 = vmul.f32 %v3204_v18, %v889_v17  ;;  %v3206_v13 = vpop.eup %3205  ;;  %v3738_v16 = vadd.s32 40, %v3539_v23  ;;  %v3741_v17 = vadd.s32 32, %v3539_v23 }
 0xa55   :  { %v885_v24 = vadd.f32 1.0, %v3206_v13  ;;  %v3333_v18 = vmov 1.0  }
 0xa56   :  { %894 = vrot.lane.b32.xlu0 %v892_v19, %s3332_s3  ;;  %v3760_v19 = vadd.s32 1, %v3738_v16 }
 0xa57   :  { %3207 = vrcp.f32 %v885_v24 }
 0xa58   :  { %vm1192_vm15 = vcmp.eq.s32.totalorder %v3760_v19, %v3724_v14 }
 0xa64   :  { %v3208_v29 = vpop.eup %3207 }
 0xac8   :  { %v895_v25 = vpop.permute.xlu0 %894 }
 0xac9   :  { %v897_v27 = vadd.f32 %v895_v25, %v891_v20  ;;  %v3770_v20 = vadd.s32 1, %v3741_v17 }
 0xacb   :  { %3209 = vtanh.f32 %v897_v27  ;;  %v1020_v45 = vrot.slane %v897_v27, 6  ;;  %vm1191_vm1 = vcmp.eq.s32.totalorder %v3770_v20, %v3724_v14 }
 0xad8   :  { %v3210_v30 = vpop.eup %3209 }
 0xad9   :  { %v3699_v31 = vmul.f32 %v3210_v30, %v3208_v29  ;;  %v3814_v29 = vadd.s32 24, %v3539_v23 }
 0xadb   :  { %v922_v32 = vrot.slane %v3699_v31, 2 }
 0xadd   :  { %923 = vrot.lane.b32.xlu1 %v922_v32, %s3332_s3  ;;  %v3820_v32 = vadd.s32 16, %v3539_v23 }
 0xb4f   :  { %v924_v34 = vpop.permute.xlu1 %923 }
 0xb50   :  { %2774 = vmatmul.mubr.msk.f32.vlgmr.msra.gmra.mxu1 %vm150_vm3, %v924_v34  ;;  %v3825_v34 = vadd.s32 8, %v3539_v23 }
 0xc10   :  { %v993_v37 = vpop.f32.mrf.mxu1 }
 0xc11   :  { %v1000_v38 = vrot.slane %v993_v37, 4  ;;  %v1181_v37 = vadd.s32 1, %v3820_v32 }
 0xc12   :  { %v995_v39 = vpop.f32.mrf.mxu1 }
 0xc13   :  { %v1004_v0 = vadd.f32 %v1000_v38, %v3666_v46  ;;  %v1001_v40 = vrot.slane %v995_v39, 4  ;;  %v1179_v38 = vadd.s32 1, %v3539_v23 }
 0xc15   :  { %v2775_v28 = vmul.f32 -1.442695, %v1004_v0  ;;  %v1005_v41 = vadd.f32 %v1001_v40, %v3671_v51 }
 0xc17   :  { %3211 = vpow2.f32 %v2775_v28  ;;  %v2776_v50 = vmul.f32 -1.442695, %v1005_v41  ;;  %v1180_v28 = vadd.s32 1, %v3825_v34 }
 0xc18   :  { %3213 = vtanh.f32 %v1005_v41 }
 0xc24   :  { %v3212_v36 = vpop.eup %3211 }
 0xc25   :  { %v1009_v42 = vadd.f32 1.0, %v3212_v36  ;;  %v3214_v44 = vpop.eup %3213 }
 0xc27   :  { %3215 = vrcp.f32 %v1009_v42 }
 0xc28   :  { %3217 = vpow2.f32 %v2776_v50 }
 0xc34   :  { %v3216_v47 = vpop.eup %3215 }
 0xc35   :  { %v1023_v48 = vmul.f32 %v3216_v47, %v3214_v44  ;;  %v1022_v49 = vmul.f32 %v3216_v47, %v1020_v45  ;;  %v3218_v52 = vpop.eup %3217  ;;  %v3335_v45 = vmov 0   ;;  %v1221_v47 = vld [vmem:[%s4294_s5] sm:$0xff] }
 0xc36   :  { %v1016_v53 = vadd.f32 1.0, %v3218_v52  ;;  %3137 = vset.pattern.permute.xlu1 %v3335_v45  ;;  %3138 = vset.pattern.permute.xlu0 %v3335_v45 }
 0xc37   :  { %1025 = vrot.lane.b32.xlu0 %v1023_v48, %s3332_s3 }
 0xc38   :  { %3219 = vrcp.f32 %v1016_v53  ;;  %v1220_v53 = vld [vmem:[%s4295_s4] sm:$0xff] }
 0xc45   :  { %v3220_v58 = vpop.eup %3219 }
 0xca9   :  { %v1026_v56 = vpop.permute.xlu0 %1025 }
 0xcaa   :  { %v1028_v57 = vadd.f32 %v1026_v56, %v1022_v49 }
 0xcac   :  { %3221 = vtanh.f32 %v1028_v57  ;;  %v1151_v5 = vrot.slane %v1028_v57, 6 }
 0xcb9   :  { %v3222_v26 = vpop.eup %3221 }
 0xcba   :  { %v1030_v54 = vmul.f32 %v3222_v26, %v3220_v58  ;;  %v1668_v58 = vld [vmem:[%s4296_s6 + $0x38] sm:$0xff]  ;;  %v1667_v26 = vld [vmem:[%s4296_s6 + $0x30] sm:$0xff] }
 0xcbc   :  { %v1053_v59 = vrot.slane %v1030_v54, 4 }
 0xcbe   :  { %1054 = vrot.lane.b32.xlu1 %v1053_v59, %s3332_s3  ;;  %v1664_v59 = vld [vmem:[%s4296_s6 + $0x18] sm:$0xff] }
 0xcc2   :  { %380 = vrot.lane.b32.xlu1 %v3592_v35, %s3332_s3 }
 0xcc6   :  { %646 = vrot.lane.b32.xlu1 %v3642_v43, %s3332_s3 }
 0xcca   :  { %1032 = vrot.lane.b32.xlu1 %v1030_v54, %s3332_s3  ;;  %v1666_v54 = vld [vmem:[%s4296_s6 + $0x28] sm:$0xff] }
 0xcce   :  { %1368 = vperm.xlu1 %3137, %v1221_v47  }
 0xd30   :  { %v1055_v60 = vpop.permute.xlu1 %1054 }
 0xd31   :  { %2777 = vmatmul.mubr.msk.f32.vlgmr.msra.gmra.mxu0 %vm150_vm3, %v1055_v60  ;;  %v1663_v60 = vld [vmem:[%s4296_s6 + $0x10] sm:$0xff] }
 0xd34   :  { %v381_v61 = vpop.permute.xlu1 %380 }
 0xd35   :  { %384 = vst.msk [vmem:[#allocation2 - $0x1] sm:$0x4] %vm383_vm4, %v381_v61 }
 0xd36   :  { %386 = vst.msk [vmem:[#allocation2 + $0x6] sm:$0x8] %vm385_vm5, %v381_v61 }
 0xd38   :  { %v647_v63 = vpop.permute.xlu1 %646 }
 0xd39   :  { %650 = vst.msk [vmem:[#allocation2 - $0x3] sm:$0x40] %vm649_vm6, %v647_v63 }
 0xd3a   :  { %652 = vst.msk [vmem:[#allocation2 + $0x4] sm:$0x80] %vm651_vm7, %v647_v63 }
 0xd3c   :  { %v1033_v35 = vpop.permute.xlu1 %1032 }
 0xd3d   :  { %1035 = vst.msk [vmem:[#allocation2 + $0x2] sm:$0x10] %vm516_vm8, %v1033_v35 }
 0xd3e   :  { %1036 = vst.msk [vmem:[#allocation2 + $0x9] sm:$0x20] %vm518_vm9, %v1033_v35 }
 0xd49   :  { %v1369_v61 = vpop.permute.xlu1 %1368 }
 0xdf1   :  { %v1124_v43 = vpop.f32.mrf.mxu0 }
 0xdf2   :  { %v1131_v6 = vrot.slane %v1124_v43, 2 }
 0xdf3   :  { %v1126_v8 = vpop.f32.mrf.mxu0 }
 0xdf4   :  { %v1135_v33 = vadd.f32 %v1131_v6, %v3666_v46  ;;  %v1132_v10 = vrot.slane %v1126_v8, 2  ;;  %v3729_v46 = vadd.s32 56, %v3539_v23  ;;  %v1662_v8 = vld [vmem:[%s4296_s6 + $0x8] sm:$0xff] }
 0xdf6   :  { %v2778_v55 = vmul.f32 -1.442695, %v1135_v33  ;;  %v1136_v11 = vadd.f32 %v1132_v10, %v3671_v51  ;;  %v3732_v51 = vadd.s32 1, %v3724_v14  ;;  %v3746_v22 = vadd.s32 1, %v3729_v46  ;;  %v4018_v10 = vld [vmem:[%s4297_s7 + $0x18] sm:$0xff] }
 0xdf8   :  { %3223 = vpow2.f32 %v2778_v55  ;;  %vm1211_vm10 = vcmp.eq.s32.totalorder %v3729_v46, %v3732_v51  ;;  %vm1210_vm11 = vcmp.eq.s32.totalorder %v3735_v15, %v3732_v51  ;;  %vm1194_vm12 = vcmp.eq.s32.totalorder %v3746_v22, %v3724_v14 }
 0xdf9   :  { %3225 = vtanh.f32 %v1136_v11  ;;  %2950 = vmatpush3.msk.msra.mxu0 %vm1211_vm10, %v3333_v18  ;;  %vm4302_vm14 = vcmp.eq.s32.totalorder %v3738_v16, %v3732_v51  ;;  %2931 = vmatpush3.msk.msra.mxu1 %vm1194_vm12, %v3333_v18  ;;  %vm4300_vm0 = vcmp.eq.s32.totalorder %v3741_v17, %v3732_v51  ;;  %v2779_v21 = vmul.f32 -1.442695, %v1136_v11  ;;  %v1661_v11 = vld [vmem:[%s4296_s6] sm:$0xff] }
 0xdfa   :  { %2951 = vmatprep.subr.mxu0 %v3331_v3  ;;  %2932 = vmatprep.subr.mxu1 %v3331_v3  ;;  %vm4301_vm2 = vcmp.eq.s32.totalorder %v3814_v29, %v3732_v51 }
 0xdfb   :  { %2952 = vmatpush3.msk.msra.mxu0 %vm1210_vm11, %v3333_v18 }
 0xdfc   :  { %2953 = vmatprep.subr.mxu0 %v3331_v3 }
 0xdfd   :  { %2954 = vmatpush3.msk.msra.mxu0 %vm4302_vm14, %v3333_v18  ;;  %vm1188_vm14 = vcmp.eq.s32.totalorder %v1180_v28, %v3724_v14 }
 0xdfe   :  { %2955 = vmatprep.subr.mxu0 %v3331_v3 }
 0xdff   :  { %2956 = vmatpush3.msk.msra.mxu0 %vm4300_vm0, %v3333_v18  ;;  %vm4303_vm0 = vcmp.eq.s32.totalorder %v3825_v34, %v3732_v51 }
 0xe00   :  { %2957 = vmatprep.subr.mxu0 %v3331_v3 }
 0xe01   :  { %2958 = vmatpush3.msk.msra.mxu0 %vm4301_vm2, %v3333_v18  ;;  %vm1189_vm2 = vcmp.eq.s32.totalorder %v1181_v37, %v3724_v14 }
 0xe02   :  { %2959 = vmatprep.subr.mxu0 %v3331_v3 }
 0xe05   :  { %v3224_v1 = vpop.eup %3223 }
 0xe06   :  { %v1140_v2 = vadd.f32 1.0, %v3224_v1  ;;  %v3226_v4 = vpop.eup %3225  ;;  %v4028_v1 = vld [vmem:[%s4297_s7 + $0x10] sm:$0xff] }
 0xe08   :  { %3227 = vrcp.f32 %v1140_v2  ;;  %v4035_v2 = vld [vmem:[%s4297_s7 + $0x8] sm:$0xff] }
 0xe09   :  { %3229 = vpow2.f32 %v2779_v21 }
 0xe15   :  { %v3228_v7 = vpop.eup %3227 }
 0xe16   :  { %v1154_v9 = vmul.f32 %v3228_v7, %v3226_v4  ;;  %v1153_v12 = vmul.f32 %v3228_v7, %v1151_v5  ;;  %v3230_v13 = vpop.eup %3229  ;;  %v4040_v4 = vld [vmem:[%s4297_s7] sm:$0xff] }
 0xe17   :  { %v1147_v24 = vadd.f32 1.0, %v3230_v13 }
 0xe18   :  { %1156 = vrot.lane.b32.xlu0 %v1154_v9, %s3332_s3 }
 0xe19   :  { %3231 = vrcp.f32 %v1147_v24 }
 0xe1c   :  { %513 = vrot.lane.b32.xlu0 %v3617_v62, %s3332_s3  ;;  %v3751_v62 = vadd.s32 1, %v3735_v15  ;;  %v2818_v15 = vld [vmem:[%s4298_s8] ss:$0 sm:$0xff]  ;;  %s3336_s8 = smov 32  }
 0xe1e   :  { %vm1193_vm13 = vcmp.eq.s32.totalorder %v3751_v62, %v3724_v14 }
 0xe1f   :  { %2933 = vmatpush3.msk.msra.mxu1 %vm1193_vm13, %v3333_v18 }
 0xe20   :  { %901 = vrot.lane.b32.xlu0 %v3699_v31, %s3332_s3  ;;  %2934 = vmatprep.subr.mxu1 %v3331_v3  ;;  %v1182_v31 = vadd.s32 1, %v3814_v29 }
 0xe21   :  { %2935 = vmatpush3.msk.msra.mxu1 %vm1192_vm15, %v3333_v18 }
 0xe22   :  { %2936 = vmatprep.subr.mxu1 %v3331_v3 }
 0xe23   :  { %2937 = vmatpush3.msk.msra.mxu1 %vm1191_vm1, %v3333_v18 }
 0xe24   :  { %2938 = vmatprep.subr.mxu1 %v3331_v3 }
 0xe26   :  { %v3232_v39 = vpop.eup %3231 }
 0xe8a   :  { %v1157_v25 = vpop.permute.xlu0 %1156 }
 0xe8b   :  { %v1159_v27 = vadd.f32 %v1157_v25, %v1153_v12 }
 0xe8d   :  { %3233 = vtanh.f32 %v1159_v27 }
 0xe8e   :  { %v514_v30 = vpop.permute.xlu0 %513 }
 0xe8f   :  { %517 = vst.msk [vmem:[#allocation2 - $0x2] sm:$0x10] %vm516_vm8, %v514_v30  ;;  %vm1190_vm8 = vcmp.eq.s32.totalorder %v1182_v31, %v3724_v14 }
 0xe90   :  { %519 = vst.msk [vmem:[#allocation2 + $0x5] sm:$0x20] %vm518_vm9, %v514_v30  ;;  %vm1206_vm9 = vcmp.eq.s32.totalorder %v3820_v32, %v3732_v51  ;;  %2939 = vmatpush3.msk.msra.mxu1 %vm1190_vm8, %v3333_v18 }
 0xe91   :  { %2940 = vmatprep.subr.mxu1 %v3331_v3  ;;  %2960 = vmatpush3.msk.msra.mxu0 %vm1206_vm9, %v3333_v18 }
 0xe92   :  { %v902_v0 = vpop.permute.xlu0 %901  ;;  %2941 = vmatpush3.msk.msra.mxu1 %vm1189_vm2, %v3333_v18  ;;  %2961 = vmatprep.subr.mxu0 %v3331_v3 }
 0xe93   :  { %904 = vst.msk [vmem:[#allocation2 + $0x3] sm:$0x4] %vm383_vm4, %v902_v0  ;;  %vm1204_vm4 = vcmp.eq.s32.totalorder %v3539_v23, %v3732_v51  ;;  %2942 = vmatprep.subr.mxu1 %v3331_v3  ;;  %2962 = vmatpush3.msk.msra.mxu0 %vm4303_vm0, %v3333_v18  ;;  %vm3334_vm0 = vmmov 0   ;;  %v1665_v23 = vld [vmem:[%s4296_s6 + $0x20] sm:$0xff] }
 0xe94   :  { %905 = vst.msk [vmem:[#allocation2 + $0xa] sm:$0x8] %vm385_vm5, %v902_v0  ;;  %vm1187_vm5 = vcmp.eq.s32.totalorder %v1179_v38, %v3724_v14  ;;  %2943 = vmatpush3.msk.msra.mxu1 %vm1188_vm14, %v3333_v18  ;;  %2963 = vmatprep.subr.mxu0 %v3331_v3 }
 0xe95   :  { %2944 = vmatprep.subr.mxu1 %v3331_v3  ;;  %2964 = vmatpush3.msk.msra.mxu0 %vm1204_vm4, %v3333_v18 }
 0xe96   :  { %2945 = vmatpush3.msk.msra.mxu1 %vm1187_vm5, %v3333_v18  ;;  %2946 = vmatprep.mubr.msk.f32.mxu1 %vm3334_vm0, %v3331_v3 }
 0xe97   :  { %2965 = vmatprep.mubr.msk.f32.mxu0 %vm3334_vm0, %v3331_v3  ;;  %2977 = vmatprep.subr.mxu0 %v3331_v3 }
 0xe98   :  { %2968 = vmatprep.subr.mxu1 %v3331_v3 }
 0xe9a   :  { %v3234_v40 = vpop.eup %3233 }
 0xe9b   :  { %v1161_v41 = vmul.f32 %v3234_v40, %v3232_v39 }
 0xe9d   :  { %1163 = vrot.lane.b32.xlu0 %v1161_v41, %s3332_s3 }
 0xf0f   :  { %v1164_v36 = vpop.permute.xlu0 %1163 }
 0xf10   :  { %1166 = vst.msk [vmem:[#allocation2 + $0x1] sm:$0x40] %vm649_vm6, %v1164_v36  ;;  %vm1371_vm6 = vcmask 195584  }
 0xf11   :  { %1167 = vst.msk [vmem:[#allocation2 + $0x8] sm:$0x80] %vm651_vm7, %v1164_v36  ;;  %vm4304_vm7 = vcmp.eq.s32.totalorder %v3738_v16, %v3732_v51 }
 0xf17   :  { %v1222_v42 = vld [vmem:[#allocation2] sm:$0xff] }
 0xf18   :  { %2947 = vmatmul.mubr.msk.f32.vlgmr.msra.gmra.mxu1 %vm150_vm3, %v1222_v42  ;;  %2966 = vmatmul.mubr.msk.f32.vlgmr.msra.gmra.mxu0 %vm150_vm3, %v1222_v42  ;;  %v3926_v44 = vld [vmem:[#allocation2 + $0x8] sm:$0xff] }
 0xf19   :  { %2978 = vmatpush3.msk.msra.mxu0 %vm1194_vm12, %v3333_v18  ;;  %2993 = vmatprep.mubr.msk.f32.mxu0 %vm3334_vm0, %v3331_v3  ;;  %vm4307_vm12 = vcmp.eq.s32.totalorder %v3825_v34, %v3732_v51 }
 0xf1a   :  { %2979 = vmatprep.subr.mxu0 %v3331_v3  ;;  %2974 = vmatprep.mubr.msk.f32.mxu1 %vm3334_vm0, %v3331_v3 }
 0xf1b   :  { %2980 = vmatpush3.msk.msra.mxu0 %vm1193_vm13, %v3333_v18  ;;  %vm1766_vm13 = vcmask 261120  }
 0xf1c   :  { %2981 = vmatprep.subr.mxu0 %v3331_v3 }
 0xf1d   :  { %2982 = vmatpush3.msk.msra.mxu0 %vm1192_vm15, %v3333_v18  ;;  %vm1870_vm15 = vcmask 254976  }
 0xf1e   :  { %2983 = vmatprep.subr.mxu0 %v3331_v3 }
 0xf1f   :  { %2984 = vmatpush3.msk.msra.mxu0 %vm1191_vm1, %v3333_v18 }
 0xf20   :  { %2985 = vmatprep.subr.mxu0 %v3331_v3 }
 0xf21   :  { %2986 = vmatpush3.msk.msra.mxu0 %vm1190_vm8, %v3333_v18 }
 0xf22   :  { %2987 = vmatprep.subr.mxu0 %v3331_v3 }
 0xf23   :  { %2988 = vmatpush3.msk.msra.mxu0 %vm1189_vm2, %v3333_v18 }
 0xf24   :  { %2989 = vmatprep.subr.mxu0 %v3331_v3 }
 0xf25   :  { %2990 = vmatpush3.msk.msra.mxu0 %vm1188_vm14, %v3333_v18  ;;  %vm1864_vm14 = vcmp.lt.s32.totalorder %v3724_v14, 3 }
 0xf26   :  { %2991 = vmatprep.subr.mxu0 %v3331_v3 }
 0xf27   :  { %2992 = vmatpush3.msk.msra.mxu0 %vm1187_vm5, %v3333_v18 }
 0xf28   :  { %2994 = vmatmul.mubr.msk.f32.vlgmr.msra.gmra.mxu0 %vm150_vm3, %v3926_v44  ;;  %3015 = vmatprep.subr.mxu0 %v3331_v3 }
 0xf29   :  { %3021 = vmatprep.mubr.msk.f32.mxu0 %vm3334_vm0, %v3331_v3 }
 0xfd8   :  { %v1292_v48 = vpop.f32.mrf.mxu1  ;;  %v1362_v49 = vpop.f32.mrf.mxu0 }
 0xfd9   :  { %2969 = vmatpush3.msra.mxu1 %v1362_v49 }
 0xfda   :  { %v2948_v50 = vpop.f32.mrf.mxu1  ;;  %v2967_v52 = vpop.f32.mrf.mxu0  ;;  %2970 = vmatprep.subr.mxu1 %v3331_v3 }
 0xfdb   :  { %2971 = vmatpush3.msra.mxu1 %v1222_v42 }
 0xfdc   :  { %2972 = vmatprep.subr.mxu1 %v3331_v3 }
 0xfdd   :  { %2973 = vmatpush3.msra.mxu1 %v1292_v48 }
 0xfde   :  { %2975 = vmatmul.mubr.msk.f32.vlgmr.msra.gmra.mxu1 %vm1371_vm6, %v1220_v53  ;;  %2996 = vmatprep.subr.mxu1 %v3331_v3 }
 0xfdf   :  { %2997 = vmatpush3.msk.msra.mxu1 %vm1211_vm10, %v3333_v18  ;;  %3012 = vmatprep.mubr.msk.f32.mxu1 %vm3334_vm0, %v3331_v3  ;;  %vm4305_vm10 = vcmp.eq.s32.totalorder %v3741_v17, %v3732_v51 }
 0xfe0   :  { %2998 = vmatprep.subr.mxu1 %v3331_v3 }
 0xfe1   :  { %2999 = vmatpush3.msk.msra.mxu1 %vm1210_vm11, %v3333_v18  ;;  %vm4306_vm11 = vcmp.eq.s32.totalorder %v3814_v29, %v3732_v51 }
 0xfe2   :  { %3000 = vmatprep.subr.mxu1 %v3331_v3 }
 0xfe3   :  { %3001 = vmatpush3.msk.msra.mxu1 %vm4304_vm7, %v3333_v18 }
 0xfe4   :  { %3002 = vmatprep.subr.mxu1 %v3331_v3 }
 0xfe5   :  { %3003 = vmatpush3.msk.msra.mxu1 %vm4305_vm10, %v3333_v18 }
 0xfe6   :  { %3004 = vmatprep.subr.mxu1 %v3331_v3 }
 0xfe7   :  { %3005 = vmatpush3.msk.msra.mxu1 %vm4306_vm11, %v3333_v18 }
 0xfe8   :  { %v1516_v56 = vpop.f32.mrf.mxu0  ;;  %3006 = vmatprep.subr.mxu1 %v3331_v3 }
 0xfe9   :  { %3007 = vmatpush3.msk.msra.mxu1 %vm1206_vm9, %v3333_v18 }
 0xfea   :  { %v2995_v57 = vpop.f32.mrf.mxu0  ;;  %3008 = vmatprep.subr.mxu1 %v3331_v3 }
 0xfeb   :  { %3009 = vmatpush3.msk.msra.mxu1 %vm4307_vm12, %v3333_v18 }
 0xfec   :  { %3010 = vmatprep.subr.mxu1 %v3331_v3 }
 0xfed   :  { %3011 = vmatpush3.msk.msra.mxu1 %vm1204_vm4, %v3333_v18 }
 0xfee   :  { %3013 = vmatmul.mubr.msk.f32.vlgmr.msra.gmra.mxu1 %vm150_vm3, %v3926_v44  ;;  %3024 = vmatprep.subr.mxu1 %v1668_v58 }
 0xfef   :  { %3025 = vmatpush3.msra.mxu1 %v1668_v58 }
 0xff0   :  { %3026 = vmatprep.subr.mxu1 %v1667_v26 }
 0xff1   :  { %3027 = vmatpush3.msra.mxu1 %v1667_v26 }
 0xff2   :  { %3028 = vmatprep.subr.mxu1 %v1666_v54 }
 0xff3   :  { %3029 = vmatpush3.msra.mxu1 %v1666_v54 }
 0xff4   :  { %3030 = vmatprep.subr.mxu1 %v1665_v23 }
 0xff5   :  { %3031 = vmatpush3.msra.mxu1 %v1665_v23 }
 0xff6   :  { %3032 = vmatprep.subr.mxu1 %v1664_v59 }
 0xff7   :  { %3033 = vmatpush3.msra.mxu1 %v1664_v59 }
 0xff8   :  { %3034 = vmatprep.subr.mxu1 %v1663_v60 }
 0xff9   :  { %3035 = vmatpush3.msra.mxu1 %v1663_v60 }
 0xffa   :  { %3036 = vmatprep.subr.mxu1 %v1662_v8 }
 0xffb   :  { %3037 = vmatpush3.msra.mxu1 %v1662_v8 }
 0xffc   :  { %3038 = vmatprep.subr.mxu1 %v1661_v11 }
 0xffd   :  { %3039 = vmatpush3.msra.mxu1 %v1661_v11 }
 0xffe   :  { %3065 = vmatprep.subr.mxu1 %v3331_v3 }
0x109e   :  { %v1441_v63 = vpop.f32.mrf.mxu1 }
0x109f   :  { %v1442_v35 = vadd.f32 %v1441_v63, %v1369_v61 }
0x10a0   :  { %v2976_v43 = vpop.f32.mrf.mxu1 }
0x10a1   :  { %v1445_v6 = vmax.f32 %v1442_v35, 0.0 }
0x10a3   :  { %3040 = vmatprep.mubr.msk.f32.mxu1 %vm150_vm3, %v1445_v6 }
0x10ae   :  { %v1586_v33 = vpop.f32.mrf.mxu1 }
0x10af   :  { %3016 = vmatpush3.msra.mxu0 %v1586_v33 }
0x10b0   :  { %v3014_v55 = vpop.f32.mrf.mxu1  ;;  %3017 = vmatprep.subr.mxu0 %v3331_v3 }
0x10b1   :  { %3018 = vmatpush3.msra.mxu0 %v3926_v44 }
0x10b2   :  { %3019 = vmatprep.subr.mxu0 %v3331_v3 }
0x10b3   :  { %3020 = vmatpush3.msra.mxu0 %v1516_v56 }
0x10b4   :  { %3022 = vmatmul.mubr.msk.f32.vlgmr.msra.gmra.mxu0 %vm1371_vm6, %v1220_v53  ;;  %3043 = vmatprep.subr.mxu0 %v3331_v3 }
0x10b5   :  { %3051 = vmatprep.mubr.msk.f32.mxu0 %vm3334_vm0, %v3331_v3  ;;  %3044 = vmatpush3.msra.mxu0 %v4018_v10 }
0x10b6   :  { %3045 = vmatprep.subr.mxu0 %v3331_v3 }
0x10b7   :  { %3046 = vmatpush3.msra.mxu0 %v4028_v1 }
0x10b8   :  { %3047 = vmatprep.subr.mxu0 %v3331_v3 }
0x10b9   :  { %3048 = vmatpush3.msra.mxu0 %v4035_v2 }
0x10ba   :  { %3049 = vmatprep.subr.mxu0 %v3331_v3 }
0x10bb   :  { %3050 = vmatpush3.msra.mxu0 %v4040_v4 }
0x10bc   :  { %3052 = vmatmul.mubr.f32.vlgmr.msra.gmra.mxu0 %v3331_v3  ;;  %3054 = vmatprep.subr.mxu0 %v3331_v3 }
0x10bd   :  { %3055 = vmatpush3.msra.mxu0 %v4018_v10  ;;  %3062 = vmatprep.mubr.msk.f32.mxu0 %vm3334_vm0, %v3331_v3 }
0x10be   :  { %3056 = vmatprep.subr.mxu0 %v3331_v3 }
0x10bf   :  { %3057 = vmatpush3.msra.mxu0 %v4028_v1 }
0x10c0   :  { %3058 = vmatprep.subr.mxu0 %v3331_v3 }
0x10c1   :  { %3059 = vmatpush3.msra.mxu0 %v4035_v2 }
0x10c2   :  { %3060 = vmatprep.subr.mxu0 %v3331_v3 }
0x10c3   :  { %3061 = vmatpush3.msra.mxu0 %v4040_v4 }
0x10c4   :  { %3076 = vmatprep.subr.mxu0 %v3331_v3 }
0x1174   :  { %v1656_v5 = vpop.f32.mrf.mxu0 }
0x1175   :  { %v1657_v7 = vadd.f32 %v1656_v5, %v1369_v61 }
0x1176   :  { %v3023_v9 = vpop.f32.mrf.mxu0 }
0x1177   :  { %v1660_v12 = vmax.f32 %v1657_v7, 0.0 }
0x1179   :  { %3041 = vmatmul.mubr.msk.f32.vlgmr.msra.gmra.mxu1 %vm150_vm3, %v1660_v12  ;;  %vm1760_vm3 = vcmask 1040384  }
0x117a   :  { %3066 = vmatpush3.msra.mxu1 %v4018_v10  ;;  %3073 = vmatprep.mubr.msk.f32.mxu1 %vm3334_vm0, %v3331_v3 }
0x117b   :  { %3067 = vmatprep.subr.mxu1 %v3331_v3 }
0x117c   :  { %3068 = vmatpush3.msra.mxu1 %v4028_v1  ;;  %v1835_v46 = vpop.f32.mrf.mxu0 }
0x117d   :  { %3069 = vmatprep.subr.mxu1 %v3331_v3 }
0x117e   :  { %3070 = vmatpush3.msra.mxu1 %v4035_v2  ;;  %v3053_v51 = vpop.f32.mrf.mxu0 }
0x117f   :  { %3071 = vmatprep.subr.mxu1 %v3331_v3 }
0x1180   :  { %3072 = vmatpush3.msra.mxu1 %v4040_v4 }
0x1181   :  { %3087 = vmatprep.subr.mxu1 %v3331_v3 }
0x1239   :  { %v3042_v16 = vpop.f32.mrf.mxu1 }
0x123a   :  { %v1754_v17 = vadd.f32 %v3042_v16, %v2818_v15 }
0x123b   :  { %v1748_v22 = vpop.f32.mrf.mxu1 }
0x123c   :  { %v1749_v62 = vadd.f32 %v2818_v15, %v1748_v22  ;;  %v1758_v18 = vrot.slane %v1754_v17, 7  ;;  %v2009_v19 = vrot.slane %v1754_v17, 1  ;;  %v2133_v20 = vrot.slane %v1754_v17, 2 }
0x123d   :  { %v2257_v21 = vrot.slane %v1754_v17, 3  ;;  %v2381_v13 = vrot.slane %v1754_v17, 4  ;;  %v2505_v24 = vrot.slane %v1754_v17, 5  ;;  %v2629_v25 = vrot.slane %v1754_v17, 6 }
0x123e   :  { %v1761_v27 = vsel %vm1760_vm3, %v1749_v62, %v1758_v18  ;;  %v1885_v29 = vrot.slane %v1749_v62, 1  ;;  %v2007_v30 = vrot.slane %v1749_v62, 2  ;;  %v2131_v31 = vrot.slane %v1749_v62, 3 }
0x123f   :  { %v1839_v32 = vadd.f32 %v1835_v46, %v1761_v27  ;;  %v2255_v34 = vrot.slane %v1749_v62, 4  ;;  %v2379_v37 = vrot.slane %v1749_v62, 5  ;;  %v2503_v38 = vrot.slane %v1749_v62, 6 }
0x1240   :  { %v1887_v0 = vsel %vm1760_vm3, %v1885_v29, %v1754_v17  ;;  %v4075_v28 = vsel %vm1760_vm3, %v2007_v30, %v2009_v19  ;;  %v4078_v39 = vsel %vm1760_vm3, %v2131_v31, %v2133_v20  ;;  %v2627_v40 = vrot.slane %v1749_v62, 7 }
0x1241   :  { %3235 = vtanh.f32 %v1839_v32  ;;  %v4081_v41 = vsel %vm1760_vm3, %v2255_v34, %v2257_v21  ;;  %v4084_v36 = vsel %vm1760_vm3, %v2379_v37, %v2381_v13  ;;  %v4087_v42 = vsel %vm1760_vm3, %v2503_v38, %v2505_v24 }
0x1242   :  { %v4090_v44 = vsel %vm1760_vm3, %v2627_v40, %v2629_v25  ;;  %v2821_v47 = vmul.f32 -1.442695, %v1839_v32 }
0x1244   :  { %3237 = vpow2.f32 %v2821_v47 }
0x124e   :  { %v3236_v45 = vpop.eup %3235 }
0x124f   :  { %1849 = vrot.lane.b32.xlu0 %v3236_v45, %s3332_s3 }
0x1251   :  { %v3238_v48 = vpop.eup %3237 }
0x1252   :  { %v1843_v49 = vadd.f32 1.0, %v3238_v48 }
0x1254   :  { %3239 = vrcp.f32 %v1843_v49 }
0x1261   :  { %v3240_v50 = vpop.eup %3239 }
0x1262   :  { %v1847_v56 = vmul.f32 0.0, %v3240_v50 }
0x12c1   :  { %v1850_v52 = vpop.permute.xlu0 %1849 }
0x12c2   :  { %v1852_v53 = vmul.f32 %v3240_v50, %v1850_v52 }
0x12c4   :  { %1854 = vrot.lane.b32.xlu1 %v1852_v53, %s3336_s8 }
0x1336   :  { %v1855_v57 = vpop.permute.xlu1 %1854 }
0x1337   :  { %v1857_v58 = vadd.f32 %v1855_v57, %v1847_v56 }
0x1339   :  { %3241 = vtanh.f32 %v1857_v58 }
0x1346   :  { %v3242_v26 = vpop.eup %3241 }
0x1347   :  { %1860 = vrot.lane.b32.xlu0 %v3242_v26, %s3332_s3 }
0x13b9   :  { %v1861_v54 = vpop.permute.xlu0 %1860 }
0x13ba   :  { %v1863_v23 = vmul.f32 %v3240_v50, %v1861_v54 }
0x13bc   :  { %1866 = vrot.lane.b32.xlu1 %v1863_v23, %s3336_s8 }
0x142e   :  { %v4096_v59 = vpop.permute.xlu1 %1866 }
0x142f   :  { %3063 = vmatmul.mubr.msk.f32.vlgmr.msra.gmra.mxu0 %vm1766_vm13, %v4096_v59 }
0x1430   :  { %3077 = vmatpush3.msra.mxu0 %v4018_v10  ;;  %3084 = vmatprep.mubr.msk.f32.mxu0 %vm3334_vm0, %v3331_v3 }
0x1431   :  { %3078 = vmatprep.subr.mxu0 %v3331_v3 }
0x1432   :  { %3079 = vmatpush3.msra.mxu0 %v4028_v1 }
0x1433   :  { %3080 = vmatprep.subr.mxu0 %v3331_v3 }
0x1434   :  { %3081 = vmatpush3.msra.mxu0 %v4035_v2 }
0x1435   :  { %3082 = vmatprep.subr.mxu0 %v3331_v3 }
0x1436   :  { %3083 = vmatpush3.msra.mxu0 %v4040_v4 }
0x1437   :  { %3098 = vmatprep.subr.mxu0 %v3331_v3 }
0x14ef   :  { %v1960_v60 = vpop.f32.mrf.mxu0 }
0x14f0   :  { %v1964_v61 = vadd.f32 %v1960_v60, %v1887_v0 }
0x14f1   :  { %v3064_v63 = vpop.f32.mrf.mxu0 }
0x14f2   :  { %3243 = vtanh.f32 %v1964_v61  ;;  %v2823_v43 = vmul.f32 -1.442695, %v1964_v61 }
0x14f4   :  { %3245 = vpow2.f32 %v2823_v43 }
0x14ff   :  { %v3244_v35 = vpop.eup %3243 }
0x1500   :  { %1974 = vrot.lane.b32.xlu0 %v3244_v35, %s3332_s3 }
0x1501   :  { %v3246_v6 = vpop.eup %3245 }
0x1502   :  { %v1968_v33 = vadd.f32 1.0, %v3246_v6 }
0x1504   :  { %3247 = vrcp.f32 %v1968_v33 }
0x1511   :  { %v3248_v55 = vpop.eup %3247 }
0x1512   :  { %v1972_v5 = vmul.f32 %v3248_v55, %v1857_v58 }
0x1572   :  { %v1975_v8 = vpop.permute.xlu0 %1974 }
0x1573   :  { %v1977_v11 = vmul.f32 %v3248_v55, %v1975_v8 }
0x1575   :  { %1979 = vrot.lane.b32.xlu1 %v1977_v11, %s3336_s8 }
0x15e7   :  { %v1980_v7 = vpop.permute.xlu1 %1979 }
0x15e8   :  { %v1982_v9 = vadd.f32 %v1980_v7, %v1972_v5 }
0x15ea   :  { %3249 = vtanh.f32 %v1982_v9 }
0x15f7   :  { %v3250_v12 = vpop.eup %3249 }
0x15f8   :  { %1985 = vrot.lane.b32.xlu0 %v3250_v12, %s3332_s3 }
0x166a   :  { %v1986_v46 = vpop.permute.xlu0 %1985 }
0x166b   :  { %v1988_v51 = vmul.f32 %v3248_v55, %v1986_v46 }
0x166d   :  { %1990 = vrot.lane.b32.xlu1 %v1988_v51, %s3336_s8 }
0x16df   :  { %v4114_v15 = vpop.permute.xlu1 %1990 }
0x16e0   :  { %3074 = vmatmul.mubr.msk.f32.vlgmr.msra.gmra.mxu1 %vm1766_vm13, %v4114_v15 }
0x16e1   :  { %3088 = vmatpush3.msra.mxu1 %v4018_v10  ;;  %3095 = vmatprep.mubr.msk.f32.mxu1 %vm3334_vm0, %v3331_v3 }
0x16e2   :  { %3089 = vmatprep.subr.mxu1 %v3331_v3 }
0x16e3   :  { %3090 = vmatpush3.msra.mxu1 %v4028_v1 }
0x16e4   :  { %3091 = vmatprep.subr.mxu1 %v3331_v3 }
0x16e5   :  { %3092 = vmatpush3.msra.mxu1 %v4035_v2 }
0x16e6   :  { %3093 = vmatprep.subr.mxu1 %v3331_v3 }
0x16e7   :  { %3094 = vmatpush3.msra.mxu1 %v4040_v4 }
0x16e8   :  { %3109 = vmatprep.subr.mxu1 %v3331_v3 }
0x17a0   :  { %v2084_v16 = vpop.f32.mrf.mxu1 }
0x17a1   :  { %v2088_v17 = vadd.f32 %v2084_v16, %v4075_v28 }
0x17a2   :  { %v3075_v22 = vpop.f32.mrf.mxu1 }
0x17a3   :  { %3251 = vtanh.f32 %v2088_v17  ;;  %v2825_v18 = vmul.f32 -1.442695, %v2088_v17 }
0x17a5   :  { %3253 = vpow2.f32 %v2825_v18 }
0x17b0   :  { %v3252_v62 = vpop.eup %3251 }
0x17b1   :  { %2098 = vrot.lane.b32.xlu0 %v3252_v62, %s3332_s3 }
0x17b2   :  { %v3254_v19 = vpop.eup %3253 }
0x17b3   :  { %v2092_v20 = vadd.f32 1.0, %v3254_v19 }
0x17b5   :  { %3255 = vrcp.f32 %v2092_v20 }
0x17c2   :  { %v3256_v21 = vpop.eup %3255 }
0x17c3   :  { %v2096_v25 = vmul.f32 %v3256_v21, %v1982_v9 }
0x1823   :  { %v2099_v13 = vpop.permute.xlu0 %2098 }
0x1824   :  { %v2101_v24 = vmul.f32 %v3256_v21, %v2099_v13 }
0x1826   :  { %2103 = vrot.lane.b32.xlu1 %v2101_v24, %s3336_s8 }
0x1898   :  { %v2104_v27 = vpop.permute.xlu1 %2103 }
0x1899   :  { %v2106_v29 = vadd.f32 %v2104_v27, %v2096_v25 }
0x189b   :  { %3257 = vtanh.f32 %v2106_v29 }
0x18a8   :  { %v3258_v30 = vpop.eup %3257 }
0x18a9   :  { %2109 = vrot.lane.b32.xlu0 %v3258_v30, %s3332_s3 }
0x191b   :  { %v2110_v31 = vpop.permute.xlu0 %2109 }
0x191c   :  { %v2112_v32 = vmul.f32 %v3256_v21, %v2110_v31 }
0x191e   :  { %2114 = vrot.lane.b32.xlu1 %v2112_v32, %s3336_s8 }
0x1990   :  { %v4133_v34 = vpop.permute.xlu1 %2114 }
0x1991   :  { %3085 = vmatmul.mubr.msk.f32.vlgmr.msra.gmra.mxu0 %vm1766_vm13, %v4133_v34 }
0x1992   :  { %3099 = vmatpush3.msra.mxu0 %v4018_v10  ;;  %3106 = vmatprep.mubr.msk.f32.mxu0 %vm3334_vm0, %v3331_v3 }
0x1993   :  { %3100 = vmatprep.subr.mxu0 %v3331_v3 }
0x1994   :  { %3101 = vmatpush3.msra.mxu0 %v4028_v1 }
0x1995   :  { %3102 = vmatprep.subr.mxu0 %v3331_v3 }
0x1996   :  { %3103 = vmatpush3.msra.mxu0 %v4035_v2 }
0x1997   :  { %3104 = vmatprep.subr.mxu0 %v3331_v3 }
0x1998   :  { %3105 = vmatpush3.msra.mxu0 %v4040_v4 }
0x1999   :  { %3120 = vmatprep.subr.mxu0 %v3331_v3 }
0x1a51   :  { %v2208_v37 = vpop.f32.mrf.mxu0 }
0x1a52   :  { %v2212_v38 = vadd.f32 %v2208_v37, %v4078_v39 }
0x1a53   :  { %v3086_v0 = vpop.f32.mrf.mxu0 }
0x1a54   :  { %3259 = vtanh.f32 %v2212_v38  ;;  %v2827_v40 = vmul.f32 -1.442695, %v2212_v38 }
0x1a56   :  { %3261 = vpow2.f32 %v2827_v40 }
0x1a61   :  { %v3260_v28 = vpop.eup %3259 }
0x1a62   :  { %2222 = vrot.lane.b32.xlu0 %v3260_v28, %s3332_s3 }
0x1a63   :  { %v3262_v45 = vpop.eup %3261 }
0x1a64   :  { %v2216_v47 = vadd.f32 1.0, %v3262_v45 }
0x1a66   :  { %3263 = vrcp.f32 %v2216_v47 }
0x1a73   :  { %v3264_v48 = vpop.eup %3263 }
0x1a74   :  { %v2220_v52 = vmul.f32 %v3264_v48, %v2106_v29 }
0x1ad4   :  { %v2223_v49 = vpop.permute.xlu0 %2222 }
0x1ad5   :  { %v2225_v50 = vmul.f32 %v3264_v48, %v2223_v49 }
0x1ad7   :  { %2227 = vrot.lane.b32.xlu1 %v2225_v50, %s3336_s8 }
0x1b49   :  { %v2228_v53 = vpop.permute.xlu1 %2227 }
0x1b4a   :  { %v2230_v56 = vadd.f32 %v2228_v53, %v2220_v52 }
0x1b4c   :  { %3265 = vtanh.f32 %v2230_v56 }
0x1b59   :  { %v3266_v39 = vpop.eup %3265 }
0x1b5a   :  { %2233 = vrot.lane.b32.xlu0 %v3266_v39, %s3332_s3 }
0x1bcc   :  { %v2234_v57 = vpop.permute.xlu0 %2233 }
0x1bcd   :  { %v2236_v58 = vmul.f32 %v3264_v48, %v2234_v57 }
0x1bcf   :  { %2238 = vrot.lane.b32.xlu1 %v2236_v58, %s3336_s8 }
0x1c41   :  { %v4152_v26 = vpop.permute.xlu1 %2238 }
0x1c42   :  { %3096 = vmatmul.mubr.msk.f32.vlgmr.msra.gmra.mxu1 %vm1766_vm13, %v4152_v26 }
0x1c43   :  { %3110 = vmatpush3.msra.mxu1 %v4018_v10  ;;  %3117 = vmatprep.mubr.msk.f32.mxu1 %vm3334_vm0, %v3331_v3 }
0x1c44   :  { %3111 = vmatprep.subr.mxu1 %v3331_v3 }
0x1c45   :  { %3112 = vmatpush3.msra.mxu1 %v4028_v1 }
0x1c46   :  { %3113 = vmatprep.subr.mxu1 %v3331_v3 }
0x1c47   :  { %3114 = vmatpush3.msra.mxu1 %v4035_v2 }
0x1c48   :  { %3115 = vmatprep.subr.mxu1 %v3331_v3 }
0x1c49   :  { %3116 = vmatpush3.msra.mxu1 %v4040_v4 }
0x1d02   :  { %v2332_v54 = vpop.f32.mrf.mxu1 }
0x1d03   :  { %v2336_v23 = vadd.f32 %v2332_v54, %v4081_v41 }
0x1d04   :  { %v3097_v60 = vpop.f32.mrf.mxu1 }
0x1d05   :  { %3267 = vtanh.f32 %v2336_v23  ;;  %v2829_v63 = vmul.f32 -1.442695, %v2336_v23 }
0x1d07   :  { %3269 = vpow2.f32 %v2829_v63 }
0x1d12   :  { %v3268_v61 = vpop.eup %3267 }
0x1d13   :  { %2346 = vrot.lane.b32.xlu0 %v3268_v61, %s3332_s3 }
0x1d14   :  { %v3270_v35 = vpop.eup %3269 }
0x1d15   :  { %v2340_v43 = vadd.f32 1.0, %v3270_v35 }
0x1d17   :  { %3271 = vrcp.f32 %v2340_v43  ;;  %v1869_v43 = vsel %vm1864_vm14, %v4096_v59, -inf }
0x1d24   :  { %v3272_v6 = vpop.eup %3271 }
0x1d25   :  { %v2344_v8 = vmul.f32 %v3272_v6, %v2230_v56 }
0x1d85   :  { %v2347_v33 = vpop.permute.xlu0 %2346 }
0x1d86   :  { %v2349_v55 = vmul.f32 %v3272_v6, %v2347_v33  ;;  %v1993_v33 = vsel %vm1864_vm14, %v4114_v15, -inf }
0x1d88   :  { %2351 = vrot.lane.b32.xlu1 %v2349_v55, %s3336_s8  ;;  %v1994_v55 = vsel %vm1870_vm15, %v1993_v33, -inf }
0x1dfa   :  { %v2352_v11 = vpop.permute.xlu1 %2351 }
0x1dfb   :  { %v2354_v5 = vadd.f32 %v2352_v11, %v2344_v8 }
0x1dfd   :  { %3273 = vtanh.f32 %v2354_v5 }
0x1e0a   :  { %v3274_v41 = vpop.eup %3273 }
0x1e0b   :  { %2357 = vrot.lane.b32.xlu0 %v3274_v41, %s3332_s3 }
0x1e7d   :  { %v2358_v7 = vpop.permute.xlu0 %2357 }
0x1e7e   :  { %v2360_v9 = vmul.f32 %v3272_v6, %v2358_v7  ;;  %v1871_v6 = vsel %vm1870_vm15, %v1869_v43, -inf }
0x1e80   :  { %2362 = vrot.lane.b32.xlu1 %v2360_v9, %s3336_s8 }
0x1ef2   :  { %v4170_v12 = vpop.permute.xlu1 %2362 }
0x1ef3   :  { %3107 = vmatmul.mubr.msk.f32.vlgmr.msra.gmra.mxu0 %vm1766_vm13, %v4170_v12 }
0x1ef4   :  { %3121 = vmatpush3.msra.mxu0 %v4018_v10  ;;  %3128 = vmatprep.mubr.msk.f32.mxu0 %vm3334_vm0, %v3331_v3 }
0x1ef5   :  { %3122 = vmatprep.subr.mxu0 %v3331_v3 }
0x1ef6   :  { %3123 = vmatpush3.msra.mxu0 %v4028_v1 }
0x1ef7   :  { %3124 = vmatprep.subr.mxu0 %v3331_v3 }
0x1ef8   :  { %3125 = vmatpush3.msra.mxu0 %v4035_v2 }
0x1ef9   :  { %3126 = vmatprep.subr.mxu0 %v3331_v3 }
0x1efa   :  { %3127 = vmatpush3.msra.mxu0 %v4040_v4 }
0x1fb3   :  { %v2456_v46 = vpop.f32.mrf.mxu0 }
0x1fb4   :  { %v2460_v51 = vadd.f32 %v2456_v46, %v4084_v36 }
0x1fb5   :  { %v3108_v16 = vpop.f32.mrf.mxu0 }
0x1fb6   :  { %3275 = vtanh.f32 %v2460_v51  ;;  %v2831_v17 = vmul.f32 -1.442695, %v2460_v51 }
0x1fb8   :  { %3277 = vpow2.f32 %v2831_v17 }
0x1fc3   :  { %v3276_v10 = vpop.eup %3275 }
0x1fc4   :  { %2470 = vrot.lane.b32.xlu0 %v3276_v10, %s3332_s3  ;;  %v2117_v10 = vsel %vm1864_vm14, %v4133_v34, -inf  ;;  %v2365_v34 = vsel %vm1864_vm14, %v4170_v12, -inf }
0x1fc5   :  { %v3278_v22 = vpop.eup %3277 }
0x1fc6   :  { %v2464_v1 = vadd.f32 1.0, %v3278_v22 }
0x1fc8   :  { %3279 = vrcp.f32 %v2464_v1  ;;  %v2118_v1 = vsel %vm1870_vm15, %v2117_v10, -inf }
0x1fd5   :  { %v3280_v62 = vpop.eup %3279 }
0x1fd6   :  { %v2468_v3 = vmul.f32 %v3280_v62, %v2354_v5 }
0x2036   :  { %v2471_v18 = vpop.permute.xlu0 %2470 }
0x2037   :  { %v2473_v2 = vmul.f32 %v3280_v62, %v2471_v18  ;;  %v2241_v18 = vsel %vm1864_vm14, %v4152_v26, -inf }
0x2039   :  { %2475 = vrot.lane.b32.xlu1 %v2473_v2, %s3336_s8  ;;  %v2242_v2 = vsel %vm1870_vm15, %v2241_v18, -inf }
0x20ab   :  { %v2476_v4 = vpop.permute.xlu1 %2475 }
0x20ac   :  { %v2478_v19 = vadd.f32 %v2476_v4, %v2468_v3  ;;  %v2366_v3 = vsel %vm1870_vm15, %v2365_v34, -inf }
0x20ae   :  { %3281 = vtanh.f32 %v2478_v19 }
0x20bb   :  { %v3282_v36 = vpop.eup %3281 }
0x20bc   :  { %2481 = vrot.lane.b32.xlu0 %v3282_v36, %s3332_s3 }
0x212e   :  { %v2482_v20 = vpop.permute.xlu0 %2481 }
0x212f   :  { %v2484_v21 = vmul.f32 %v3280_v62, %v2482_v20 }
0x2131   :  { %2486 = vrot.lane.b32.xlu1 %v2484_v21, %s3336_s8 }
0x21a3   :  { %v4188_v13 = vpop.permute.xlu1 %2486 }
0x21a4   :  { %3118 = vmatmul.mubr.msk.f32.vlgmr.msra.gmra.mxu1 %vm1766_vm13, %v4188_v13 }
0x2264   :  { %v2580_v24 = vpop.f32.mrf.mxu1 }
0x2265   :  { %v2584_v25 = vadd.f32 %v2580_v24, %v4087_v42 }
0x2266   :  { %v3119_v27 = vpop.f32.mrf.mxu1 }
0x2267   :  { %3283 = vtanh.f32 %v2584_v25  ;;  %v2833_v30 = vmul.f32 -1.442695, %v2584_v25 }
0x2269   :  { %3285 = vpow2.f32 %v2833_v30 }
0x2274   :  { %v3284_v29 = vpop.eup %3283 }
0x2275   :  { %2594 = vrot.lane.b32.xlu0 %v3284_v29, %s3332_s3 }
0x2276   :  { %v3286_v31 = vpop.eup %3285 }
0x2277   :  { %v2588_v32 = vadd.f32 1.0, %v3286_v31 }
0x2279   :  { %3287 = vrcp.f32 %v2588_v32 }
0x2286   :  { %v3288_v37 = vpop.eup %3287 }
0x2287   :  { %v2592_v28 = vmul.f32 %v3288_v37, %v2478_v19 }
0x22e7   :  { %v2595_v38 = vpop.permute.xlu0 %2594 }
0x22e8   :  { %v2597_v0 = vmul.f32 %v3288_v37, %v2595_v38 }
0x22ea   :  { %2599 = vrot.lane.b32.xlu1 %v2597_v0, %s3336_s8 }
0x235c   :  { %v2600_v40 = vpop.permute.xlu1 %2599 }
0x235d   :  { %v2602_v45 = vadd.f32 %v2600_v40, %v2592_v28 }
0x235f   :  { %3289 = vtanh.f32 %v2602_v45 }
0x236c   :  { %v3290_v42 = vpop.eup %3289 }
0x236d   :  { %2605 = vrot.lane.b32.xlu0 %v3290_v42, %s3332_s3 }
0x23df   :  { %v2606_v47 = vpop.permute.xlu0 %2605 }
0x23e0   :  { %v2608_v48 = vmul.f32 %v3288_v37, %v2606_v47 }
0x23e2   :  { %2610 = vrot.lane.b32.xlu1 %v2608_v48, %s3336_s8 }
0x2454   :  { %v2611_v49 = vpop.permute.xlu1 %2610 }
0x2455   :  { %3129 = vmatmul.mubr.msk.f32.vlgmr.msra.gmra.mxu0 %vm1766_vm13, %v2611_v49  ;;  %v2613_v4 = vsel %vm1864_vm14, %v2611_v49, -inf }
0x2456   :  { %v2614_v19 = vsel %vm1870_vm15, %v2613_v4, -inf }
0x2515   :  { %v2704_v50 = vpop.f32.mrf.mxu0 }
0x2516   :  { %v2708_v52 = vadd.f32 %v2704_v50, %v4090_v44 }
0x2517   :  { %v3130_v53 = vpop.f32.mrf.mxu0 }
0x2518   :  { %3291 = vtanh.f32 %v2708_v52  ;;  %v2835_v39 = vmul.f32 -1.442695, %v2708_v52 }
0x251a   :  { %3293 = vpow2.f32 %v2835_v39 }
0x2525   :  { %v3292_v56 = vpop.eup %3291 }
0x2526   :  { %2718 = vrot.lane.b32.xlu0 %v3292_v56, %s3332_s3  ;;  %v2489_v56 = vsel %vm1864_vm14, %v4188_v13, -inf }
0x2527   :  { %v3294_v57 = vpop.eup %3293 }
0x2528   :  { %v2712_v58 = vadd.f32 1.0, %v3294_v57 }
0x252a   :  { %3295 = vrcp.f32 %v2712_v58 }
0x2537   :  { %v3296_v54 = vpop.eup %3295 }
0x2538   :  { %v2716_v61 = vmul.f32 %v3296_v54, %v2602_v45 }
0x2598   :  { %v2719_v23 = vpop.permute.xlu0 %2718 }
0x2599   :  { %v2721_v60 = vmul.f32 %v3296_v54, %v2719_v23 }
0x259b   :  { %2723 = vrot.lane.b32.xlu1 %v2721_v60, %s3336_s8 }
0x260d   :  { %v2724_v63 = vpop.permute.xlu1 %2723 }
0x260e   :  { %v2726_v35 = vadd.f32 %v2724_v63, %v2716_v61 }
0x2610   :  { %3297 = vtanh.f32 %v2726_v35 }
0x261d   :  { %v3298_v44 = vpop.eup %3297 }
0x261e   :  { %2729 = vrot.lane.b32.xlu0 %v3298_v44, %s3332_s3 }
0x263d   :  { %1872 = vmax.xlane.f32.xlu0 %v1871_v6 }
0x2641   :  { %1995 = vmax.xlane.f32.xlu0 %v1994_v55 }
0x2690   :  { %v2730_v8 = vpop.permute.xlu0 %2729 }
0x2691   :  { %v2732_v11 = vmul.f32 %v3296_v54, %v2730_v8  ;;  %v2490_v54 = vsel %vm1870_vm15, %v2489_v56, -inf }
0x2693   :  { %2734 = vrot.lane.b32.xlu1 %v2732_v11, %s3336_s8 }
0x26c6   :  { %v1873_v5 = vpop.xlane.xlu0 %1872 }
0x26c7   :  { %v1874_v41 = vsub.f32 %v1869_v43, %v1873_v5 }
0x26c9   :  { %v1875_v7 = vmul.f32 1.442695, %v1874_v41 }
0x26ca   :  { %v1996_v9 = vpop.xlane.xlu0 %1995 }
0x26cb   :  { %3299 = vpow2.f32 %v1875_v7  ;;  %v1997_v59 = vsub.f32 %v1993_v33, %v1996_v9 }
0x26cd   :  { %v1998_v46 = vmul.f32 1.442695, %v1997_v59 }
0x26cf   :  { %3301 = vpow2.f32 %v1998_v46 }
0x26d8   :  { %v3300_v51 = vpop.eup %3299 }
0x26d9   :  { %v1877_v16 = vsel %vm1864_vm14, %v3300_v51, 0.0 }
0x26da   :  { %v1878_v15 = vsel %vm1870_vm15, %v1877_v16, 0.0 }
0x26db   :  { %1879 = vadd.xlane.f32.xlu1 %v1878_v15 }
0x26dc   :  { %v3302_v17 = vpop.eup %3301 }
0x26dd   :  { %v2000_v22 = vsel %vm1864_vm14, %v3302_v17, 0.0 }
0x26de   :  { %v2001_v62 = vsel %vm1870_vm15, %v2000_v22, 0.0 }
0x26df   :  { %2119 = vmax.xlane.f32.xlu1 %v2118_v1  ;;  %2002 = vadd.xlane.f32.xlu0 %v2001_v62 }
0x26e3   :  { %2243 = vmax.xlane.f32.xlu1 %v2242_v2 }
0x26e7   :  { %2367 = vmax.xlane.f32.xlu1 %v2366_v3 }
0x26eb   :  { %2615 = vmax.xlane.f32.xlu1 %v2614_v19 }
0x2705   :  { %v2735_v36 = vpop.permute.xlu1 %2734 }
0x2706   :  { %v2737_v23 = vsel %vm1864_vm14, %v2735_v36, -inf }
0x2707   :  { %v2738_v13 = vsel %vm1870_vm15, %v2737_v23, -inf }
0x2764   :  { %v1880_v20 = vpop.xlane.xlu1 %1879 }
0x2765   :  { %3303 = vrcp.f32 %v1880_v20 }
0x2768   :  { %v2120_v26 = vpop.xlane.xlu1 %2119  ;;  %v2003_v21 = vpop.xlane.xlu0 %2002 }
0x2769   :  { %v2121_v24 = vsub.f32 %v2117_v10, %v2120_v26  ;;  %3305 = vrcp.f32 %v2003_v21 }
0x276b   :  { %v2122_v25 = vmul.f32 1.442695, %v2121_v24 }
0x276c   :  { %v2244_v27 = vpop.xlane.xlu1 %2243 }
0x276d   :  { %3307 = vpow2.f32 %v2122_v25  ;;  %v2245_v12 = vsub.f32 %v2241_v18, %v2244_v27 }
0x276f   :  { %v2246_v29 = vmul.f32 1.442695, %v2245_v12 }
0x2770   :  { %v2368_v30 = vpop.xlane.xlu1 %2367 }
0x2771   :  { %3309 = vpow2.f32 %v2246_v29  ;;  %v2369_v31 = vsub.f32 %v2365_v34, %v2368_v30 }
0x2772   :  { %v3304_v32 = vpop.eup %3303 }
0x2773   :  { %v1882_v37 = vmul.f32 %v3304_v32, %v1877_v16  ;;  %v2370_v38 = vmul.f32 1.442695, %v2369_v31 }
0x2774   :  { %v2616_v0 = vpop.xlane.xlu1 %2615 }
0x2775   :  { %1883 = vst.msk [vmem:[%s4299_s9] sm:$0x3] %vm1870_vm15, %v1882_v37  ;;  %3311 = vpow2.f32 %v2370_v38  ;;  %v2617_v28 = vsub.f32 %v2613_v4, %v2616_v0 }
0x2776   :  { %v3306_v40 = vpop.eup %3305 }
0x2777   :  { %v2005_v45 = vmul.f32 %v3306_v40, %v2000_v22  ;;  %v2618_v42 = vmul.f32 1.442695, %v2617_v28 }
0x2779   :  { %2006 = vst.msk [vmem:[%s4299_s9 + $0x2] sm:$0x3] %vm1870_vm15, %v2005_v45  ;;  %3313 = vpow2.f32 %v2618_v42 }
0x277a   :  { %v3308_v47 = vpop.eup %3307 }
0x277b   :  { %v2124_v48 = vsel %vm1864_vm14, %v3308_v47, 0.0 }
0x277c   :  { %v2125_v49 = vsel %vm1870_vm15, %v2124_v48, 0.0 }
0x277d   :  { %2126 = vadd.xlane.f32.xlu0 %v2125_v49 }
0x277e   :  { %v3310_v50 = vpop.eup %3309 }
0x277f   :  { %v2248_v52 = vsel %vm1864_vm14, %v3310_v50, 0.0 }
0x2780   :  { %v2249_v53 = vsel %vm1870_vm15, %v2248_v52, 0.0 }
0x2781   :  { %2250 = vadd.xlane.f32.xlu0 %v2249_v53 }
0x2782   :  { %v3312_v39 = vpop.eup %3311 }
0x2783   :  { %v2372_v57 = vsel %vm1864_vm14, %v3312_v39, 0.0 }
0x2784   :  { %v2373_v58 = vsel %vm1870_vm15, %v2372_v57, 0.0 }
0x2785   :  { %2374 = vadd.xlane.f32.xlu1 %v2373_v58  ;;  %2491 = vmax.xlane.f32.xlu0 %v2490_v54 }
0x2786   :  { %v3314_v60 = vpop.eup %3313 }
0x2787   :  { %v2620_v61 = vsel %vm1864_vm14, %v3314_v60, 0.0 }
0x2788   :  { %v2621_v63 = vsel %vm1870_vm15, %v2620_v61, 0.0 }
0x2789   :  { %2622 = vadd.xlane.f32.xlu1 %v2621_v63  ;;  %2739 = vmax.xlane.f32.xlu0 %v2738_v13 }
0x2806   :  { %v2127_v35 = vpop.xlane.xlu0 %2126 }
0x2807   :  { %3315 = vrcp.f32 %v2127_v35 }
0x280a   :  { %v2251_v44 = vpop.xlane.xlu0 %2250 }
0x280b   :  { %3317 = vrcp.f32 %v2251_v44 }
0x280e   :  { %v2375_v43 = vpop.xlane.xlu1 %2374  ;;  %v2492_v6 = vpop.xlane.xlu0 %2491 }
0x280f   :  { %3319 = vrcp.f32 %v2375_v43  ;;  %v2493_v33 = vsub.f32 %v2489_v56, %v2492_v6 }
0x2811   :  { %v2494_v55 = vmul.f32 1.442695, %v2493_v33 }
0x2812   :  { %v2623_v8 = vpop.xlane.xlu1 %2622  ;;  %v2740_v11 = vpop.xlane.xlu0 %2739 }
0x2813   :  { %3321 = vpow2.f32 %v2494_v55  ;;  %v2741_v5 = vsub.f32 %v2737_v23, %v2740_v11 }
0x2814   :  { %v3316_v41 = vpop.eup %3315  ;;  %3323 = vrcp.f32 %v2623_v8 }
0x2815   :  { %v2129_v7 = vmul.f32 %v3316_v41, %v2124_v48  ;;  %v2742_v9 = vmul.f32 1.442695, %v2741_v5 }
0x2817   :  { %2130 = vst.msk [vmem:[%s4299_s9 + $0x4] sm:$0x3] %vm1870_vm15, %v2129_v7  ;;  %3325 = vpow2.f32 %v2742_v9 }
0x2818   :  { %v3318_v59 = vpop.eup %3317 }
0x2819   :  { %v2253_v46 = vmul.f32 %v3318_v59, %v2248_v52 }
0x281b   :  { %2254 = vst.msk [vmem:[%s4299_s9 + $0x6] sm:$0x3] %vm1870_vm15, %v2253_v46 }
0x281c   :  { %v3320_v51 = vpop.eup %3319 }
0x281d   :  { %v2377_v16 = vmul.f32 %v3320_v51, %v2372_v57 }
0x281f   :  { %2378 = vst.msk [vmem:[%s4299_s9 + $0x8] sm:$0x3] %vm1870_vm15, %v2377_v16 }
0x2820   :  { %v3322_v15 = vpop.eup %3321 }
0x2821   :  { %v3324_v10 = vpop.eup %3323  ;;  %v2496_v17 = vsel %vm1864_vm14, %v3322_v15, 0.0 }
0x2822   :  { %v2625_v22 = vmul.f32 %v3324_v10, %v2620_v61  ;;  %v2497_v1 = vsel %vm1870_vm15, %v2496_v17, 0.0 }
0x2823   :  { %2498 = vadd.xlane.f32.xlu0 %v2497_v1 }
0x2824   :  { %v3326_v62 = vpop.eup %3325  ;;  %2626 = vst.msk [vmem:[%s4299_s9 + $0xc] sm:$0x3] %vm1870_vm15, %v2625_v22 }
0x2825   :  { %v2744_v18 = vsel %vm1864_vm14, %v3326_v62, 0.0 }
0x2826   :  { %v2745_v2 = vsel %vm1870_vm15, %v2744_v18, 0.0 }
0x2827   :  { %2746 = vadd.xlane.f32.xlu0 %v2745_v2 }
0x28ac   :  { %v2499_v34 = vpop.xlane.xlu0 %2498 }
0x28ad   :  { %3327 = vrcp.f32 %v2499_v34 }
0x28b0   :  { %v2747_v3 = vpop.xlane.xlu0 %2746 }
0x28b1   :  { %3329 = vrcp.f32 %v2747_v3 }
0x28ba   :  { %v3328_v4 = vpop.eup %3327 }
0x28bb   :  { %v2501_v19 = vmul.f32 %v3328_v4, %v2496_v17 }
0x28bd   :  { %2502 = vst.msk [vmem:[%s4299_s9 + $0xa] sm:$0x3] %vm1870_vm15, %v2501_v19 }
0x28be   :  { %v3330_v36 = vpop.eup %3329 }
0x28bf   :  { %v2749_v20 = vmul.f32 %v3330_v36, %v2744_v18 }
0x28c1   :  { %2750 = vst.msk [vmem:[%s4299_s9 + $0xe] sm:$0x3] %vm1870_vm15, %v2749_v20 }

</bundles_post_ra>
